<compile_context>
chip_gen: v7x
topology: tpu7x:2x2x1
jax: 0.10.0
libtpu: 0.0.40
codegen_flags: <defaults>
</compile_context>

<pallas_src>
import jax
import jax.numpy as jnp
from jax import lax
from jax.experimental import pallas as pl
from jax.experimental.pallas import tpu as pltpu


def _constraint_partials_kernel(x_ref, out_ref):
    # x_ref  : VMEM (9, 9, T, bb)  -- (row, col, token_sublane, batch_lane)
    # out_ref: VMEM (1, 3, bb)     -- per-lane partial [row, col, block] squared-dev sums
    _, _, T, bb = x_ref.shape

    acc_row = None                 # (T, bb) accumulated row-constraint squared deviations
    rt = [None, None, None]        # (9, T, bb) per row-triple probability sums (cols kept)

    # Stream over the 9 rows: softmax one (9_col, T, bb) slab at a time and fold
    # it into the accumulators (keeps the live set near vreg-resident).
    for i in range(9):
        xi = x_ref[i].astype(jnp.float32)               # (9_col, T, bb)
        m = jnp.max(xi, axis=1, keepdims=True)          # (9, 1, bb)
        e = jnp.exp(xi - m)                             # (9, T, bb)
        s = jnp.sum(e, axis=1, keepdims=True)           # (9, 1, bb)
        pd = e * pl.reciprocal(s, approx=True)          # (9, T, bb), full-T probabilities

        # Row constraint: sum over the 9 columns (leading-axis VPU adds).
        dev = (jnp.sum(pd, axis=0) - 1.0) ** 2          # (T, bb)
        acc_row = dev if acc_row is None else acc_row + dev

        # Row-triple partial sums, reused for both column and block constraints.
        t = i // 3
        rt[t] = pd if rt[t] is None else rt[t] + pd

    rt0, rt1, rt2 = rt

    # Column constraint: sum over all 9 rows == rt0 + rt1 + rt2.
    col_dev = jnp.sum(((rt0 + rt1 + rt2) - 1.0) ** 2, axis=0)      # (T, bb)

    # Block constraint: 3x3 column-triples of each row-triple (leading-axis slab adds).
    blk_dev = None
    for r in (rt0, rt1, rt2):
        for j in range(3):
            bs = r[3 * j] + r[3 * j + 1] + r[3 * j + 2]            # (T, bb)
            d = (bs - 1.0) ** 2
            blk_dev = d if blk_dev is None else blk_dev + d

    # Digit mask (tokens 1..9), applied only to the small reduced tensors.
    tok = lax.broadcasted_iota(jnp.int32, (T, bb), 0)
    dmask = jnp.logical_and(tok >= 1, tok <= 9).astype(jnp.float32)

    def _finish(a):                                                 # (T, bb) -> (1, bb)
        return jnp.sum(a * dmask, axis=0, keepdims=True)

    out_ref[0] = jnp.concatenate(
        [_finish(acc_row), _finish(col_dev), _finish(blk_dev)], axis=0)   # (3, bb)


def _pick_batch_block(b):
    # Small batches: a single block (block dims == full dims is always legal).
    if b <= 128:
        return b
    # Prefer >=2 lane-dense (multiple-of-128) blocks so both v7x TensorCores get
    # work, while keeping the double-buffered block a few MiB (safe for v7x's
    # smaller VMEM). No measurable cost on single-TC v5e/v6e (grid is a cheap loop).
    for bb in (512, 384, 256, 128):
        if b % bb == 0 and b // bb >= 2:
            return bb
    # Non-divisible batches: fixed lane-dense block; the wrapper pads the batch
    # axis to a whole number of blocks and drops the padded lanes afterwards.
    return 128


def constraint_loss(logits, lambdas):
    """logits: (B, 9, 9, T) float, lambdas: (3,) [row, col, block] -> scalar f32."""
    B, R, C, T = logits.shape
    assert R == 9 and C == 9, "expected a 9x9 Sudoku grid"
    assert T >= 10, "num_tokens must be >= 10 (digit tokens 1..9)"

    # Lane-dense, constraint-friendly layout: (row, col, token, batch).
    # NOTE: no dtype cast here -- the kernel upcasts per-row slabs, so bf16 inputs
    # are transposed and DMA'd at half the bytes.
    # TODO(synk): have the producer emit (9, 9, T, B) directly to remove this HBM
    # transpose round trip entirely.
    x = jnp.transpose(logits, (1, 2, 3, 0))                        # (9, 9, T, B)

    bb = _pick_batch_block(B)
    g = pl.cdiv(B, bb)
    Bp = g * bb
    if Bp != B:
        # Pad the batch (lane) axis to whole lane-dense blocks; padded lanes produce
        # finite garbage partials which are dropped below before the final reduction.
        x = jnp.pad(x, ((0, 0), (0, 0), (0, 0), (0, Bp - B)))

    partials = pl.pallas_call(
        _constraint_partials_kernel,
        out_shape=jax.ShapeDtypeStruct((g, 3, bb), jnp.float32),
        grid=(g,),
        in_specs=[pl.BlockSpec((9, 9, T, bb), lambda i: (0, 0, 0, i))],
        out_specs=pl.BlockSpec((1, 3, bb), lambda i: (i, 0, 0)),
        compiler_params=pltpu.CompilerParams(
            dimension_semantics=("parallel",)),
    )(x)

    # Finish in JAX: drop padded lanes, cross-lane (batch) sum, normalize (each
    # torch .mean() is over B*9 elements), and apply the learnable lambda weights.
    per_lane = jnp.swapaxes(partials, 1, 2).reshape(Bp, 3)[:B]     # (B, 3)
    per = jnp.sum(per_lane, axis=0) / jnp.float32(B * 9)
    return jnp.dot(lambdas.astype(jnp.float32), per)


if __name__ == "__main__":
    key = jax.random.PRNGKey(0)
    lambdas = jnp.array([1.0, 1.0, 1.0], dtype=jnp.float32)   # ConstraintLoss defaults

    def ref_loss(lg, lam):
        # pure-JAX reference (mirrors the PyTorch forward)
        b = lg.shape[0]
        p = jax.nn.softmax(lg.astype(jnp.float32), axis=-1)[..., 1:10]
        r = jnp.sum((jnp.sum(p, axis=2) - 1.0) ** 2) / (b * 9)
        c = jnp.sum((jnp.sum(p, axis=1) - 1.0) ** 2) / (b * 9)
        pb = p.reshape(b, 3, 3, 3, 3, 9)
        bl = jnp.sum((jnp.sum(pb, axis=(2, 4)) - 1.0) ** 2) / (b * 9)
        return lam[0] * r + lam[1] * c + lam[2] * bl

    # Case 1: small batch, single block.
    B, T = 2, 16                                       # num_tokens >= 10
    logits = jax.random.normal(key, (B, 9, 9, T), dtype=jnp.float32)
    loss = constraint_loss(logits, lambdas)
    jax.block_until_ready(loss)
    ref = ref_loss(logits, lambdas)
    # Tolerance loosened because the softmax denominator uses the EUP approx
    # reciprocal (a training-loss-irrelevant ~1e-4 relative perturbation).
    assert jnp.allclose(loss, ref, atol=1e-2, rtol=1e-2), (loss, ref)

    # Case 2: non-divisible batch -> multi-step grid + padded tail path.
    B2 = 200
    logits2 = jax.random.normal(jax.random.PRNGKey(1), (B2, 9, 9, T), dtype=jnp.float32)
    loss2 = constraint_loss(logits2, lambdas)
    jax.block_until_ready(loss2)
    ref2 = ref_loss(logits2, lambdas)
    assert jnp.allclose(loss2, ref2, atol=1e-2, rtol=1e-2), (loss2, ref2)

    print("KERNEL_OK")
</pallas_src>

<mosaic_0001>
module attributes {stable_mosaic.version = 11 : i64} {
  func.func @_constraint_partials_kernel(%arg0: i32, %arg1: memref<9x9x16x2xf32, #tpu.memory_space<vmem>>, %arg2: memref<1x3x2xf32, #tpu.memory_space<vmem>>) attributes {dimension_semantics = [#tpu.dimension_semantics<parallel>], iteration_bounds = array<i64: 1>, scalar_prefetch = 0 : i64, scratch_operands = 0 : i64, tpu.core_type = #tpu.core_type<tc>, window_params = [{transform_indices = @transform_0, window_bounds = array<i64: 9, 9, 16, 2>}, {transform_indices = @transform_1, window_bounds = array<i64: 1, 3, 2>}]} {
    %c0 = arith.constant 0 : index
    %c0_0 = arith.constant 0 : index
    %c0_1 = arith.constant 0 : index
    %c0_2 = arith.constant 0 : index
    %0 = vector.load %arg1[%c0, %c0_0, %c0_1, %c0_2] : memref<9x9x16x2xf32, #tpu.memory_space<vmem>>, vector<1x9x16x2xf32>
    %1 = vector.shape_cast %0 : vector<1x9x16x2xf32> to vector<9x16x2xf32>
    %cst = arith.constant dense<0xFF800000> : vector<9x2xf32>
    %2 = vector.multi_reduction <maximumf>, %1, %cst [1] : vector<9x16x2xf32> to vector<9x2xf32>
    %3 = vector.shape_cast %2 : vector<9x2xf32> to vector<9x1x2xf32>
    %4 = vector.broadcast %3 : vector<9x1x2xf32> to vector<9x16x2xf32>
    %5 = arith.subf %1, %4 : vector<9x16x2xf32>
    %6 = math.exp %5 : vector<9x16x2xf32>
    %cst_3 = arith.constant dense<0.000000e+00> : vector<9x2xf32>
    %7 = vector.multi_reduction <add>, %6, %cst_3 [1] : vector<9x16x2xf32> to vector<9x2xf32>
    %8 = vector.shape_cast %7 : vector<9x2xf32> to vector<9x1x2xf32>
    %9 = tpu.reciprocal %8 {approx = true} : vector<9x1x2xf32> -> vector<9x1x2xf32>
    %10 = vector.broadcast %9 : vector<9x1x2xf32> to vector<9x16x2xf32>
    %11 = arith.mulf %6, %10 : vector<9x16x2xf32>
    %cst_4 = arith.constant dense<0.000000e+00> : vector<16x2xf32>
    %12 = vector.multi_reduction <add>, %11, %cst_4 [0] : vector<9x16x2xf32> to vector<16x2xf32>
    %cst_5 = arith.constant 1.000000e+00 : f32
    %13 = vector.broadcast %cst_5 : f32 to vector<16x2xf32>
    %14 = arith.subf %12, %13 : vector<16x2xf32>
    %15 = arith.mulf %14, %14 : vector<16x2xf32>
    %c1 = arith.constant 1 : index
    %c0_6 = arith.constant 0 : index
    %c0_7 = arith.constant 0 : index
    %c0_8 = arith.constant 0 : index
    %16 = vector.load %arg1[%c1, %c0_6, %c0_7, %c0_8] : memref<9x9x16x2xf32, #tpu.memory_space<vmem>>, vector<1x9x16x2xf32>
    %17 = vector.shape_cast %16 : vector<1x9x16x2xf32> to vector<9x16x2xf32>
    %cst_9 = arith.constant dense<0xFF800000> : vector<9x2xf32>
    %18 = vector.multi_reduction <maximumf>, %17, %cst_9 [1] : vector<9x16x2xf32> to vector<9x2xf32>
    %19 = vector.shape_cast %18 : vector<9x2xf32> to vector<9x1x2xf32>
    %20 = vector.broadcast %19 : vector<9x1x2xf32> to vector<9x16x2xf32>
    %21 = arith.subf %17, %20 : vector<9x16x2xf32>
    %22 = math.exp %21 : vector<9x16x2xf32>
    %cst_10 = arith.constant dense<0.000000e+00> : vector<9x2xf32>
    %23 = vector.multi_reduction <add>, %22, %cst_10 [1] : vector<9x16x2xf32> to vector<9x2xf32>
    %24 = vector.shape_cast %23 : vector<9x2xf32> to vector<9x1x2xf32>
    %25 = tpu.reciprocal %24 {approx = true} : vector<9x1x2xf32> -> vector<9x1x2xf32>
    %26 = vector.broadcast %25 : vector<9x1x2xf32> to vector<9x16x2xf32>
    %27 = arith.mulf %22, %26 : vector<9x16x2xf32>
    %cst_11 = arith.constant dense<0.000000e+00> : vector<16x2xf32>
    %28 = vector.multi_reduction <add>, %27, %cst_11 [0] : vector<9x16x2xf32> to vector<16x2xf32>
    %cst_12 = arith.constant 1.000000e+00 : f32
    %29 = vector.broadcast %cst_12 : f32 to vector<16x2xf32>
    %30 = arith.subf %28, %29 : vector<16x2xf32>
    %31 = arith.mulf %30, %30 : vector<16x2xf32>
    %32 = arith.addf %15, %31 : vector<16x2xf32>
    %33 = arith.addf %11, %27 : vector<9x16x2xf32>
    %c2 = arith.constant 2 : index
    %c0_13 = arith.constant 0 : index
    %c0_14 = arith.constant 0 : index
    %c0_15 = arith.constant 0 : index
    %34 = vector.load %arg1[%c2, %c0_13, %c0_14, %c0_15] : memref<9x9x16x2xf32, #tpu.memory_space<vmem>>, vector<1x9x16x2xf32>
    %35 = vector.shape_cast %34 : vector<1x9x16x2xf32> to vector<9x16x2xf32>
    %cst_16 = arith.constant dense<0xFF800000> : vector<9x2xf32>
    %36 = vector.multi_reduction <maximumf>, %35, %cst_16 [1] : vector<9x16x2xf32> to vector<9x2xf32>
    %37 = vector.shape_cast %36 : vector<9x2xf32> to vector<9x1x2xf32>
    %38 = vector.broadcast %37 : vector<9x1x2xf32> to vector<9x16x2xf32>
    %39 = arith.subf %35, %38 : vector<9x16x2xf32>
    %40 = math.exp %39 : vector<9x16x2xf32>
    %cst_17 = arith.constant dense<0.000000e+00> : vector<9x2xf32>
    %41 = vector.multi_reduction <add>, %40, %cst_17 [1] : vector<9x16x2xf32> to vector<9x2xf32>
    %42 = vector.shape_cast %41 : vector<9x2xf32> to vector<9x1x2xf32>
    %43 = tpu.reciprocal %42 {approx = true} : vector<9x1x2xf32> -> vector<9x1x2xf32>
    %44 = vector.broadcast %43 : vector<9x1x2xf32> to vector<9x16x2xf32>
    %45 = arith.mulf %40, %44 : vector<9x16x2xf32>
    %cst_18 = arith.constant dense<0.000000e+00> : vector<16x2xf32>
    %46 = vector.multi_reduction <add>, %45, %cst_18 [0] : vector<9x16x2xf32> to vector<16x2xf32>
    %cst_19 = arith.constant 1.000000e+00 : f32
    %47 = vector.broadcast %cst_19 : f32 to vector<16x2xf32>
    %48 = arith.subf %46, %47 : vector<16x2xf32>
    %49 = arith.mulf %48, %48 : vector<16x2xf32>
    %50 = arith.addf %32, %49 : vector<16x2xf32>
    %51 = arith.addf %33, %45 : vector<9x16x2xf32>
    %c3 = arith.constant 3 : index
    %c0_20 = arith.constant 0 : index
    %c0_21 = arith.constant 0 : index
    %c0_22 = arith.constant 0 : index
    %52 = vector.load %arg1[%c3, %c0_20, %c0_21, %c0_22] : memref<9x9x16x2xf32, #tpu.memory_space<vmem>>, vector<1x9x16x2xf32>
    %53 = vector.shape_cast %52 : vector<1x9x16x2xf32> to vector<9x16x2xf32>
    %cst_23 = arith.constant dense<0xFF800000> : vector<9x2xf32>
    %54 = vector.multi_reduction <maximumf>, %53, %cst_23 [1] : vector<9x16x2xf32> to vector<9x2xf32>
    %55 = vector.shape_cast %54 : vector<9x2xf32> to vector<9x1x2xf32>
    %56 = vector.broadcast %55 : vector<9x1x2xf32> to vector<9x16x2xf32>
    %57 = arith.subf %53, %56 : vector<9x16x2xf32>
    %58 = math.exp %57 : vector<9x16x2xf32>
    %cst_24 = arith.constant dense<0.000000e+00> : vector<9x2xf32>
    %59 = vector.multi_reduction <add>, %58, %cst_24 [1] : vector<9x16x2xf32> to vector<9x2xf32>
    %60 = vector.shape_cast %59 : vector<9x2xf32> to vector<9x1x2xf32>
    %61 = tpu.reciprocal %60 {approx = true} : vector<9x1x2xf32> -> vector<9x1x2xf32>
    %62 = vector.broadcast %61 : vector<9x1x2xf32> to vector<9x16x2xf32>
    %63 = arith.mulf %58, %62 : vector<9x16x2xf32>
    %cst_25 = arith.constant dense<0.000000e+00> : vector<16x2xf32>
    %64 = vector.multi_reduction <add>, %63, %cst_25 [0] : vector<9x16x2xf32> to vector<16x2xf32>
    %cst_26 = arith.constant 1.000000e+00 : f32
    %65 = vector.broadcast %cst_26 : f32 to vector<16x2xf32>
    %66 = arith.subf %64, %65 : vector<16x2xf32>
    %67 = arith.mulf %66, %66 : vector<16x2xf32>
    %68 = arith.addf %50, %67 : vector<16x2xf32>
    %c4 = arith.constant 4 : index
    %c0_27 = arith.constant 0 : index
    %c0_28 = arith.constant 0 : index
    %c0_29 = arith.constant 0 : index
    %69 = vector.load %arg1[%c4, %c0_27, %c0_28, %c0_29] : memref<9x9x16x2xf32, #tpu.memory_space<vmem>>, vector<1x9x16x2xf32>
    %70 = vector.shape_cast %69 : vector<1x9x16x2xf32> to vector<9x16x2xf32>
    %cst_30 = arith.constant dense<0xFF800000> : vector<9x2xf32>
    %71 = vector.multi_reduction <maximumf>, %70, %cst_30 [1] : vector<9x16x2xf32> to vector<9x2xf32>
    %72 = vector.shape_cast %71 : vector<9x2xf32> to vector<9x1x2xf32>
    %73 = vector.broadcast %72 : vector<9x1x2xf32> to vector<9x16x2xf32>
    %74 = arith.subf %70, %73 : vector<9x16x2xf32>
    %75 = math.exp %74 : vector<9x16x2xf32>
    %cst_31 = arith.constant dense<0.000000e+00> : vector<9x2xf32>
    %76 = vector.multi_reduction <add>, %75, %cst_31 [1] : vector<9x16x2xf32> to vector<9x2xf32>
    %77 = vector.shape_cast %76 : vector<9x2xf32> to vector<9x1x2xf32>
    %78 = tpu.reciprocal %77 {approx = true} : vector<9x1x2xf32> -> vector<9x1x2xf32>
    %79 = vector.broadcast %78 : vector<9x1x2xf32> to vector<9x16x2xf32>
    %80 = arith.mulf %75, %79 : vector<9x16x2xf32>
    %cst_32 = arith.constant dense<0.000000e+00> : vector<16x2xf32>
    %81 = vector.multi_reduction <add>, %80, %cst_32 [0] : vector<9x16x2xf32> to vector<16x2xf32>
    %cst_33 = arith.constant 1.000000e+00 : f32
    %82 = vector.broadcast %cst_33 : f32 to vector<16x2xf32>
    %83 = arith.subf %81, %82 : vector<16x2xf32>
    %84 = arith.mulf %83, %83 : vector<16x2xf32>
    %85 = arith.addf %68, %84 : vector<16x2xf32>
    %86 = arith.addf %63, %80 : vector<9x16x2xf32>
    %c5 = arith.constant 5 : index
    %c0_34 = arith.constant 0 : index
    %c0_35 = arith.constant 0 : index
    %c0_36 = arith.constant 0 : index
    %87 = vector.load %arg1[%c5, %c0_34, %c0_35, %c0_36] : memref<9x9x16x2xf32, #tpu.memory_space<vmem>>, vector<1x9x16x2xf32>
    %88 = vector.shape_cast %87 : vector<1x9x16x2xf32> to vector<9x16x2xf32>
    %cst_37 = arith.constant dense<0xFF800000> : vector<9x2xf32>
    %89 = vector.multi_reduction <maximumf>, %88, %cst_37 [1] : vector<9x16x2xf32> to vector<9x2xf32>
    %90 = vector.shape_cast %89 : vector<9x2xf32> to vector<9x1x2xf32>
    %91 = vector.broadcast %90 : vector<9x1x2xf32> to vector<9x16x2xf32>
    %92 = arith.subf %88, %91 : vector<9x16x2xf32>
    %93 = math.exp %92 : vector<9x16x2xf32>
    %cst_38 = arith.constant dense<0.000000e+00> : vector<9x2xf32>
    %94 = vector.multi_reduction <add>, %93, %cst_38 [1] : vector<9x16x2xf32> to vector<9x2xf32>
    %95 = vector.shape_cast %94 : vector<9x2xf32> to vector<9x1x2xf32>
    %96 = tpu.reciprocal %95 {approx = true} : vector<9x1x2xf32> -> vector<9x1x2xf32>
    %97 = vector.broadcast %96 : vector<9x1x2xf32> to vector<9x16x2xf32>
    %98 = arith.mulf %93, %97 : vector<9x16x2xf32>
    %cst_39 = arith.constant dense<0.000000e+00> : vector<16x2xf32>
    %99 = vector.multi_reduction <add>, %98, %cst_39 [0] : vector<9x16x2xf32> to vector<16x2xf32>
    %cst_40 = arith.constant 1.000000e+00 : f32
    %100 = vector.broadcast %cst_40 : f32 to vector<16x2xf32>
    %101 = arith.subf %99, %100 : vector<16x2xf32>
    %102 = arith.mulf %101, %101 : vector<16x2xf32>
    %103 = arith.addf %85, %102 : vector<16x2xf32>
    %104 = arith.addf %86, %98 : vector<9x16x2xf32>
    %c6 = arith.constant 6 : index
    %c0_41 = arith.constant 0 : index
    %c0_42 = arith.constant 0 : index
    %c0_43 = arith.constant 0 : index
    %105 = vector.load %arg1[%c6, %c0_41, %c0_42, %c0_43] : memref<9x9x16x2xf32, #tpu.memory_space<vmem>>, vector<1x9x16x2xf32>
    %106 = vector.shape_cast %105 : vector<1x9x16x2xf32> to vector<9x16x2xf32>
    %cst_44 = arith.constant dense<0xFF800000> : vector<9x2xf32>
    %107 = vector.multi_reduction <maximumf>, %106, %cst_44 [1] : vector<9x16x2xf32> to vector<9x2xf32>
    %108 = vector.shape_cast %107 : vector<9x2xf32> to vector<9x1x2xf32>
    %109 = vector.broadcast %108 : vector<9x1x2xf32> to vector<9x16x2xf32>
    %110 = arith.subf %106, %109 : vector<9x16x2xf32>
    %111 = math.exp %110 : vector<9x16x2xf32>
    %cst_45 = arith.constant dense<0.000000e+00> : vector<9x2xf32>
    %112 = vector.multi_reduction <add>, %111, %cst_45 [1] : vector<9x16x2xf32> to vector<9x2xf32>
    %113 = vector.shape_cast %112 : vector<9x2xf32> to vector<9x1x2xf32>
    %114 = tpu.reciprocal %113 {approx = true} : vector<9x1x2xf32> -> vector<9x1x2xf32>
    %115 = vector.broadcast %114 : vector<9x1x2xf32> to vector<9x16x2xf32>
    %116 = arith.mulf %111, %115 : vector<9x16x2xf32>
    %cst_46 = arith.constant dense<0.000000e+00> : vector<16x2xf32>
    %117 = vector.multi_reduction <add>, %116, %cst_46 [0] : vector<9x16x2xf32> to vector<16x2xf32>
    %cst_47 = arith.constant 1.000000e+00 : f32
    %118 = vector.broadcast %cst_47 : f32 to vector<16x2xf32>
    %119 = arith.subf %117, %118 : vector<16x2xf32>
    %120 = arith.mulf %119, %119 : vector<16x2xf32>
    %121 = arith.addf %103, %120 : vector<16x2xf32>
    %c7 = arith.constant 7 : index
    %c0_48 = arith.constant 0 : index
    %c0_49 = arith.constant 0 : index
    %c0_50 = arith.constant 0 : index
    %122 = vector.load %arg1[%c7, %c0_48, %c0_49, %c0_50] : memref<9x9x16x2xf32, #tpu.memory_space<vmem>>, vector<1x9x16x2xf32>
    %123 = vector.shape_cast %122 : vector<1x9x16x2xf32> to vector<9x16x2xf32>
    %cst_51 = arith.constant dense<0xFF800000> : vector<9x2xf32>
    %124 = vector.multi_reduction <maximumf>, %123, %cst_51 [1] : vector<9x16x2xf32> to vector<9x2xf32>
    %125 = vector.shape_cast %124 : vector<9x2xf32> to vector<9x1x2xf32>
    %126 = vector.broadcast %125 : vector<9x1x2xf32> to vector<9x16x2xf32>
    %127 = arith.subf %123, %126 : vector<9x16x2xf32>
    %128 = math.exp %127 : vector<9x16x2xf32>
    %cst_52 = arith.constant dense<0.000000e+00> : vector<9x2xf32>
    %129 = vector.multi_reduction <add>, %128, %cst_52 [1] : vector<9x16x2xf32> to vector<9x2xf32>
    %130 = vector.shape_cast %129 : vector<9x2xf32> to vector<9x1x2xf32>
    %131 = tpu.reciprocal %130 {approx = true} : vector<9x1x2xf32> -> vector<9x1x2xf32>
    %132 = vector.broadcast %131 : vector<9x1x2xf32> to vector<9x16x2xf32>
    %133 = arith.mulf %128, %132 : vector<9x16x2xf32>
    %cst_53 = arith.constant dense<0.000000e+00> : vector<16x2xf32>
    %134 = vector.multi_reduction <add>, %133, %cst_53 [0] : vector<9x16x2xf32> to vector<16x2xf32>
    %cst_54 = arith.constant 1.000000e+00 : f32
    %135 = vector.broadcast %cst_54 : f32 to vector<16x2xf32>
    %136 = arith.subf %134, %135 : vector<16x2xf32>
    %137 = arith.mulf %136, %136 : vector<16x2xf32>
    %138 = arith.addf %121, %137 : vector<16x2xf32>
    %139 = arith.addf %116, %133 : vector<9x16x2xf32>
    %c8 = arith.constant 8 : index
    %c0_55 = arith.constant 0 : index
    %c0_56 = arith.constant 0 : index
    %c0_57 = arith.constant 0 : index
    %140 = vector.load %arg1[%c8, %c0_55, %c0_56, %c0_57] : memref<9x9x16x2xf32, #tpu.memory_space<vmem>>, vector<1x9x16x2xf32>
    %141 = vector.shape_cast %140 : vector<1x9x16x2xf32> to vector<9x16x2xf32>
    %cst_58 = arith.constant dense<0xFF800000> : vector<9x2xf32>
    %142 = vector.multi_reduction <maximumf>, %141, %cst_58 [1] : vector<9x16x2xf32> to vector<9x2xf32>
    %143 = vector.shape_cast %142 : vector<9x2xf32> to vector<9x1x2xf32>
    %144 = vector.broadcast %143 : vector<9x1x2xf32> to vector<9x16x2xf32>
    %145 = arith.subf %141, %144 : vector<9x16x2xf32>
    %146 = math.exp %145 : vector<9x16x2xf32>
    %cst_59 = arith.constant dense<0.000000e+00> : vector<9x2xf32>
    %147 = vector.multi_reduction <add>, %146, %cst_59 [1] : vector<9x16x2xf32> to vector<9x2xf32>
    %148 = vector.shape_cast %147 : vector<9x2xf32> to vector<9x1x2xf32>
    %149 = tpu.reciprocal %148 {approx = true} : vector<9x1x2xf32> -> vector<9x1x2xf32>
    %150 = vector.broadcast %149 : vector<9x1x2xf32> to vector<9x16x2xf32>
    %151 = arith.mulf %146, %150 : vector<9x16x2xf32>
    %cst_60 = arith.constant dense<0.000000e+00> : vector<16x2xf32>
    %152 = vector.multi_reduction <add>, %151, %cst_60 [0] : vector<9x16x2xf32> to vector<16x2xf32>
    %cst_61 = arith.constant 1.000000e+00 : f32
    %153 = vector.broadcast %cst_61 : f32 to vector<16x2xf32>
    %154 = arith.subf %152, %153 : vector<16x2xf32>
    %155 = arith.mulf %154, %154 : vector<16x2xf32>
    %156 = arith.addf %138, %155 : vector<16x2xf32>
    %157 = arith.addf %139, %151 : vector<9x16x2xf32>
    %158 = arith.addf %51, %104 : vector<9x16x2xf32>
    %159 = arith.addf %158, %157 : vector<9x16x2xf32>
    %cst_62 = arith.constant 1.000000e+00 : f32
    %160 = vector.broadcast %cst_62 : f32 to vector<9x16x2xf32>
    %161 = arith.subf %159, %160 : vector<9x16x2xf32>
    %162 = arith.mulf %161, %161 : vector<9x16x2xf32>
    %cst_63 = arith.constant dense<0.000000e+00> : vector<16x2xf32>
    %163 = vector.multi_reduction <add>, %162, %cst_63 [0] : vector<9x16x2xf32> to vector<16x2xf32>
    %164 = vector.extract_strided_slice %51 {offsets = [0, 0, 0], sizes = [1, 16, 2], strides = [1, 1, 1]} : vector<9x16x2xf32> to vector<1x16x2xf32>
    %165 = vector.shape_cast %164 : vector<1x16x2xf32> to vector<16x2xf32>
    %166 = vector.extract_strided_slice %51 {offsets = [1, 0, 0], sizes = [1, 16, 2], strides = [1, 1, 1]} : vector<9x16x2xf32> to vector<1x16x2xf32>
    %167 = vector.shape_cast %166 : vector<1x16x2xf32> to vector<16x2xf32>
    %168 = arith.addf %165, %167 : vector<16x2xf32>
    %169 = vector.extract_strided_slice %51 {offsets = [2, 0, 0], sizes = [1, 16, 2], strides = [1, 1, 1]} : vector<9x16x2xf32> to vector<1x16x2xf32>
    %170 = vector.shape_cast %169 : vector<1x16x2xf32> to vector<16x2xf32>
    %171 = arith.addf %168, %170 : vector<16x2xf32>
    %cst_64 = arith.constant 1.000000e+00 : f32
    %172 = vector.broadcast %cst_64 : f32 to vector<16x2xf32>
    %173 = arith.subf %171, %172 : vector<16x2xf32>
    %174 = arith.mulf %173, %173 : vector<16x2xf32>
    %175 = vector.extract_strided_slice %51 {offsets = [3, 0, 0], sizes = [1, 16, 2], strides = [1, 1, 1]} : vector<9x16x2xf32> to vector<1x16x2xf32>
    %176 = vector.shape_cast %175 : vector<1x16x2xf32> to vector<16x2xf32>
    %177 = vector.extract_strided_slice %51 {offsets = [4, 0, 0], sizes = [1, 16, 2], strides = [1, 1, 1]} : vector<9x16x2xf32> to vector<1x16x2xf32>
    %178 = vector.shape_cast %177 : vector<1x16x2xf32> to vector<16x2xf32>
    %179 = arith.addf %176, %178 : vector<16x2xf32>
    %180 = vector.extract_strided_slice %51 {offsets = [5, 0, 0], sizes = [1, 16, 2], strides = [1, 1, 1]} : vector<9x16x2xf32> to vector<1x16x2xf32>
    %181 = vector.shape_cast %180 : vector<1x16x2xf32> to vector<16x2xf32>
    %182 = arith.addf %179, %181 : vector<16x2xf32>
    %cst_65 = arith.constant 1.000000e+00 : f32
    %183 = vector.broadcast %cst_65 : f32 to vector<16x2xf32>
    %184 = arith.subf %182, %183 : vector<16x2xf32>
    %185 = arith.mulf %184, %184 : vector<16x2xf32>
    %186 = arith.addf %174, %185 : vector<16x2xf32>
    %187 = vector.extract_strided_slice %51 {offsets = [6, 0, 0], sizes = [1, 16, 2], strides = [1, 1, 1]} : vector<9x16x2xf32> to vector<1x16x2xf32>
    %188 = vector.shape_cast %187 : vector<1x16x2xf32> to vector<16x2xf32>
    %189 = vector.extract_strided_slice %51 {offsets = [7, 0, 0], sizes = [1, 16, 2], strides = [1, 1, 1]} : vector<9x16x2xf32> to vector<1x16x2xf32>
    %190 = vector.shape_cast %189 : vector<1x16x2xf32> to vector<16x2xf32>
    %191 = arith.addf %188, %190 : vector<16x2xf32>
    %192 = vector.extract_strided_slice %51 {offsets = [8, 0, 0], sizes = [1, 16, 2], strides = [1, 1, 1]} : vector<9x16x2xf32> to vector<1x16x2xf32>
    %193 = vector.shape_cast %192 : vector<1x16x2xf32> to vector<16x2xf32>
    %194 = arith.addf %191, %193 : vector<16x2xf32>
    %cst_66 = arith.constant 1.000000e+00 : f32
    %195 = vector.broadcast %cst_66 : f32 to vector<16x2xf32>
    %196 = arith.subf %194, %195 : vector<16x2xf32>
    %197 = arith.mulf %196, %196 : vector<16x2xf32>
    %198 = arith.addf %186, %197 : vector<16x2xf32>
    %199 = vector.extract_strided_slice %104 {offsets = [0, 0, 0], sizes = [1, 16, 2], strides = [1, 1, 1]} : vector<9x16x2xf32> to vector<1x16x2xf32>
    %200 = vector.shape_cast %199 : vector<1x16x2xf32> to vector<16x2xf32>
    %201 = vector.extract_strided_slice %104 {offsets = [1, 0, 0], sizes = [1, 16, 2], strides = [1, 1, 1]} : vector<9x16x2xf32> to vector<1x16x2xf32>
    %202 = vector.shape_cast %201 : vector<1x16x2xf32> to vector<16x2xf32>
    %203 = arith.addf %200, %202 : vector<16x2xf32>
    %204 = vector.extract_strided_slice %104 {offsets = [2, 0, 0], sizes = [1, 16, 2], strides = [1, 1, 1]} : vector<9x16x2xf32> to vector<1x16x2xf32>
    %205 = vector.shape_cast %204 : vector<1x16x2xf32> to vector<16x2xf32>
    %206 = arith.addf %203, %205 : vector<16x2xf32>
    %cst_67 = arith.constant 1.000000e+00 : f32
    %207 = vector.broadcast %cst_67 : f32 to vector<16x2xf32>
    %208 = arith.subf %206, %207 : vector<16x2xf32>
    %209 = arith.mulf %208, %208 : vector<16x2xf32>
    %210 = arith.addf %198, %209 : vector<16x2xf32>
    %211 = vector.extract_strided_slice %104 {offsets = [3, 0, 0], sizes = [1, 16, 2], strides = [1, 1, 1]} : vector<9x16x2xf32> to vector<1x16x2xf32>
    %212 = vector.shape_cast %211 : vector<1x16x2xf32> to vector<16x2xf32>
    %213 = vector.extract_strided_slice %104 {offsets = [4, 0, 0], sizes = [1, 16, 2], strides = [1, 1, 1]} : vector<9x16x2xf32> to vector<1x16x2xf32>
    %214 = vector.shape_cast %213 : vector<1x16x2xf32> to vector<16x2xf32>
    %215 = arith.addf %212, %214 : vector<16x2xf32>
    %216 = vector.extract_strided_slice %104 {offsets = [5, 0, 0], sizes = [1, 16, 2], strides = [1, 1, 1]} : vector<9x16x2xf32> to vector<1x16x2xf32>
    %217 = vector.shape_cast %216 : vector<1x16x2xf32> to vector<16x2xf32>
    %218 = arith.addf %215, %217 : vector<16x2xf32>
    %cst_68 = arith.constant 1.000000e+00 : f32
    %219 = vector.broadcast %cst_68 : f32 to vector<16x2xf32>
    %220 = arith.subf %218, %219 : vector<16x2xf32>
    %221 = arith.mulf %220, %220 : vector<16x2xf32>
    %222 = arith.addf %210, %221 : vector<16x2xf32>
    %223 = vector.extract_strided_slice %104 {offsets = [6, 0, 0], sizes = [1, 16, 2], strides = [1, 1, 1]} : vector<9x16x2xf32> to vector<1x16x2xf32>
    %224 = vector.shape_cast %223 : vector<1x16x2xf32> to vector<16x2xf32>
    %225 = vector.extract_strided_slice %104 {offsets = [7, 0, 0], sizes = [1, 16, 2], strides = [1, 1, 1]} : vector<9x16x2xf32> to vector<1x16x2xf32>
    %226 = vector.shape_cast %225 : vector<1x16x2xf32> to vector<16x2xf32>
    %227 = arith.addf %224, %226 : vector<16x2xf32>
    %228 = vector.extract_strided_slice %104 {offsets = [8, 0, 0], sizes = [1, 16, 2], strides = [1, 1, 1]} : vector<9x16x2xf32> to vector<1x16x2xf32>
    %229 = vector.shape_cast %228 : vector<1x16x2xf32> to vector<16x2xf32>
    %230 = arith.addf %227, %229 : vector<16x2xf32>
    %cst_69 = arith.constant 1.000000e+00 : f32
    %231 = vector.broadcast %cst_69 : f32 to vector<16x2xf32>
    %232 = arith.subf %230, %231 : vector<16x2xf32>
    %233 = arith.mulf %232, %232 : vector<16x2xf32>
    %234 = arith.addf %222, %233 : vector<16x2xf32>
    %235 = vector.extract_strided_slice %157 {offsets = [0, 0, 0], sizes = [1, 16, 2], strides = [1, 1, 1]} : vector<9x16x2xf32> to vector<1x16x2xf32>
    %236 = vector.shape_cast %235 : vector<1x16x2xf32> to vector<16x2xf32>
    %237 = vector.extract_strided_slice %157 {offsets = [1, 0, 0], sizes = [1, 16, 2], strides = [1, 1, 1]} : vector<9x16x2xf32> to vector<1x16x2xf32>
    %238 = vector.shape_cast %237 : vector<1x16x2xf32> to vector<16x2xf32>
    %239 = arith.addf %236, %238 : vector<16x2xf32>
    %240 = vector.extract_strided_slice %157 {offsets = [2, 0, 0], sizes = [1, 16, 2], strides = [1, 1, 1]} : vector<9x16x2xf32> to vector<1x16x2xf32>
    %241 = vector.shape_cast %240 : vector<1x16x2xf32> to vector<16x2xf32>
    %242 = arith.addf %239, %241 : vector<16x2xf32>
    %cst_70 = arith.constant 1.000000e+00 : f32
    %243 = vector.broadcast %cst_70 : f32 to vector<16x2xf32>
    %244 = arith.subf %242, %243 : vector<16x2xf32>
    %245 = arith.mulf %244, %244 : vector<16x2xf32>
    %246 = arith.addf %234, %245 : vector<16x2xf32>
    %247 = vector.extract_strided_slice %157 {offsets = [3, 0, 0], sizes = [1, 16, 2], strides = [1, 1, 1]} : vector<9x16x2xf32> to vector<1x16x2xf32>
    %248 = vector.shape_cast %247 : vector<1x16x2xf32> to vector<16x2xf32>
    %249 = vector.extract_strided_slice %157 {offsets = [4, 0, 0], sizes = [1, 16, 2], strides = [1, 1, 1]} : vector<9x16x2xf32> to vector<1x16x2xf32>
    %250 = vector.shape_cast %249 : vector<1x16x2xf32> to vector<16x2xf32>
    %251 = arith.addf %248, %250 : vector<16x2xf32>
    %252 = vector.extract_strided_slice %157 {offsets = [5, 0, 0], sizes = [1, 16, 2], strides = [1, 1, 1]} : vector<9x16x2xf32> to vector<1x16x2xf32>
    %253 = vector.shape_cast %252 : vector<1x16x2xf32> to vector<16x2xf32>
    %254 = arith.addf %251, %253 : vector<16x2xf32>
    %cst_71 = arith.constant 1.000000e+00 : f32
    %255 = vector.broadcast %cst_71 : f32 to vector<16x2xf32>
    %256 = arith.subf %254, %255 : vector<16x2xf32>
    %257 = arith.mulf %256, %256 : vector<16x2xf32>
    %258 = arith.addf %246, %257 : vector<16x2xf32>
    %259 = vector.extract_strided_slice %157 {offsets = [6, 0, 0], sizes = [1, 16, 2], strides = [1, 1, 1]} : vector<9x16x2xf32> to vector<1x16x2xf32>
    %260 = vector.shape_cast %259 : vector<1x16x2xf32> to vector<16x2xf32>
    %261 = vector.extract_strided_slice %157 {offsets = [7, 0, 0], sizes = [1, 16, 2], strides = [1, 1, 1]} : vector<9x16x2xf32> to vector<1x16x2xf32>
    %262 = vector.shape_cast %261 : vector<1x16x2xf32> to vector<16x2xf32>
    %263 = arith.addf %260, %262 : vector<16x2xf32>
    %264 = vector.extract_strided_slice %157 {offsets = [8, 0, 0], sizes = [1, 16, 2], strides = [1, 1, 1]} : vector<9x16x2xf32> to vector<1x16x2xf32>
    %265 = vector.shape_cast %264 : vector<1x16x2xf32> to vector<16x2xf32>
    %266 = arith.addf %263, %265 : vector<16x2xf32>
    %cst_72 = arith.constant 1.000000e+00 : f32
    %267 = vector.broadcast %cst_72 : f32 to vector<16x2xf32>
    %268 = arith.subf %266, %267 : vector<16x2xf32>
    %269 = arith.mulf %268, %268 : vector<16x2xf32>
    %270 = arith.addf %258, %269 : vector<16x2xf32>
    %271 = tpu.iota {dimensions = array<i32: 0>} : vector<16x2xi32>
    %c1_i32 = arith.constant 1 : i32
    %272 = vector.broadcast %c1_i32 : i32 to vector<16x2xi32>
    %273 = arith.cmpi sge, %271, %272 : vector<16x2xi32>
    %c9_i32 = arith.constant 9 : i32
    %274 = vector.broadcast %c9_i32 : i32 to vector<16x2xi32>
    %275 = arith.cmpi sle, %271, %274 : vector<16x2xi32>
    %276 = arith.andi %273, %275 : vector<16x2xi1>
    %277 = arith.extui %276 : vector<16x2xi1> to vector<16x2xi32>
    %278 = arith.sitofp %277 : vector<16x2xi32> to vector<16x2xf32>
    %279 = arith.mulf %156, %278 : vector<16x2xf32>
    %cst_73 = arith.constant dense<0.000000e+00> : vector<2xf32>
    %280 = vector.multi_reduction <add>, %279, %cst_73 [0] : vector<16x2xf32> to vector<2xf32>
    %281 = vector.shape_cast %280 : vector<2xf32> to vector<1x2xf32>
    %282 = arith.mulf %163, %278 : vector<16x2xf32>
    %cst_74 = arith.constant dense<0.000000e+00> : vector<2xf32>
    %283 = vector.multi_reduction <add>, %282, %cst_74 [0] : vector<16x2xf32> to vector<2xf32>
    %284 = vector.shape_cast %283 : vector<2xf32> to vector<1x2xf32>
    %285 = arith.mulf %270, %278 : vector<16x2xf32>
    %cst_75 = arith.constant dense<0.000000e+00> : vector<2xf32>
    %286 = vector.multi_reduction <add>, %285, %cst_75 [0] : vector<16x2xf32> to vector<2xf32>
    %287 = vector.shape_cast %286 : vector<2xf32> to vector<1x2xf32>
    %288 = tpu.concatenate %281, %284, %287 in 0 : vector<1x2xf32>, vector<1x2xf32>, vector<1x2xf32> -> vector<3x2xf32>
    %c0_76 = arith.constant 0 : index
    %c0_77 = arith.constant 0 : index
    %c0_78 = arith.constant 0 : index
    %289 = vector.load %arg2[%c0_76, %c0_77, %c0_78] : memref<1x3x2xf32, #tpu.memory_space<vmem>>, vector<1x3x2xf32>
    %290 = vector.shape_cast %289 : vector<1x3x2xf32> to vector<3x2xf32>
    %291 = vector.shape_cast %288 : vector<3x2xf32> to vector<1x3x2xf32>
    tpu.vector_store %arg2[%c0_76, %c0_77, %c0_78], %291 {strides = array<i32>} : memref<1x3x2xf32, #tpu.memory_space<vmem>>, vector<1x3x2xf32>,
    return
  }
  func.func @transform_0(%arg0: i32) -> (i32, i32, i32, i32) {
    %c0_i32 = arith.constant 0 : i32
    %c0_i32_0 = arith.constant 0 : i32
    %c0_i32_1 = arith.constant 0 : i32
    %c0_i32_2 = arith.constant 0 : i32
    return %c0_i32, %c0_i32_0, %c0_i32_1, %arg0 : i32, i32, i32, i32
  }
  func.func @transform_1(%arg0: i32) -> (i32, i32, i32) {
    %c0_i32 = arith.constant 0 : i32
    %c0_i32_0 = arith.constant 0 : i32
    %c0_i32_1 = arith.constant 0 : i32
    return %arg0, %c0_i32, %c0_i32_0 : i32, i32, i32
  }
}

</mosaic_0001>

<bundles_post_ra>
// kernel: tpu_custom_call.1
= control target key start
LH: loop header
LB: loop body
LE: loop exit
PB: predicated region body
PF: predicated region fallthrough
CT: control target
= control target key end

     0   :  { %vm26_vm0 = vcmask 15360   ;;  %vm3072_vm3 = vcmask 1040384   ;;  %vm3074_vm4 = vcmask 1041408   ;;  %vm3076_vm5 = vcmask 10240   ;;  %s7142_s0 = inlined_call_operand.vmem [shape: f32[9,9,16,2], index: 0, kind: input, shape index: {}]   ;;  %s7143_s1 = inlined_call_operand.vmem [shape: f32[1,3,2], index: 1, kind: output, shape index: {}]  }
   0x1   :  { %v3783_v0 = vld [vmem:[%s7142_s0] sm:$0xff]  ;;  %v3788_v1 = vld [vmem:[%s7142_s0 + $0x8] sm:$0xff]  ;;  %v3793_v2 = vld [vmem:[%s7142_s0 + $0x10] sm:$0xff] }
   0x2   :  { %v3798_v3 = vld [vmem:[%s7142_s0 + $0x18] sm:$0xff]  ;;  %v3803_v4 = vld [vmem:[%s7142_s0 + $0x20] sm:$0xff]  ;;  %v3808_v5 = vld [vmem:[%s7142_s0 + $0x28] sm:$0xff]  ;;  %v27_v6 = vsel %vm26_vm0, %v3783_v0, -inf  ;;  %v28_v7 = vsel %vm26_vm0, %v3788_v1, -inf  ;;  %v36_v8 = vsel %vm26_vm0, %v3793_v2, -inf }
   0x3   :  { %v3819_v9 = vld [vmem:[%s7142_s0 + $0x30] sm:$0xff]  ;;  %v3824_v10 = vld [vmem:[%s7142_s0 + $0x38] sm:$0xff]  ;;  %v3829_v11 = vld [vmem:[%s7142_s0 + $0x40] sm:$0xff]  ;;  %v29_v12 = vmax.f32 %v27_v6, %v28_v7  ;;  %v37_v13 = vsel %vm26_vm0, %v3798_v3, -inf  ;;  %v45_v14 = vsel %vm26_vm0, %v3803_v4, -inf  ;;  %v46_v15 = vsel %vm26_vm0, %v3808_v5, -inf }
   0x4   :  { %v3840_v16 = vld [vmem:[%s7142_s0 + $0x48] sm:$0xff]  ;;  %v3845_v17 = vld [vmem:[%s7142_s0 + $0x50] sm:$0xff]  ;;  %v3850_v18 = vld [vmem:[%s7142_s0 + $0x58] sm:$0xff]  ;;  %v38_v19 = vmax.f32 %v36_v8, %v37_v13  ;;  %v47_v20 = vmax.f32 %v45_v14, %v46_v15  ;;  %v54_v21 = vsel %vm26_vm0, %v3819_v9, -inf  ;;  %v55_v22 = vsel %vm26_vm0, %v3824_v10, -inf }
   0x5   :  { %v3859_v23 = vld [vmem:[%s7142_s0 + $0x60] sm:$0xff]  ;;  %v30_v24 = vrot.slane %v29_v12, 4  ;;  %v56_v25 = vmax.f32 %v54_v21, %v55_v22  ;;  %v63_v26 = vsel %vm26_vm0, %v3829_v11, -inf  ;;  %v64_v27 = vsel %vm26_vm0, %v3840_v16, -inf  ;;  %v3868_v28 = vld [vmem:[%s7142_s0 + $0x68] sm:$0xff]  ;;  %v3873_v29 = vld [vmem:[%s7142_s0 + $0x70] sm:$0xff] }
   0x6   :  { %v39_v30 = vrot.slane %v38_v19, 4  ;;  %v48_v31 = vrot.slane %v47_v20, 4  ;;  %v65_v32 = vmax.f32 %v63_v26, %v64_v27  ;;  %v72_v33 = vsel %vm26_vm0, %v3845_v17, -inf  ;;  %v3884_v38 = vld [vmem:[%s7142_s0 + $0x78] sm:$0xff]  ;;  %v3895_v63 = vld [vmem:[%s7142_s0 + $0x80] sm:$0xff]  ;;  %v3900_v13 = vld [vmem:[%s7142_s0 + $0x88] sm:$0xff] }
   0x7   :  { %v31_v34 = vmax.f32 %v29_v12, %v30_v24  ;;  %v57_v35 = vrot.slane %v56_v25, 4  ;;  %v73_v36 = vsel %vm26_vm0, %v3850_v18, -inf  ;;  %v81_v37 = vsel %vm26_vm0, %v3859_v23, -inf }
   0x8   :  { %v40_v39 = vmax.f32 %v38_v19, %v39_v30  ;;  %v49_v40 = vmax.f32 %v47_v20, %v48_v31  ;;  %v66_v41 = vrot.slane %v65_v32, 4  ;;  %v74_v42 = vmax.f32 %v72_v33, %v73_v36 }
   0x9   :  { %v32_v43 = vrot.slane %v31_v34, 2  ;;  %v58_v44 = vmax.f32 %v56_v25, %v57_v35  ;;  %v82_v45 = vsel %vm26_vm0, %v3868_v28, -inf  ;;  %v90_v46 = vsel %vm26_vm0, %v3873_v29, -inf }
   0xa   :  { %v41_v47 = vrot.slane %v40_v39, 2  ;;  %v50_v48 = vrot.slane %v49_v40, 2  ;;  %v67_v49 = vmax.f32 %v65_v32, %v66_v41  ;;  %v75_v50 = vrot.slane %v74_v42, 4 }
   0xb   :  { %v33_v51 = vmax.f32 %v31_v34, %v32_v43  ;;  %v59_v52 = vrot.slane %v58_v44, 2  ;;  %v83_v53 = vmax.f32 %v81_v37, %v82_v45  ;;  %v91_v54 = vsel %vm26_vm0, %v3884_v38, -inf }
   0xc   :  { %v42_v55 = vmax.f32 %v40_v39, %v41_v47  ;;  %v51_v56 = vmax.f32 %v49_v40, %v50_v48  ;;  %v68_v57 = vrot.slane %v67_v49, 2  ;;  %v76_v58 = vmax.f32 %v74_v42, %v75_v50 }
   0xd   :  { %v34_v59 = vrot.slane %v33_v51, 1  ;;  %v60_v60 = vmax.f32 %v58_v44, %v59_v52  ;;  %v84_v61 = vrot.slane %v83_v53, 4  ;;  %v92_v62 = vmax.f32 %v90_v46, %v91_v54 }
   0xe   :  { %v43_v6 = vrot.slane %v42_v55, 1  ;;  %v52_v7 = vrot.slane %v51_v56, 1  ;;  %v69_v8 = vmax.f32 %v67_v49, %v68_v57  ;;  %v77_v12 = vrot.slane %v76_v58, 2 }
   0xf   :  { %v61_v14 = vrot.slane %v60_v60, 1  ;;  %v85_v15 = vmax.f32 %v83_v53, %v84_v61  ;;  %v93_v19 = vrot.slane %v92_v62, 4  ;;  %v35_v20 = vmax.f32 %v33_v51, %v34_v59 }
  0x10   :  { %v44_v21 = vmax.f32 %v42_v55, %v43_v6  ;;  %v70_v22 = vrot.slane %v69_v8, 1  ;;  %v78_v24 = vmax.f32 %v76_v58, %v77_v12  ;;  %v99_v27 = vsel %vm26_vm0, %v3895_v63, -inf }
  0x11   :  { %v86_v25 = vrot.slane %v85_v15, 2  ;;  %v94_v26 = vmax.f32 %v92_v62, %v93_v19  ;;  %v53_v30 = vmax.f32 %v51_v56, %v52_v7  ;;  %v62_v31 = vmax.f32 %v60_v60, %v61_v14  ;;  %v3940_v14 = vld [vmem:[%s7142_s0 + $0xa8] sm:$0xff]  ;;  %v3950_v19 = vld [vmem:[%s7142_s0 + $0xb8] sm:$0xff] }
  0x12   :  { %v79_v32 = vrot.slane %v78_v24, 1  ;;  %v100_v33 = vsel %vm26_vm0, %v3900_v13, -inf  ;;  %v71_v37 = vmax.f32 %v69_v8, %v70_v22  ;;  %v108_v39 = vsub.f32 %v3783_v0, %v35_v20 }
  0x13   :  { %v87_v34 = vmax.f32 %v85_v15, %v86_v25  ;;  %v95_v35 = vrot.slane %v94_v26, 2  ;;  %v101_v36 = vmax.f32 %v99_v27, %v100_v33  ;;  %v109_v40 = vsub.f32 %v3788_v1, %v35_v20  ;;  %v3945_v15 = vld [vmem:[%s7142_s0 + $0xb0] sm:$0xff] }
  0x14   :  { %v110_v41 = vsub.f32 %v3793_v2, %v44_v21  ;;  %v80_v42 = vmax.f32 %v78_v24, %v79_v32  ;;  %v111_v46 = vsub.f32 %v3798_v3, %v44_v21  ;;  %v112_v47 = vsub.f32 %v3803_v4, %v53_v30 }
  0x15   :  { %v88_v43 = vrot.slane %v87_v34, 1  ;;  %v96_v44 = vmax.f32 %v94_v26, %v95_v35  ;;  %v102_v45 = vrot.slane %v101_v36, 4  ;;  %v113_v48 = vsub.f32 %v3808_v5, %v53_v30 }
  0x16   :  { %v114_v49 = vsub.f32 %v3819_v9, %v62_v31  ;;  %v115_v0 = vsub.f32 %v3824_v10, %v62_v31  ;;  %v116_v1 = vsub.f32 %v3829_v11, %v71_v37  ;;  %v126_v2 = vmul.f32 1.442695, %v108_v39 }
  0x17   :  { %v89_v50 = vmax.f32 %v87_v34, %v88_v43  ;;  %v97_v51 = vrot.slane %v96_v44, 1  ;;  %v103_v52 = vmax.f32 %v101_v36, %v102_v45  ;;  %v128_v53 = vmul.f32 1.442695, %v109_v40 }
  0x18   :  { %v130_v54 = vmul.f32 1.442695, %v110_v41  ;;  %v117_v3 = vsub.f32 %v3840_v16, %v71_v37  ;;  %v118_v4 = vsub.f32 %v3845_v17, %v80_v42  ;;  %v119_v5 = vsub.f32 %v3850_v18, %v80_v42  ;;  %v3925_v18 = vld [vmem:[%s7142_s0 + $0x90] sm:$0xff]  ;;  %v3975_v41 = vld [vmem:[%s7142_s0 + $0xc0] sm:$0xff] }
  0x19   :  { %v98_v55 = vmax.f32 %v96_v44, %v97_v51  ;;  %v104_v56 = vrot.slane %v103_v52, 2  ;;  %3283 = vpow2.f32 %v126_v2  ;;  %v132_v9 = vmul.f32 1.442695, %v111_v46 }
  0x1a   :  { %v134_v57 = vmul.f32 1.442695, %v112_v47  ;;  %v120_v59 = vsub.f32 %v3859_v23, %v89_v50  ;;  %3285 = vpow2.f32 %v128_v53  ;;  %v136_v10 = vmul.f32 1.442695, %v113_v48  ;;  %v3930_v23 = vld [vmem:[%s7142_s0 + $0x98] sm:$0xff] }
  0x1b   :  { %v105_v58 = vmax.f32 %v103_v52, %v104_v56  ;;  %v121_v11 = vsub.f32 %v3868_v28, %v89_v50  ;;  %v122_v60 = vsub.f32 %v3873_v29, %v98_v55  ;;  %3287 = vpow2.f32 %v130_v54  ;;  %v3935_v28 = vld [vmem:[%s7142_s0 + $0xa0] sm:$0xff]  ;;  %v4000_v56 = vld [vmem:[%s7142_s0 + $0xc8] sm:$0xff] }
  0x1c   :  { %v138_v61 = vmul.f32 1.442695, %v114_v49  ;;  %v123_v16 = vsub.f32 %v3884_v38, %v98_v55  ;;  %3289 = vpow2.f32 %v132_v9  ;;  %v140_v17 = vmul.f32 1.442695, %v115_v0 }
  0x1d   :  { %v106_v62 = vrot.slane %v105_v58, 1  ;;  %3291 = vpow2.f32 %v134_v57  ;;  %v142_v29 = vmul.f32 1.442695, %v116_v1  ;;  %v144_v38 = vmul.f32 1.442695, %v117_v3 }
  0x1e   :  { %v146_v6 = vmul.f32 1.442695, %v118_v4  ;;  %3293 = vpow2.f32 %v136_v10  ;;  %v148_v8 = vmul.f32 1.442695, %v119_v5  ;;  %v150_v12 = vmul.f32 1.442695, %v120_v59 }
  0x1f   :  { %v107_v7 = vmax.f32 %v105_v58, %v106_v62  ;;  %3295 = vpow2.f32 %v138_v61  ;;  %v327_v20 = vsel %vm26_vm0, %v3925_v18, -inf  ;;  %v328_v21 = vsel %vm26_vm0, %v3930_v23, -inf }
  0x20   :  { %v336_v22 = vsel %vm26_vm0, %v3935_v28, -inf  ;;  %3297 = vpow2.f32 %v140_v17  ;;  %v329_v26 = vmax.f32 %v327_v20, %v328_v21  ;;  %v152_v27 = vmul.f32 1.442695, %v121_v11 }
  0x21   :  { %v124_v24 = vsub.f32 %v3895_v63, %v107_v7  ;;  %v125_v25 = vsub.f32 %v3900_v13, %v107_v7  ;;  %3299 = vpow2.f32 %v142_v29  ;;  %v154_v30 = vmul.f32 1.442695, %v122_v60 }
  0x22   :  { %v337_v31 = vsel %vm26_vm0, %v3940_v14, -inf  ;;  %3301 = vpow2.f32 %v144_v38  ;;  %v330_v32 = vrot.slane %v329_v26, 4  ;;  %v345_v33 = vsel %vm26_vm0, %v3945_v15, -inf }
  0x23   :  { %v346_v34 = vsel %vm26_vm0, %v3950_v19, -inf  ;;  %v3966_v35 = vpop.eup %3283  ;;  %3303 = vpow2.f32 %v146_v6  ;;  %v156_v63 = vmul.f32 1.442695, %v123_v16  ;;  %v158_v13 = vmul.f32 1.442695, %v124_v24 }
  0x24   :  { %v338_v36 = vmax.f32 %v336_v22, %v337_v31  ;;  %v3968_v37 = vpop.eup %3285  ;;  %3305 = vpow2.f32 %v148_v8  ;;  %v160_v39 = vmul.f32 1.442695, %v125_v25  ;;  %v162_v40 = vsel %vm26_vm0, %v3966_v35, 0.0 }
  0x25   :  { %v331_v42 = vmax.f32 %v329_v26, %v330_v32  ;;  %v3977_v43 = vpop.eup %3287  ;;  %3307 = vpow2.f32 %v150_v12  ;;  %v163_v44 = vsel %vm26_vm0, %v3968_v37, 0.0  ;;  %v347_v46 = vmax.f32 %v345_v33, %v346_v34 }
  0x26   :  { %v339_v45 = vrot.slane %v338_v36, 4  ;;  %v3981_v47 = vpop.eup %3289  ;;  %3309 = vpow2.f32 %v152_v27  ;;  %v164_v48 = vadd.f32 %v163_v44, %v162_v40  ;;  %v171_v49 = vsel %vm26_vm0, %v3977_v43, 0.0 }
  0x27   :  { %v332_v50 = vrot.slane %v331_v42, 2  ;;  %v3985_v51 = vpop.eup %3291  ;;  %3311 = vpow2.f32 %v154_v30  ;;  %v172_v52 = vsel %vm26_vm0, %v3981_v47, 0.0  ;;  %v3991_v1 = vsel %vm26_vm0, %v3975_v41, -inf }
  0x28   :  { %v340_v0 = vmax.f32 %v338_v36, %v339_v45  ;;  %v3993_v2 = vpop.eup %3293  ;;  %3313 = vpow2.f32 %v156_v63  ;;  %v165_v53 = vrot.slane %v164_v48, 4  ;;  %v173_v54 = vadd.f32 %v172_v52, %v171_v49 }
  0x29   :  { %v180_v55 = vsel %vm26_vm0, %v3985_v51, 0.0  ;;  %v4002_v3 = vpop.eup %3295  ;;  %3315 = vpow2.f32 %v158_v13  ;;  %v181_v4 = vsel %vm26_vm0, %v3993_v2, 0.0  ;;  %v4006_v5 = vmax.f32 %v331_v42, %v332_v50 }
  0x2a   :  { %v348_v9 = vrot.slane %v347_v46, 4  ;;  %v4008_v57 = vpop.eup %3297  ;;  %3317 = vpow2.f32 %v160_v39  ;;  %v166_v58 = vadd.f32 %v165_v53, %v164_v48  ;;  %v174_v59 = vrot.slane %v173_v54, 4 }
  0x2b   :  { %v182_v10 = vadd.f32 %v181_v4, %v180_v55  ;;  %v4010_v11 = vpop.eup %3299  ;;  %v189_v60 = vsel %vm26_vm0, %v4002_v3, 0.0  ;;  %v190_v61 = vsel %vm26_vm0, %v4008_v57, 0.0  ;;  %v341_v62 = vrot.slane %v340_v0, 2 }
  0x2c   :  { %v4018_v16 = vsel %vm26_vm0, %v4000_v56, -inf  ;;  %v4020_v17 = vpop.eup %3301  ;;  %v167_v29 = vrot.slane %v166_v58, 2  ;;  %v175_v38 = vadd.f32 %v174_v59, %v173_v54  ;;  %v191_v7 = vadd.f32 %v190_v61, %v189_v60 }
  0x2d   :  { %v183_v6 = vrot.slane %v182_v10, 4  ;;  %v4022_v8 = vpop.eup %3303  ;;  %v198_v12 = vsel %vm26_vm0, %v4010_v11, 0.0  ;;  %v199_v20 = vsel %vm26_vm0, %v4020_v17, 0.0  ;;  %v334_v21 = vrot.slane %v4006_v5, 1 }
  0x2e   :  { %v349_v22 = vmax.f32 %v347_v46, %v348_v9  ;;  %v4029_v24 = vpop.eup %3305  ;;  %v168_v25 = vadd.f32 %v167_v29, %v166_v58  ;;  %v176_v26 = vrot.slane %v175_v38, 2  ;;  %v192_v30 = vrot.slane %v191_v7, 4 }
  0x2f   :  { %v184_v27 = vadd.f32 %v183_v6, %v182_v10  ;;  %v4031_v31 = vpop.eup %3307  ;;  %v200_v32 = vadd.f32 %v199_v20, %v198_v12  ;;  %v207_v33 = vsel %vm26_vm0, %v4022_v8, 0.0  ;;  %v208_v34 = vsel %vm26_vm0, %v4029_v24, 0.0 }
  0x30   :  { %v4037_v63 = vmax.f32 %v340_v0, %v341_v62  ;;  %v4039_v13 = vpop.eup %3309  ;;  %v169_v36 = vrot.slane %v168_v25, 1  ;;  %v177_v39 = vadd.f32 %v176_v26, %v175_v38  ;;  %v193_v42 = vadd.f32 %v192_v30, %v191_v7 }
  0x31   :  { %v185_v40 = vrot.slane %v184_v27, 2  ;;  %v4041_v44 = vpop.eup %3311  ;;  %v201_v45 = vrot.slane %v200_v32, 4  ;;  %v209_v46 = vadd.f32 %v208_v34, %v207_v33  ;;  %v216_v48 = vsel %vm26_vm0, %v4031_v31, 0.0 }
  0x32   :  { %v217_v49 = vsel %vm26_vm0, %v4039_v13, 0.0  ;;  %v4047_v50 = vpop.eup %3313  ;;  %v170_v52 = vadd.f32 %v169_v36, %v168_v25  ;;  %v178_v0 = vrot.slane %v177_v39, 1  ;;  %v194_v54 = vrot.slane %v193_v42, 2 }
  0x33   :  { %v186_v53 = vadd.f32 %v185_v40, %v184_v27  ;;  %v4049_v55 = vpop.eup %3315  ;;  %v202_v4 = vadd.f32 %v201_v45, %v200_v32  ;;  %v210_v9 = vrot.slane %v209_v46, 4  ;;  %v218_v58 = vadd.f32 %v217_v49, %v216_v48 }
  0x34   :  { %v225_v59 = vsel %vm26_vm0, %v4041_v44, 0.0  ;;  %v4053_v10 = vpop.eup %3317  ;;  %v179_v60 = vadd.f32 %v178_v0, %v177_v39  ;;  %v195_v62 = vadd.f32 %v194_v54, %v193_v42  ;;  %v226_v29 = vsel %vm26_vm0, %v4047_v50, 0.0 }
  0x35   :  { %v187_v61 = vrot.slane %v186_v53, 1  ;;  %v203_v38 = vrot.slane %v202_v4, 2  ;;  %v211_v6 = vadd.f32 %v210_v9, %v209_v46  ;;  %v219_v7 = vrot.slane %v218_v58, 4 }
  0x36   :  { %v227_v12 = vadd.f32 %v226_v29, %v225_v59  ;;  %v196_v25 = vrot.slane %v195_v62, 1  ;;  %v234_v26 = vsel %vm26_vm0, %v4049_v55, 0.0  ;;  %v235_v27 = vsel %vm26_vm0, %v4053_v10, 0.0 }
  0x37   :  { %v188_v20 = vadd.f32 %v187_v61, %v186_v53  ;;  %v204_v30 = vadd.f32 %v203_v38, %v202_v4  ;;  %v212_v32 = vrot.slane %v211_v6, 2  ;;  %v220_v33 = vadd.f32 %v219_v7, %v218_v58 }
  0x38   :  { %v228_v34 = vrot.slane %v227_v12, 4  ;;  %v197_v36 = vadd.f32 %v196_v25, %v195_v62  ;;  %v236_v39 = vadd.f32 %v235_v27, %v234_v26  ;;  %3319 = vrcp.f32 %v170_v52  ;;  %v4066_v52 = vld [vmem:[%s7142_s0 + $0xd0] sm:$0xff] }
  0x39   :  { %v350_v40 = vrot.slane %v349_v22, 2  ;;  %v205_v42 = vrot.slane %v204_v30, 1  ;;  %v213_v45 = vadd.f32 %v212_v32, %v211_v6  ;;  %v221_v46 = vrot.slane %v220_v33, 2  ;;  %v4082_v6 = vld [vmem:[%s7142_s0 + $0xe8] sm:$0xff] }
  0x3a   :  { %v229_v48 = vadd.f32 %v228_v34, %v227_v12  ;;  %v237_v49 = vrot.slane %v236_v39, 4  ;;  %3321 = vrcp.f32 %v179_v60  ;;  %v356_v53 = vmax.f32 %v3991_v1, %v4018_v16  ;;  %v4072_v1 = vld [vmem:[%s7142_s0 + $0xd8] sm:$0xff]  ;;  %v4077_v16 = vld [vmem:[%s7142_s0 + $0xe0] sm:$0xff] }
  0x3b   :  { %v351_v0 = vmax.f32 %v349_v22, %v350_v40  ;;  %v206_v54 = vadd.f32 %v205_v42, %v204_v30  ;;  %v214_v9 = vrot.slane %v213_v45, 1  ;;  %v222_v4 = vadd.f32 %v221_v46, %v220_v33 }
  0x3c   :  { %v230_v59 = vrot.slane %v229_v48, 2  ;;  %v238_v58 = vadd.f32 %v237_v49, %v236_v39  ;;  %3323 = vrcp.f32 %v188_v20  ;;  %v343_v61 = vrot.slane %v4037_v63, 1 }
  0x3d   :  { %v357_v62 = vrot.slane %v356_v53, 4  ;;  %v215_v29 = vadd.f32 %v214_v9, %v213_v45  ;;  %v223_v60 = vrot.slane %v222_v4, 1  ;;  %3325 = vrcp.f32 %v197_v36 }
  0x3e   :  { %v231_v22 = vadd.f32 %v230_v59, %v229_v48  ;;  %v239_v38 = vrot.slane %v238_v58, 2  ;;  %3327 = vrcp.f32 %v206_v54  ;;  %v352_v7 = vrot.slane %v351_v0, 1  ;;  %v4109_v54 = vld [vmem:[%s7142_s0 + $0xf0] sm:$0xff] }
  0x3f   :  { %v358_v12 = vmax.f32 %v356_v53, %v357_v62  ;;  %v224_v20 = vadd.f32 %v223_v60, %v222_v4  ;;  %3329 = vrcp.f32 %v215_v29  ;;  %v363_v26 = vsel %vm26_vm0, %v4066_v52, -inf }
  0x40   :  { %v232_v25 = vrot.slane %v231_v22, 1  ;;  %v240_v27 = vadd.f32 %v239_v38, %v238_v58  ;;  %v364_v32 = vsel %vm26_vm0, %v4072_v1, -inf  ;;  %v372_v33 = vsel %vm26_vm0, %v4077_v16, -inf }
  0x41   :  { %v359_v30 = vrot.slane %v358_v12, 2  ;;  %3331 = vrcp.f32 %v224_v20  ;;  %v365_v36 = vmax.f32 %v363_v26, %v364_v32  ;;  %v373_v39 = vsel %vm26_vm0, %v4082_v6, -inf }
  0x42   :  { %v233_v34 = vadd.f32 %v232_v25, %v231_v22  ;;  %v3320_v40 = vpop.eup %3319  ;;  %v241_v42 = vrot.slane %v240_v27, 1  ;;  %v4095_v45 = vmax.f32 %v4006_v5, %v334_v21  ;;  %v4098_v46 = vmax.f32 %v4037_v63, %v343_v61 }
  0x43   :  { %v374_v48 = vmax.f32 %v372_v33, %v373_v39  ;;  %v4101_v49 = vmul.f32 %v3320_v40, %v3966_v35  ;;  %v4104_v53 = vmul.f32 %v3320_v40, %v3968_v37  ;;  %v366_v9 = vrot.slane %v365_v36, 4 }
  0x44   :  { %3333 = vrcp.f32 %v233_v34  ;;  %v3322_v4 = vpop.eup %3321  ;;  %v242_v5 = vadd.f32 %v241_v42, %v240_v27  ;;  %v4111_v21 = vmax.f32 %v351_v0, %v352_v7  ;;  %v4113_v63 = vmax.f32 %v358_v12, %v359_v30 }
  0x45   :  { %v375_v59 = vrot.slane %v374_v48, 4  ;;  %v4116_v58 = vmul.f32 %v3322_v4, %v3977_v43  ;;  %v4119_v35 = vmul.f32 %v3322_v4, %v3981_v47  ;;  %v270_v37 = vsel %vm26_vm0, %v4101_v49, 0.0 }
  0x46   :  { %v287_v61 = vsel %vm26_vm0, %v4104_v53, 0.0  ;;  %v3324_v62 = vpop.eup %3323  ;;  %3335 = vrcp.f32 %v242_v5  ;;  %v367_v29 = vmax.f32 %v365_v36, %v366_v9  ;;  %v381_v60 = vsel %vm26_vm0, %v4109_v54, -inf }
  0x47   :  { %v376_v0 = vmax.f32 %v374_v48, %v375_v59  ;;  %v3326_v22 = vpop.eup %3325  ;;  %v4128_v43 = vmul.f32 %v3324_v62, %v3985_v51  ;;  %v4131_v47 = vmul.f32 %v3324_v62, %v3993_v2  ;;  %v271_v38 = vsel %vm26_vm0, %v4116_v58, 0.0  ;;  %v4146_v51 = vld [vmem:[%s7142_s0 + $0xf8] sm:$0xff] }
  0x48   :  { %v288_v7 = vsel %vm26_vm0, %v4119_v35, 0.0  ;;  %v3328_v12 = vpop.eup %3327  ;;  %v4138_v20 = vmul.f32 %v3326_v22, %v4002_v3  ;;  %v4141_v25 = vmul.f32 %v3326_v22, %v4008_v57  ;;  %v272_v26 = vadd.f32 %v271_v38, %v270_v37 }
  0x49   :  { %v289_v27 = vadd.f32 %v288_v7, %v287_v61  ;;  %v3330_v2 = vpop.eup %3329  ;;  %v4149_v30 = vmul.f32 %v3328_v12, %v4010_v11  ;;  %v4152_v32 = vmul.f32 %v3328_v12, %v4020_v17  ;;  %v273_v3 = vsel %vm26_vm0, %v4128_v43, 0.0 }
  0x4a   :  { %v290_v57 = vsel %vm26_vm0, %v4131_v47, 0.0  ;;  %v4159_v33 = vmul.f32 %v3330_v2, %v4022_v8  ;;  %v4162_v34 = vmul.f32 %v3330_v2, %v4029_v24  ;;  %v274_v36 = vadd.f32 %v273_v3, %v272_v26  ;;  %v4195_v26 = vld [vmem:[%s7142_s0 + $0x100] sm:$0xff] }
  0x4b   :  { %v275_v11 = vsel %vm26_vm0, %v4138_v20, 0.0  ;;  %v3332_v39 = vpop.eup %3331  ;;  %v277_v17 = vsel %vm26_vm0, %v4149_v30, 0.0  ;;  %v291_v40 = vadd.f32 %v290_v57, %v289_v27  ;;  %v292_v42 = vsel %vm26_vm0, %v4141_v25, 0.0 }
  0x4c   :  { %7243 = vst [vmem:[#allocation2_spill] sm:$0xff] %v4159_v33  ;;  %7244 = vst [vmem:[#allocation3_spill] sm:$0xff] %v4162_v34  ;;  %v382_v48 = vsel %vm26_vm0, %v4146_v51, -inf  ;;  %v4173_v8 = vmul.f32 %v3332_v39, %v4031_v31  ;;  %v4176_v24 = vmul.f32 %v3332_v39, %v4039_v13  ;;  %v276_v9 = vadd.f32 %v275_v11, %v274_v36 }
  0x4d   :  { %v294_v4 = vsel %vm26_vm0, %v4152_v32, 0.0  ;;  %v279_v59 = vsel %vm26_vm0, %v4159_v33, 0.0  ;;  %v293_v37 = vadd.f32 %v292_v42, %v291_v40  ;;  %v368_v61 = vrot.slane %v367_v29, 2 }
  0x4e   :  { %7245 = vst [vmem:[#allocation4_spill] sm:$0xff] %v4173_v8  ;;  %7246 = vst [vmem:[#allocation5_spill] sm:$0xff] %v4176_v24  ;;  %v3334_v5 = vpop.eup %3333  ;;  %v377_v62 = vrot.slane %v376_v0, 2  ;;  %v278_v38 = vadd.f32 %v277_v17, %v276_v9  ;;  %v296_v13 = vsel %vm26_vm0, %v4162_v34, 0.0  ;;  %v281_v7 = vsel %vm26_vm0, %v4173_v8, 0.0 }
  0x4f   :  { %v4183_v22 = vmul.f32 %v3334_v5, %v4041_v44  ;;  %v4186_v31 = vmul.f32 %v3334_v5, %v4047_v50  ;;  %v295_v12 = vadd.f32 %v294_v4, %v293_v37  ;;  %v369_v27 = vmax.f32 %v367_v29, %v368_v61  ;;  %v4211_v29 = vld [vmem:[%s7142_s0 + $0x108] sm:$0xff] }
  0x50   :  { %v378_v2 = vmax.f32 %v376_v0, %v377_v62  ;;  %v3336_v44 = vpop.eup %3335  ;;  %v280_v3 = vadd.f32 %v279_v59, %v278_v38  ;;  %v298_v50 = vsel %vm26_vm0, %v4176_v24, 0.0  ;;  %v361_v57 = vrot.slane %v4113_v63, 1 }
  0x51   :  { %7247 = vst [vmem:[#allocation6_spill] sm:$0xff] %v4183_v22  ;;  %7248 = vst [vmem:[#allocation7_spill] sm:$0xff] %v4186_v31  ;;  %v383_v36 = vmax.f32 %v381_v60, %v382_v48  ;;  %v4201_v11 = vmul.f32 %v3336_v44, %v4049_v55  ;;  %v4204_v39 = vmul.f32 %v3336_v44, %v4053_v10  ;;  %v283_v17 = vsel %vm26_vm0, %v4183_v22, 0.0  ;;  %v4218_v55 = vld [vmem:[%s7142_s0 + $0x110] sm:$0xff]  ;;  %v4223_v10 = vld [vmem:[%s7142_s0 + $0x118] sm:$0xff] }
  0x52   :  { %v297_v40 = vadd.f32 %v296_v13, %v295_v12  ;;  %v282_v0 = vadd.f32 %v281_v7, %v280_v3  ;;  %v300_v42 = vsel %vm26_vm0, %v4186_v31, 0.0  ;;  %v390_v48 = vsel %vm26_vm0, %v4195_v26, -inf }
  0x53   :  { %7249 = vst [vmem:[#allocation8_spill] sm:$0xff] %v4201_v11  ;;  %7250 = vst [vmem:[#allocation9_spill] sm:$0xff] %v4204_v39  ;;  %v384_v60 = vrot.slane %v383_v36, 4  ;;  %v285_v9 = vsel %vm26_vm0, %v4201_v11, 0.0  ;;  %v370_v5 = vrot.slane %v369_v27, 1  ;;  %v379_v59 = vrot.slane %v378_v2, 1 }
  0x54   :  { %v299_v4 = vadd.f32 %v298_v50, %v297_v40  ;;  %v284_v37 = vadd.f32 %v283_v17, %v282_v0  ;;  %v302_v61 = vsel %vm26_vm0, %v4204_v39, 0.0  ;;  %v391_v38 = vsel %vm26_vm0, %v4211_v29, -inf }
  0x55   :  { %v385_v62 = vmax.f32 %v383_v36, %v384_v60  ;;  %v392_v7 = vmax.f32 %v390_v48, %v391_v38  ;;  %v399_v12 = vsel %vm26_vm0, %v4218_v55, -inf  ;;  %v400_v44 = vsel %vm26_vm0, %v4223_v10, -inf }
  0x56   :  { %v301_v13 = vadd.f32 %v300_v42, %v299_v4  ;;  %v286_v3 = vadd.f32 %v285_v9, %v284_v37  ;;  %v362_v50 = vmax.f32 %v4113_v63, %v361_v57  ;;  %v401_v17 = vmax.f32 %v399_v12, %v400_v44 }
  0x57   :  { %v386_v40 = vrot.slane %v385_v62, 2  ;;  %v371_v11 = vmax.f32 %v369_v27, %v370_v5  ;;  %v380_v39 = vmax.f32 %v378_v2, %v379_v59  ;;  %v393_v36 = vrot.slane %v392_v7, 4 }
  0x58   :  { %v303_v0 = vadd.f32 %v302_v61, %v301_v13  ;;  %v3082_v60 = vadd.f32 -1.0, %v286_v3  ;;  %v402_v22 = vrot.slane %v401_v17, 4  ;;  %v408_v42 = vsub.f32 %v3925_v18, %v4095_v45 }
  0x59   :  { %v387_v31 = vmax.f32 %v385_v62, %v386_v40  ;;  %v394_v48 = vmax.f32 %v392_v7, %v393_v36  ;;  %v409_v4 = vsub.f32 %v3930_v23, %v4095_v45  ;;  %v410_v9 = vsub.f32 %v3935_v28, %v4098_v46 }
  0x5a   :  { %v411_v63 = vsub.f32 %v3940_v14, %v4098_v46  ;;  %v4246_v57 = vadd.f32 -1.0, %v303_v0  ;;  %v403_v2 = vmax.f32 %v401_v17, %v402_v22  ;;  %v412_v5 = vsub.f32 %v3945_v15, %v4111_v21 }
  0x5b   :  { %v388_v27 = vrot.slane %v387_v31, 1  ;;  %v4250_v59 = vmul.f32 %v3082_v60, %v3082_v60  ;;  %v395_v18 = vrot.slane %v394_v48, 2  ;;  %v413_v37 = vsub.f32 %v3950_v19, %v4111_v21 }
  0x5c   :  { %v414_v23 = vsub.f32 %v3975_v41, %v362_v50  ;;  %v404_v28 = vrot.slane %v403_v2, 2  ;;  %v415_v61 = vsub.f32 %v4000_v56, %v362_v50  ;;  %v416_v14 = vsub.f32 %v4066_v52, %v371_v11 }
  0x5d   :  { %7251 = vst [vmem:[#allocation10_spill] sm:$0xff] %v4250_v59  ;;  %v389_v45 = vmax.f32 %v387_v31, %v388_v27  ;;  %v396_v46 = vmax.f32 %v394_v48, %v395_v18  ;;  %v417_v22 = vsub.f32 %v4072_v1, %v371_v11  ;;  %v426_v62 = vmul.f32 1.442695, %v408_v42 }
  0x5e   :  { %v428_v38 = vmul.f32 1.442695, %v409_v4  ;;  %v405_v15 = vmax.f32 %v403_v2, %v404_v28  ;;  %v418_v13 = vsub.f32 %v4077_v16, %v380_v39  ;;  %v419_v7 = vsub.f32 %v4082_v6, %v380_v39 }
  0x5f   :  { %v430_v12 = vmul.f32 1.442695, %v410_v9  ;;  %v397_v19 = vrot.slane %v396_v46, 1  ;;  %3337 = vpow2.f32 %v426_v62  ;;  %v432_v41 = vmul.f32 1.442695, %v411_v63  ;;  %v4294_v63 = vld [vmem:[%s7142_s0 + $0x148] sm:$0xff] }
  0x60   :  { %v434_v21 = vmul.f32 1.442695, %v412_v5  ;;  %v406_v31 = vrot.slane %v405_v15, 1  ;;  %v420_v56 = vsub.f32 %v4109_v54, %v389_v45  ;;  %3339 = vpow2.f32 %v428_v38  ;;  %v4267_v54 = vld [vmem:[%s7142_s0 + $0x120] sm:$0xff]  ;;  %7257 = vst [vmem:[#allocation16_spill] sm:$0xff] %v4294_v63 }
  0x61   :  { %v436_v52 = vmul.f32 1.442695, %v413_v37  ;;  %v398_v44 = vmax.f32 %v396_v46, %v397_v19  ;;  %v421_v1 = vsub.f32 %v4146_v51, %v389_v45  ;;  %3341 = vpow2.f32 %v430_v12  ;;  %7252 = vst [vmem:[#allocation11_spill] sm:$0xff] %v4267_v54  ;;  %v4272_v51 = vld [vmem:[%s7142_s0 + $0x128] sm:$0xff]  ;;  %v4307_v37 = vld [vmem:[%s7142_s0 + $0x150] sm:$0xff] }
  0x62   :  { %v438_v11 = vmul.f32 1.442695, %v414_v23  ;;  %v407_v3 = vmax.f32 %v405_v15, %v406_v31  ;;  %3343 = vpow2.f32 %v432_v41  ;;  %v440_v16 = vmul.f32 1.442695, %v415_v61  ;;  %7253 = vst [vmem:[#allocation12_spill] sm:$0xff] %v4272_v51  ;;  %7258 = vst [vmem:[#allocation17_spill] sm:$0xff] %v4307_v37 }
  0x63   :  { %v442_v50 = vmul.f32 1.442695, %v416_v14  ;;  %v422_v6 = vsub.f32 %v4195_v26, %v398_v44  ;;  %v423_v39 = vsub.f32 %v4211_v29, %v398_v44  ;;  %3345 = vpow2.f32 %v434_v21  ;;  %v4278_v26 = vld [vmem:[%s7142_s0 + $0x130] sm:$0xff]  ;;  %v4283_v29 = vld [vmem:[%s7142_s0 + $0x138] sm:$0xff] }
  0x64   :  { %v444_v40 = vmul.f32 1.442695, %v417_v22  ;;  %v424_v17 = vsub.f32 %v4218_v55, %v407_v3  ;;  %3347 = vpow2.f32 %v436_v52  ;;  %v446_v0 = vmul.f32 1.442695, %v418_v13  ;;  %7254 = vst [vmem:[#allocation13_spill] sm:$0xff] %v4278_v26  ;;  %7255 = vst [vmem:[#allocation14_spill] sm:$0xff] %v4283_v29 }
  0x65   :  { %v448_v36 = vmul.f32 1.442695, %v419_v7  ;;  %v425_v60 = vsub.f32 %v4223_v10, %v407_v3  ;;  %3349 = vpow2.f32 %v438_v11  ;;  %v450_v42 = vmul.f32 1.442695, %v420_v56  ;;  %v4289_v55 = vld [vmem:[%s7142_s0 + $0x140] sm:$0xff]  ;;  %v4312_v23 = vld [vmem:[%s7142_s0 + $0x158] sm:$0xff] }
  0x66   :  { %v452_v48 = vmul.f32 1.442695, %v421_v1  ;;  %7256 = vst [vmem:[#allocation15_spill] sm:$0xff] %v4289_v55  ;;  %3351 = vpow2.f32 %v440_v16  ;;  %v454_v4 = vmul.f32 1.442695, %v422_v6  ;;  %v647_v27 = vsel %vm26_vm0, %v4267_v54, -inf }
  0x67   :  { %v456_v9 = vmul.f32 1.442695, %v423_v39  ;;  %3353 = vpow2.f32 %v442_v50  ;;  %v648_v10 = vsel %vm26_vm0, %v4272_v51, -inf  ;;  %v656_v2 = vsel %vm26_vm0, %v4278_v26, -inf  ;;  %7259 = vst [vmem:[#allocation18_spill] sm:$0xff] %v4312_v23 }
  0x68   :  { %v657_v5 = vsel %vm26_vm0, %v4283_v29, -inf  ;;  %3355 = vpow2.f32 %v444_v40  ;;  %v458_v18 = vmul.f32 1.442695, %v424_v17  ;;  %v649_v45 = vmax.f32 %v647_v27, %v648_v10 }
  0x69   :  { %v658_v28 = vmax.f32 %v656_v2, %v657_v5  ;;  %v4314_v61 = vpop.eup %3337  ;;  %3357 = vpow2.f32 %v446_v0  ;;  %v460_v14 = vmul.f32 1.442695, %v425_v60  ;;  %v665_v46 = vsel %vm26_vm0, %v4289_v55, -inf }
  0x6a   :  { %v666_v22 = vsel %vm26_vm0, %v4294_v63, -inf  ;;  %v4320_v62 = vpop.eup %3339  ;;  %3359 = vpow2.f32 %v448_v36  ;;  %v462_v38 = vsel %vm26_vm0, %v4314_v61, 0.0  ;;  %v650_v15 = vrot.slane %v649_v45, 4 }
  0x6b   :  { %v659_v13 = vrot.slane %v658_v28, 4  ;;  %v4324_v7 = vpop.eup %3341  ;;  %3361 = vpow2.f32 %v450_v42  ;;  %v463_v12 = vsel %vm26_vm0, %v4320_v62, 0.0  ;;  %v674_v19 = vsel %vm26_vm0, %v4307_v37, -inf }
  0x6c   :  { %v675_v41 = vsel %vm26_vm0, %v4312_v23, -inf  ;;  %v4332_v21 = vpop.eup %3343  ;;  %3363 = vpow2.f32 %v452_v48  ;;  %v464_v31 = vadd.f32 %v463_v12, %v462_v38  ;;  %v471_v56 = vsel %vm26_vm0, %v4324_v7, 0.0 }
  0x6d   :  { %v651_v52 = vmax.f32 %v649_v45, %v650_v15  ;;  %v4336_v44 = vpop.eup %3345  ;;  %3365 = vpow2.f32 %v454_v4  ;;  %v472_v1 = vsel %vm26_vm0, %v4332_v21, 0.0  ;;  %v660_v11 = vmax.f32 %v658_v28, %v659_v13 }
  0x6e   :  { %v4340_v3 = vmax.f32 %v665_v46, %v666_v22  ;;  %v4342_v16 = vpop.eup %3347  ;;  %3367 = vpow2.f32 %v456_v9  ;;  %v465_v50 = vrot.slane %v464_v31, 4  ;;  %v473_v6 = vadd.f32 %v472_v1, %v471_v56 }
  0x6f   :  { %v480_v39 = vsel %vm26_vm0, %v4336_v44, 0.0  ;;  %v4346_v40 = vpop.eup %3349  ;;  %3369 = vpow2.f32 %v458_v18  ;;  %v481_v17 = vsel %vm26_vm0, %v4342_v16, 0.0  ;;  %v652_v0 = vrot.slane %v651_v52, 2 }
  0x70   :  { %v661_v36 = vrot.slane %v660_v11, 2  ;;  %v4350_v60 = vpop.eup %3351  ;;  %3371 = vpow2.f32 %v460_v14  ;;  %v466_v42 = vadd.f32 %v465_v50, %v464_v31  ;;  %v474_v48 = vrot.slane %v473_v6, 4 }
  0x71   :  { %v482_v4 = vadd.f32 %v481_v17, %v480_v39  ;;  %v4352_v9 = vpop.eup %3353  ;;  %v489_v27 = vsel %vm26_vm0, %v4346_v40, 0.0  ;;  %v490_v10 = vsel %vm26_vm0, %v4350_v60, 0.0  ;;  %v4358_v2 = vmax.f32 %v651_v52, %v652_v0 }
  0x72   :  { %v4360_v5 = vmax.f32 %v674_v19, %v675_v41  ;;  %v4362_v18 = vpop.eup %3355  ;;  %v467_v45 = vrot.slane %v466_v42, 2  ;;  %v475_v28 = vadd.f32 %v474_v48, %v473_v6  ;;  %v491_v46 = vadd.f32 %v490_v10, %v489_v27 }
  0x73   :  { %v483_v14 = vrot.slane %v482_v4, 4  ;;  %v4364_v22 = vpop.eup %3357  ;;  %v498_v38 = vsel %vm26_vm0, %v4352_v9, 0.0  ;;  %v499_v15 = vsel %vm26_vm0, %v4362_v18, 0.0  ;;  %v4370_v13 = vmax.f32 %v660_v11, %v661_v36 }
  0x74   :  { %v668_v12 = vrot.slane %v4340_v3, 4  ;;  %v4373_v19 = vpop.eup %3359  ;;  %v468_v41 = vadd.f32 %v467_v45, %v466_v42  ;;  %v476_v31 = vrot.slane %v475_v28, 2  ;;  %v492_v52 = vrot.slane %v491_v46, 4 }
  0x75   :  { %v484_v56 = vadd.f32 %v483_v14, %v482_v4  ;;  %v4375_v1 = vpop.eup %3361  ;;  %v500_v50 = vadd.f32 %v499_v15, %v498_v38  ;;  %v507_v6 = vsel %vm26_vm0, %v4364_v22, 0.0  ;;  %v508_v39 = vsel %vm26_vm0, %v4373_v19, 0.0 }
  0x76   :  { %v4382_v17 = vpop.eup %3363  ;;  %v469_v0 = vrot.slane %v468_v41, 1  ;;  %v477_v36 = vadd.f32 %v476_v31, %v475_v28  ;;  %v493_v42 = vadd.f32 %v492_v52, %v491_v46  ;;  %v509_v10 = vadd.f32 %v508_v39, %v507_v6 }
  0x77   :  { %v485_v48 = vrot.slane %v484_v56, 2  ;;  %v4384_v27 = vpop.eup %3365  ;;  %v501_v4 = vrot.slane %v500_v50, 4  ;;  %v516_v45 = vsel %vm26_vm0, %v4375_v1, 0.0  ;;  %v517_v14 = vsel %vm26_vm0, %v4382_v17, 0.0 }
  0x78   :  { %v4390_v38 = vpop.eup %3367  ;;  %v478_v15 = vrot.slane %v477_v36, 1  ;;  %v494_v59 = vrot.slane %v493_v42, 2  ;;  %v510_v31 = vrot.slane %v509_v10, 4  ;;  %v518_v52 = vadd.f32 %v517_v14, %v516_v45 }
  0x79   :  { %v486_v11 = vadd.f32 %v485_v48, %v484_v56  ;;  %v4393_v28 = vpop.eup %3369  ;;  %v502_v46 = vadd.f32 %v501_v4, %v500_v50  ;;  %v525_v6 = vsel %vm26_vm0, %v4384_v27, 0.0  ;;  %v470_v37 = vadd.f32 %v469_v0, %v468_v41 }
  0x7a   :  { %v4397_v39 = vpop.eup %3371  ;;  %v495_v55 = vadd.f32 %v494_v59, %v493_v42  ;;  %v526_v29 = vsel %vm26_vm0, %v4390_v38, 0.0  ;;  %v511_v48 = vadd.f32 %v510_v31, %v509_v10  ;;  %v519_v26 = vrot.slane %v518_v52, 4 }
  0x7b   :  { %v487_v63 = vrot.slane %v486_v11, 1  ;;  %v503_v56 = vrot.slane %v502_v46, 2  ;;  %v527_v23 = vadd.f32 %v526_v29, %v525_v6  ;;  %v479_v51 = vadd.f32 %v478_v15, %v477_v36 }
  0x7c   :  { %v496_v54 = vrot.slane %v495_v55, 1  ;;  %v534_v50 = vsel %vm26_vm0, %v4393_v28, 0.0  ;;  %v535_v4 = vsel %vm26_vm0, %v4397_v39, 0.0  ;;  %v512_v14 = vrot.slane %v511_v48, 2 }
  0x7d   :  { %v504_v45 = vadd.f32 %v503_v56, %v502_v46  ;;  %v520_v41 = vadd.f32 %v519_v26, %v518_v52  ;;  %v528_v0 = vrot.slane %v527_v23, 4  ;;  %v488_v59 = vadd.f32 %v487_v63, %v486_v11 }
  0x7e   :  { %v497_v42 = vadd.f32 %v496_v54, %v495_v55  ;;  %v536_v24 = vadd.f32 %v535_v4, %v534_v50  ;;  %3373 = vrcp.f32 %v470_v37  ;;  %v513_v10 = vadd.f32 %v512_v14, %v511_v48  ;;  %v4410_v54 = vld [vmem:[%s7142_s0 + $0x160] sm:$0xff]  ;;  %v4428_v50 = vld [vmem:[%s7142_s0 + $0x178] sm:$0xff] }
  0x7f   :  { %v505_v8 = vrot.slane %v504_v45, 1  ;;  %v521_v31 = vrot.slane %v520_v41, 2  ;;  %v529_v29 = vadd.f32 %v528_v0, %v527_v23  ;;  %3375 = vrcp.f32 %v479_v51 }
  0x80   :  { %v537_v36 = vrot.slane %v536_v24, 4  ;;  %v669_v15 = vmax.f32 %v4340_v3, %v668_v12  ;;  %v677_v6 = vrot.slane %v4360_v5, 4  ;;  %v514_v33 = vrot.slane %v513_v10, 1 }
  0x81   :  { %v506_v34 = vadd.f32 %v505_v8, %v504_v45  ;;  %v522_v46 = vadd.f32 %v521_v31, %v520_v41  ;;  %v530_v56 = vrot.slane %v529_v29, 2  ;;  %3377 = vrcp.f32 %v488_v59  ;;  %v4416_v8 = vld [vmem:[%s7142_s0 + $0x168] sm:$0xff] }
  0x82   :  { %v538_v26 = vadd.f32 %v537_v36, %v536_v24  ;;  %v670_v55 = vrot.slane %v669_v15, 2  ;;  %v678_v63 = vmax.f32 %v4360_v5, %v677_v6  ;;  %v515_v37 = vadd.f32 %v514_v33, %v513_v10  ;;  %v4421_v5 = vld [vmem:[%s7142_s0 + $0x170] sm:$0xff]  ;;  %v4448_v6 = vld [vmem:[%s7142_s0 + $0x180] sm:$0xff] }
  0x83   :  { %v523_v51 = vrot.slane %v522_v46, 1  ;;  %v531_v23 = vadd.f32 %v530_v56, %v529_v29  ;;  %3379 = vrcp.f32 %v497_v42  ;;  %v683_v33 = vsel %vm26_vm0, %v4410_v54, -inf }
  0x84   :  { %v539_v3 = vrot.slane %v538_v26, 2  ;;  %3381 = vrcp.f32 %v506_v34  ;;  %v671_v24 = vmax.f32 %v669_v15, %v670_v55  ;;  %v679_v12 = vrot.slane %v678_v63, 2 }
  0x85   :  { %v524_v11 = vadd.f32 %v523_v51, %v522_v46  ;;  %v532_v52 = vrot.slane %v531_v23, 1  ;;  %3383 = vrcp.f32 %v515_v37  ;;  %v684_v45 = vsel %vm26_vm0, %v4416_v8, -inf }
  0x86   :  { %v540_v48 = vadd.f32 %v539_v3, %v538_v26  ;;  %v672_v34 = vrot.slane %v671_v24, 1  ;;  %v680_v4 = vmax.f32 %v678_v63, %v679_v12  ;;  %v4434_v14 = vmul.f32 %v4246_v57, %v4246_v57 }
  0x87   :  { %v533_v41 = vadd.f32 %v532_v52, %v531_v23  ;;  %3385 = vrcp.f32 %v524_v11  ;;  %v685_v0 = vmax.f32 %v683_v33, %v684_v45  ;;  %v7260_v10 = vrot.slane %v4358_v2, 1 }
  0x88   :  { %v3374_v59 = vpop.eup %3373  ;;  %v541_v42 = vrot.slane %v540_v48, 1  ;;  %v681_v29 = vrot.slane %v680_v4, 1  ;;  %v692_v36 = vsel %vm26_vm0, %v4421_v5, -inf  ;;  %v693_v46 = vsel %vm26_vm0, %v4428_v50, -inf }
  0x89   :  { %v4439_v31 = vmax.f32 %v4358_v2, %v7260_v10  ;;  %3387 = vrcp.f32 %v533_v41  ;;  %v552_v15 = vmul.f32 %v3374_v59, %v4314_v61  ;;  %v553_v57 = vmul.f32 %v3374_v59, %v4320_v62  ;;  %v3376_v56 = vpop.eup %3375 }
  0x8a   :  { %v542_v2 = vadd.f32 %v541_v42, %v540_v48  ;;  %v7261_v26 = vrot.slane %v4370_v13, 1  ;;  %v4457_v63 = vmax.f32 %v671_v24, %v672_v34  ;;  %v686_v61 = vrot.slane %v685_v0, 4 }
  0x8b   :  { %v554_v62 = vmul.f32 %v3376_v56, %v4324_v7  ;;  %v555_v37 = vmul.f32 %v3376_v56, %v4332_v21  ;;  %v570_v51 = vsel %vm26_vm0, %v552_v15, 0.0  ;;  %v587_v23 = vsel %vm26_vm0, %v553_v57, 0.0  ;;  %v3378_v3 = vpop.eup %3377 }
  0x8c   :  { %v4455_v55 = vmax.f32 %v4370_v13, %v7261_v26  ;;  %3389 = vrcp.f32 %v542_v2  ;;  %v4463_v12 = vmax.f32 %v680_v4, %v681_v29  ;;  %v4465_v11 = vmax.f32 %v692_v36, %v693_v46 }
  0x8d   :  { %v4469_v13 = vsel %vm26_vm0, %v4448_v6, -inf  ;;  %v3380_v24 = vpop.eup %3379  ;;  %v556_v52 = vmul.f32 %v3378_v3, %v4336_v44  ;;  %v557_v7 = vmul.f32 %v3378_v3, %v4342_v16  ;;  %v571_v21 = vsel %vm26_vm0, %v554_v62, 0.0 }
  0x8e   :  { %v588_v33 = vsel %vm26_vm0, %v555_v37, 0.0  ;;  %v3382_v48 = vpop.eup %3381  ;;  %v558_v34 = vmul.f32 %v3380_v24, %v4346_v40  ;;  %v559_v4 = vmul.f32 %v3380_v24, %v4350_v60  ;;  %v572_v45 = vadd.f32 %v571_v21, %v570_v51 }
  0x8f   :  { %v589_v41 = vadd.f32 %v588_v33, %v587_v23  ;;  %v3384_v59 = vpop.eup %3383  ;;  %v560_v42 = vmul.f32 %v3382_v48, %v4352_v9  ;;  %v561_v10 = vmul.f32 %v3382_v48, %v4362_v18  ;;  %v573_v44 = vsel %vm26_vm0, %v556_v52, 0.0 }
  0x90   :  { %v590_v16 = vsel %vm26_vm0, %v557_v7, 0.0  ;;  %v562_v29 = vmul.f32 %v3384_v59, %v4364_v22  ;;  %v563_v36 = vmul.f32 %v3384_v59, %v4373_v19  ;;  %v574_v46 = vadd.f32 %v573_v44, %v572_v45 }
  0x91   :  { %v575_v40 = vsel %vm26_vm0, %v558_v34, 0.0  ;;  %v3386_v56 = vpop.eup %3385  ;;  %v577_v60 = vsel %vm26_vm0, %v560_v42, 0.0  ;;  %v591_v2 = vadd.f32 %v590_v16, %v589_v41  ;;  %v592_v26 = vsel %vm26_vm0, %v559_v4, 0.0 }
  0x92   :  { %v4487_v9 = vadd.f32 %v552_v15, %v4101_v49  ;;  %v564_v18 = vmul.f32 %v3386_v56, %v4375_v1  ;;  %v565_v51 = vmul.f32 %v3386_v56, %v4382_v17  ;;  %v576_v23 = vadd.f32 %v575_v40, %v574_v46 }
  0x93   :  { %v594_v22 = vsel %vm26_vm0, %v561_v10, 0.0  ;;  %v3388_v19 = vpop.eup %3387  ;;  %v579_v3 = vsel %vm26_vm0, %v562_v29, 0.0  ;;  %v593_v24 = vadd.f32 %v592_v26, %v591_v2  ;;  %v4494_v21 = vadd.f32 %v553_v57, %v4104_v53  ;;  %v7271_v2 = vld [vmem:[#allocation6_spill] sm:$0xff] }
  0x94   :  { %v687_v33 = vmax.f32 %v685_v0, %v686_v61  ;;  %v566_v48 = vmul.f32 %v3388_v19, %v4384_v27  ;;  %v567_v49 = vmul.f32 %v3388_v19, %v4390_v38  ;;  %v578_v15 = vadd.f32 %v577_v60, %v576_v23  ;;  %v7269_v60 = vld [vmem:[#allocation5_spill] sm:$0xff]  ;;  %v4564_v23 = vld [vmem:[%s7142_s0 + $0x1a0] sm:$0xff] }
  0x95   :  { %v596_v1 = vsel %vm26_vm0, %v563_v36, 0.0  ;;  %v581_v17 = vsel %vm26_vm0, %v564_v18, 0.0  ;;  %v595_v45 = vadd.f32 %v594_v22, %v593_v24  ;;  %v4501_v41 = vadd.f32 %v554_v62, %v4116_v58  ;;  %v4569_v22 = vld [vmem:[%s7142_s0 + $0x1a8] sm:$0xff] }
  0x96   :  { %v4504_v59 = vadd.f32 %v555_v37, %v4119_v35  ;;  %v3390_v44 = vpop.eup %3389  ;;  %v580_v53 = vadd.f32 %v579_v3, %v578_v15  ;;  %v598_v0 = vsel %vm26_vm0, %v565_v51, 0.0  ;;  %v4508_v27 = vadd.f32 %v556_v52, %v4128_v43 }
  0x97   :  { %v4511_v38 = vadd.f32 %v557_v7, %v4131_v47  ;;  %v568_v57 = vmul.f32 %v3390_v44, %v4393_v28  ;;  %v569_v61 = vmul.f32 %v3390_v44, %v4397_v39  ;;  %v583_v58 = vsel %vm26_vm0, %v566_v48, 0.0  ;;  %v4533_v39 = vld [vmem:[%s7142_s0 + $0x188] sm:$0xff] }
  0x98   :  { %v597_v62 = vadd.f32 %v596_v1, %v595_v45  ;;  %v582_v16 = vadd.f32 %v581_v17, %v580_v53  ;;  %v600_v35 = vsel %vm26_vm0, %v567_v49, 0.0  ;;  %v4518_v37 = vadd.f32 %v558_v34, %v4138_v20  ;;  %v7263_v34 = vld [vmem:[#allocation2_spill] sm:$0xff]  ;;  %v7273_v53 = vld [vmem:[#allocation7_spill] sm:$0xff] }
  0x99   :  { %v4521_v46 = vadd.f32 %v559_v4, %v4141_v25  ;;  %v585_v43 = vsel %vm26_vm0, %v568_v57, 0.0  ;;  %v4525_v52 = vadd.f32 %v560_v42, %v4149_v30  ;;  %v4528_v28 = vadd.f32 %v561_v10, %v4152_v32  ;;  %v7265_v4 = vld [vmem:[#allocation3_spill] sm:$0xff]  ;;  %v4545_v30 = vld [vmem:[%s7142_s0 + $0x190] sm:$0xff]  ;;  %v4550_v32 = vld [vmem:[%s7142_s0 + $0x198] sm:$0xff] }
  0x9a   :  { %v599_v47 = vadd.f32 %v598_v0, %v597_v62  ;;  %v584_v7 = vadd.f32 %v583_v58, %v582_v16  ;;  %v602_v20 = vsel %vm26_vm0, %v569_v61, 0.0  ;;  %v4537_v25 = vadd.f32 %v562_v29, %v7263_v34  ;;  %v7267_v10 = vld [vmem:[#allocation4_spill] sm:$0xff] }
  0x9b   :  { %7262 = vst [vmem:[#allocation19_spill] sm:$0xff] %v4528_v28  ;;  %v4540_v40 = vadd.f32 %v563_v36, %v7265_v4  ;;  %v4553_v56 = vadd.f32 %v564_v18, %v7267_v10  ;;  %v4556_v29 = vadd.f32 %v565_v51, %v7269_v60  ;;  %v4559_v36 = vadd.f32 %v566_v48, %v7271_v2  ;;  %v7275_v16 = vld [vmem:[#allocation8_spill] sm:$0xff]  ;;  %v7279_v60 = vld [vmem:[#allocation11_spill] sm:$0xff] }
  0x9c   :  { %7264 = vst [vmem:[#allocation2_spill] sm:$0xff] %v4537_v25  ;;  %v601_v42 = vadd.f32 %v600_v35, %v599_v47  ;;  %v586_v26 = vadd.f32 %v585_v43, %v584_v7  ;;  %v688_v19 = vrot.slane %v687_v33, 2  ;;  %v695_v18 = vrot.slane %v4465_v11, 4 }
  0x9d   :  { %7266 = vst [vmem:[#allocation3_spill] sm:$0xff] %v4540_v40  ;;  %7268 = vst [vmem:[#allocation4_spill] sm:$0xff] %v4553_v56  ;;  %v702_v51 = vsel %vm26_vm0, %v4533_v39, -inf  ;;  %v710_v48 = vsel %vm26_vm0, %v4545_v30, -inf  ;;  %v711_v15 = vsel %vm26_vm0, %v4550_v32, -inf  ;;  %v4581_v0 = vadd.f32 %v567_v49, %v7273_v53 }
  0x9e   :  { %7270 = vst [vmem:[#allocation5_spill] sm:$0xff] %v4556_v29  ;;  %7272 = vst [vmem:[#allocation6_spill] sm:$0xff] %v4559_v36  ;;  %v603_v3 = vadd.f32 %v602_v20, %v601_v42  ;;  %v703_v24 = vmax.f32 %v4469_v13, %v702_v51  ;;  %v3102_v1 = vadd.f32 -1.0, %v586_v26  ;;  %v689_v17 = vmax.f32 %v687_v33, %v688_v19  ;;  %v7277_v20 = vld [vmem:[#allocation9_spill] sm:$0xff] }
  0x9f   :  { %v696_v45 = vmax.f32 %v4465_v11, %v695_v18  ;;  %v712_v44 = vmax.f32 %v710_v48, %v711_v15  ;;  %7274 = vst [vmem:[#allocation7_spill] sm:$0xff] %v4581_v0  ;;  %v719_v62 = vsel %vm26_vm0, %v4564_v23, -inf  ;;  %v720_v13 = vsel %vm26_vm0, %v4569_v22, -inf }
  0xa0   :  { %v704_v58 = vrot.slane %v703_v24, 4  ;;  %v4588_v35 = vadd.f32 %v568_v57, %v7275_v16  ;;  %v690_v43 = vrot.slane %v689_v17, 1  ;;  %v3103_v33 = vadd.f32 -1.0, %v603_v3  ;;  %v7280_v57 = vld [vmem:[#allocation12_spill] sm:$0xff]  ;;  %v7281_v3 = vld [vmem:[#allocation13_spill] sm:$0xff] }
  0xa1   :  { %v697_v47 = vrot.slane %v696_v45, 2  ;;  %v713_v7 = vrot.slane %v712_v44, 4  ;;  %v4591_v11 = vadd.f32 %v569_v61, %v7277_v20  ;;  %v721_v49 = vmax.f32 %v719_v62, %v720_v13 }
  0xa2   :  { %7276 = vst [vmem:[#allocation8_spill] sm:$0xff] %v4588_v35  ;;  %v705_v34 = vmax.f32 %v703_v24, %v704_v58  ;;  %v606_v4 = vmul.f32 %v3102_v1, %v3102_v1  ;;  %v728_v2 = vsub.f32 %v7279_v60, %v4439_v31  ;;  %v691_v26 = vmax.f32 %v689_v17, %v690_v43  ;;  %v7282_v24 = vld [vmem:[#allocation14_spill] sm:$0xff]  ;;  %v7284_v17 = vld [vmem:[#allocation16_spill] sm:$0xff] }
  0xa3   :  { %7278 = vst [vmem:[#allocation9_spill] sm:$0xff] %v4591_v11  ;;  %v698_v42 = vmax.f32 %v696_v45, %v697_v47  ;;  %v714_v10 = vmax.f32 %v712_v44, %v713_v7  ;;  %v722_v18 = vrot.slane %v721_v49, 4  ;;  %v729_v51 = vsub.f32 %v7280_v57, %v4439_v31  ;;  %v7283_v44 = vld [vmem:[#allocation15_spill] sm:$0xff]  ;;  %v7285_v31 = vld [vmem:[#allocation17_spill] sm:$0xff]  ;;  %v7286_v47 = vld [vmem:[#allocation18_spill] sm:$0xff] }
  0xa4   :  { %v706_v19 = vrot.slane %v705_v34, 2  ;;  %v730_v61 = vsub.f32 %v7281_v3, %v4455_v55  ;;  %v731_v53 = vsub.f32 %v7282_v24, %v4455_v55  ;;  %v732_v58 = vsub.f32 %v7283_v44, %v4457_v63 }
  0xa5   :  { %v699_v48 = vrot.slane %v698_v42, 1  ;;  %v715_v15 = vrot.slane %v714_v10, 2  ;;  %v723_v45 = vmax.f32 %v721_v49, %v722_v18  ;;  %v733_v62 = vsub.f32 %v7284_v17, %v4457_v63 }
  0xa6   :  { %v707_v1 = vmax.f32 %v705_v34, %v706_v19  ;;  %v734_v43 = vsub.f32 %v7285_v31, %v4463_v12  ;;  %v735_v7 = vsub.f32 %v7286_v47, %v4463_v12  ;;  %v736_v55 = vsub.f32 %v4410_v54, %v691_v26 }
  0xa7   :  { %v700_v13 = vmax.f32 %v698_v42, %v699_v48  ;;  %v716_v16 = vmax.f32 %v714_v10, %v715_v15  ;;  %v724_v60 = vrot.slane %v723_v45, 2  ;;  %v737_v34 = vsub.f32 %v4416_v8, %v691_v26 }
  0xa8   :  { %v708_v20 = vrot.slane %v707_v1, 1  ;;  %v746_v63 = vmul.f32 1.442695, %v728_v2  ;;  %v748_v57 = vmul.f32 1.442695, %v729_v51 }
  0xa9   :  { %v717_v49 = vrot.slane %v716_v16, 1  ;;  %v738_v19 = vsub.f32 %v4421_v5, %v700_v13  ;;  %v739_v18 = vsub.f32 %v4428_v50, %v700_v13  ;;  %v725_v10 = vmax.f32 %v723_v45, %v724_v60  ;;  %v4647_v13 = vld [vmem:[%s7142_s0 + $0x1d0] sm:$0xff] }
  0xaa   :  { %v709_v42 = vmax.f32 %v707_v1, %v708_v20  ;;  %v750_v48 = vmul.f32 1.442695, %v730_v61  ;;  %3391 = vpow2.f32 %v746_v63  ;;  %v752_v3 = vmul.f32 1.442695, %v731_v53  ;;  %v7287_v53 = vld [vmem:[#allocation10_spill] sm:$0xff]  ;;  %7293 = vst [vmem:[#allocation16_spill] sm:$0xff] %v4647_v13 }
  0xab   :  { %v718_v15 = vmax.f32 %v716_v16, %v717_v49  ;;  %v754_v12 = vmul.f32 1.442695, %v732_v58  ;;  %v726_v24 = vrot.slane %v725_v10, 1  ;;  %3393 = vpow2.f32 %v748_v57 }
  0xac   :  { %v740_v44 = vsub.f32 %v4448_v6, %v709_v42  ;;  %v741_v54 = vsub.f32 %v4533_v39, %v709_v42  ;;  %3395 = vpow2.f32 %v750_v48  ;;  %v756_v50 = vmul.f32 1.442695, %v733_v62  ;;  %v4625_v39 = vld [vmem:[%s7142_s0 + $0x1b0] sm:$0xff] }
  0xad   :  { %v742_v8 = vsub.f32 %v4545_v30, %v718_v15  ;;  %v743_v5 = vsub.f32 %v4550_v32, %v718_v15  ;;  %v727_v2 = vmax.f32 %v725_v10, %v726_v24  ;;  %3397 = vpow2.f32 %v752_v3  ;;  %7289 = vst [vmem:[#allocation12_spill] sm:$0xff] %v4625_v39 }
  0xae   :  { %v758_v26 = vmul.f32 1.442695, %v734_v43  ;;  %v760_v51 = vmul.f32 1.442695, %v735_v7  ;;  %v4617_v61 = vmul.f32 %v3103_v33, %v3103_v33  ;;  %v4620_v1 = vadd.f32 %v606_v4, %v7287_v53  ;;  %v4631_v33 = vld [vmem:[%s7142_s0 + $0x1b8] sm:$0xff]  ;;  %v4636_v4 = vld [vmem:[%s7142_s0 + $0x1c0] sm:$0xff] }
  0xaf   :  { %3399 = vpow2.f32 %v754_v12  ;;  %v762_v6 = vmul.f32 1.442695, %v736_v55  ;;  %v744_v30 = vsub.f32 %v4564_v23, %v727_v2  ;;  %v764_v32 = vmul.f32 1.442695, %v737_v34  ;;  %7290 = vst [vmem:[#allocation13_spill] sm:$0xff] %v4631_v33  ;;  %7291 = vst [vmem:[#allocation14_spill] sm:$0xff] %v4636_v4 }
  0xb0   :  { %7288 = vst [vmem:[#allocation11_spill] sm:$0xff] %v4620_v1  ;;  %3401 = vpow2.f32 %v756_v50  ;;  %v766_v45 = vmul.f32 1.442695, %v738_v19  ;;  %v745_v58 = vsub.f32 %v4569_v22, %v727_v2  ;;  %v768_v17 = vmul.f32 1.442695, %v739_v18  ;;  %v4642_v23 = vld [vmem:[%s7142_s0 + $0x1c8] sm:$0xff] }
  0xb1   :  { %3403 = vpow2.f32 %v758_v26  ;;  %v770_v62 = vmul.f32 1.442695, %v740_v44  ;;  %7292 = vst [vmem:[#allocation15_spill] sm:$0xff] %v4642_v23  ;;  %v772_v16 = vmul.f32 1.442695, %v741_v54  ;;  %v4652_v22 = vld [vmem:[%s7142_s0 + $0x1d8] sm:$0xff] }
  0xb2   :  { %3405 = vpow2.f32 %v760_v51  ;;  %v774_v31 = vmul.f32 1.442695, %v742_v8  ;;  %v776_v43 = vmul.f32 1.442695, %v743_v5  ;;  %7294 = vst [vmem:[#allocation17_spill] sm:$0xff] %v4652_v22  ;;  %v967_v47 = vsel %vm26_vm0, %v4625_v39, -inf }
  0xb3   :  { %3407 = vpow2.f32 %v762_v6  ;;  %v968_v7 = vsel %vm26_vm0, %v4631_v33, -inf  ;;  %v976_v20 = vsel %vm26_vm0, %v4636_v4, -inf  ;;  %v778_v60 = vmul.f32 1.442695, %v744_v30  ;;  %v4663_v55 = vld [vmem:[%s7142_s0 + $0x1e0] sm:$0xff] }
  0xb4   :  { %3409 = vpow2.f32 %v764_v32  ;;  %7295 = vst [vmem:[#allocation18_spill] sm:$0xff] %v4663_v55  ;;  %v969_v34 = vmax.f32 %v967_v47, %v968_v7  ;;  %v977_v49 = vsel %vm26_vm0, %v4642_v23, -inf  ;;  %v4667_v19 = vpop.eup %3391  ;;  %v780_v18 = vmul.f32 1.442695, %v745_v58  ;;  %v4702_v58 = vld [vmem:[%s7142_s0 + $0x1e8] sm:$0xff] }
  0xb5   :  { %3411 = vpow2.f32 %v766_v45  ;;  %v978_v63 = vmax.f32 %v976_v20, %v977_v49  ;;  %v985_v42 = vsel %vm26_vm0, %v4647_v13, -inf  ;;  %v4671_v10 = vpop.eup %3393  ;;  %v782_v57 = vsel %vm26_vm0, %v4667_v19, 0.0  ;;  %7296 = vst [vmem:[#allocation10_spill] sm:$0xff] %v4702_v58 }
  0xb6   :  { %3413 = vpow2.f32 %v768_v17  ;;  %v970_v48 = vrot.slane %v969_v34, 4  ;;  %v986_v15 = vsel %vm26_vm0, %v4652_v22, -inf  ;;  %v4677_v3 = vpop.eup %3395  ;;  %v783_v12 = vsel %vm26_vm0, %v4671_v10, 0.0 }
  0xb7   :  { %3415 = vpow2.f32 %v770_v62  ;;  %v979_v24 = vrot.slane %v978_v63, 4  ;;  %v4683_v44 = vsel %vm26_vm0, %v4663_v55, -inf  ;;  %v4685_v54 = vpop.eup %3397  ;;  %v784_v8 = vadd.f32 %v783_v12, %v782_v57 }
  0xb8   :  { %3417 = vpow2.f32 %v772_v16  ;;  %v791_v5 = vsel %vm26_vm0, %v4677_v3, 0.0  ;;  %v971_v50 = vmax.f32 %v969_v34, %v970_v48  ;;  %v792_v26 = vsel %vm26_vm0, %v4685_v54, 0.0 }
  0xb9   :  { %v4689_v2 = vpop.eup %3399  ;;  %3419 = vpow2.f32 %v774_v31  ;;  %v980_v51 = vmax.f32 %v978_v63, %v979_v24  ;;  %v4693_v53 = vmax.f32 %v985_v42, %v986_v15  ;;  %v785_v30 = vrot.slane %v784_v8, 4 }
  0xba   :  { %v4695_v6 = vpop.eup %3401  ;;  %3421 = vpow2.f32 %v776_v43  ;;  %v793_v32 = vadd.f32 %v792_v26, %v791_v5  ;;  %v800_v45 = vsel %vm26_vm0, %v4689_v2, 0.0  ;;  %v972_v16 = vrot.slane %v971_v50, 2 }
  0xbb   :  { %v4704_v17 = vpop.eup %3403  ;;  %3423 = vpow2.f32 %v778_v60  ;;  %v801_v62 = vsel %vm26_vm0, %v4695_v6, 0.0  ;;  %v981_v31 = vrot.slane %v980_v51, 2  ;;  %v786_v43 = vadd.f32 %v785_v30, %v784_v8 }
  0xbc   :  { %v4708_v47 = vpop.eup %3405  ;;  %3425 = vpow2.f32 %v780_v18  ;;  %v794_v7 = vrot.slane %v793_v32, 4  ;;  %v802_v20 = vadd.f32 %v801_v62, %v800_v45  ;;  %v809_v49 = vsel %vm26_vm0, %v4704_v17, 0.0 }
  0xbd   :  { %v4710_v34 = vpop.eup %3407  ;;  %v810_v63 = vsel %vm26_vm0, %v4708_v47, 0.0  ;;  %v4716_v60 = vmax.f32 %v971_v50, %v972_v16  ;;  %v4720_v42 = vsel %vm26_vm0, %v4702_v58, -inf  ;;  %v787_v18 = vrot.slane %v786_v43, 2 }
  0xbe   :  { %v4722_v57 = vpop.eup %3409  ;;  %v795_v48 = vadd.f32 %v794_v7, %v793_v32  ;;  %v803_v15 = vrot.slane %v802_v20, 4  ;;  %v811_v12 = vadd.f32 %v810_v63, %v809_v49  ;;  %v818_v8 = vsel %vm26_vm0, %v4710_v34, 0.0 }
  0xbf   :  { %v4724_v24 = vpop.eup %3411  ;;  %v819_v5 = vsel %vm26_vm0, %v4722_v57, 0.0  ;;  %v4730_v50 = vmax.f32 %v980_v51, %v981_v31  ;;  %v988_v26 = vrot.slane %v4693_v53, 4  ;;  %v788_v45 = vadd.f32 %v787_v18, %v786_v43 }
  0xc0   :  { %v4733_v30 = vpop.eup %3413  ;;  %v796_v62 = vrot.slane %v795_v48, 2  ;;  %v804_v16 = vadd.f32 %v803_v15, %v802_v20  ;;  %v812_v32 = vrot.slane %v811_v12, 4  ;;  %v820_v49 = vadd.f32 %v819_v5, %v818_v8 }
  0xc1   :  { %v4735_v7 = vpop.eup %3415  ;;  %v827_v63 = vsel %vm26_vm0, %v4724_v24, 0.0  ;;  %v828_v58 = vsel %vm26_vm0, %v4733_v30, 0.0  ;;  %v789_v55 = vrot.slane %v788_v45, 1 }
  0xc2   :  { %v4742_v31 = vpop.eup %3417  ;;  %v797_v22 = vadd.f32 %v796_v62, %v795_v48  ;;  %v805_v13 = vrot.slane %v804_v16, 2  ;;  %v813_v43 = vadd.f32 %v812_v32, %v811_v12  ;;  %v821_v20 = vrot.slane %v820_v49, 4 }
  0xc3   :  { %v4744_v18 = vpop.eup %3419  ;;  %v829_v15 = vadd.f32 %v828_v58, %v827_v63  ;;  %v836_v8 = vsel %vm26_vm0, %v4735_v7, 0.0  ;;  %v837_v5 = vsel %vm26_vm0, %v4742_v31, 0.0  ;;  %v790_v39 = vadd.f32 %v789_v55, %v788_v45 }
  0xc4   :  { %v4750_v23 = vpop.eup %3421  ;;  %v798_v4 = vrot.slane %v797_v22, 1  ;;  %v806_v51 = vadd.f32 %v805_v13, %v804_v16  ;;  %v814_v33 = vrot.slane %v813_v43, 2  ;;  %v822_v12 = vadd.f32 %v821_v20, %v820_v49 }
  0xc5   :  { %v4753_v48 = vpop.eup %3423  ;;  %v830_v62 = vrot.slane %v829_v15, 4  ;;  %v838_v32 = vadd.f32 %v837_v5, %v836_v8  ;;  %v845_v58 = vsel %vm26_vm0, %v4744_v18, 0.0  ;;  %v846_v0 = vsel %vm26_vm0, %v4750_v23, 0.0 }
  0xc6   :  { %v4757_v63 = vpop.eup %3425  ;;  %v807_v11 = vrot.slane %v806_v51, 1  ;;  %v815_v35 = vadd.f32 %v814_v33, %v813_v43  ;;  %v823_v13 = vrot.slane %v822_v12, 2  ;;  %v847_v1 = vadd.f32 %v846_v0, %v845_v58 }
  0xc7   :  { %v831_v16 = vadd.f32 %v830_v62, %v829_v15  ;;  %v839_v36 = vrot.slane %v838_v32, 4  ;;  %v799_v29 = vadd.f32 %v798_v4, %v797_v22  ;;  %v854_v49 = vsel %vm26_vm0, %v4753_v48, 0.0 }
  0xc8   :  { %v816_v56 = vrot.slane %v815_v35, 1  ;;  %v855_v20 = vsel %vm26_vm0, %v4757_v63, 0.0  ;;  %v824_v8 = vadd.f32 %v823_v13, %v822_v12  ;;  %v848_v45 = vrot.slane %v847_v1, 4 }
  0xc9   :  { %v832_v5 = vrot.slane %v831_v16, 2  ;;  %v840_v55 = vadd.f32 %v839_v36, %v838_v32  ;;  %v808_v33 = vadd.f32 %v807_v11, %v806_v51  ;;  %v856_v40 = vadd.f32 %v855_v20, %v854_v49  ;;  %v4781_v51 = vld [vmem:[%s7142_s0 + $0x200] sm:$0xff]  ;;  %v4788_v20 = vld [vmem:[%s7142_s0 + $0x208] sm:$0xff] }
  0xca   :  { %v817_v43 = vadd.f32 %v816_v56, %v815_v35  ;;  %3427 = vrcp.f32 %v790_v39  ;;  %v825_v25 = vrot.slane %v824_v8, 1  ;;  %v849_v0 = vadd.f32 %v848_v45, %v847_v1  ;;  %v4771_v56 = vld [vmem:[%s7142_s0 + $0x1f0] sm:$0xff] }
  0xcb   :  { %v833_v15 = vadd.f32 %v832_v5, %v831_v16  ;;  %v841_v62 = vrot.slane %v840_v55, 2  ;;  %v857_v4 = vrot.slane %v856_v40, 4  ;;  %3429 = vrcp.f32 %v799_v29 }
  0xcc   :  { %v989_v22 = vmax.f32 %v4693_v53, %v988_v26  ;;  %v996_v58 = vmax.f32 %v4683_v44, %v4720_v42  ;;  %v826_v28 = vadd.f32 %v825_v25, %v824_v8  ;;  %v850_v36 = vrot.slane %v849_v0, 2  ;;  %v4776_v25 = vld [vmem:[%s7142_s0 + $0x1f8] sm:$0xff] }
  0xcd   :  { %v834_v12 = vrot.slane %v833_v15, 1  ;;  %v842_v13 = vadd.f32 %v841_v62, %v840_v55  ;;  %v858_v32 = vadd.f32 %v857_v4, %v856_v40  ;;  %3431 = vrcp.f32 %v808_v33 }
  0xce   :  { %v990_v35 = vrot.slane %v989_v22, 2  ;;  %v997_v11 = vrot.slane %v996_v58, 4  ;;  %v851_v39 = vadd.f32 %v850_v36, %v849_v0  ;;  %3433 = vrcp.f32 %v817_v43 }
  0xcf   :  { %v835_v1 = vadd.f32 %v834_v12, %v833_v15  ;;  %v843_v29 = vrot.slane %v842_v13, 1  ;;  %v859_v44 = vrot.slane %v858_v32, 2  ;;  %3435 = vrcp.f32 %v826_v28 }
  0xd0   :  { %v991_v40 = vmax.f32 %v989_v22, %v990_v35  ;;  %v998_v53 = vmax.f32 %v996_v58, %v997_v11  ;;  %v852_v26 = vrot.slane %v851_v39, 1  ;;  %v1003_v16 = vsel %vm26_vm0, %v4771_v56, -inf }
  0xd1   :  { %v844_v42 = vadd.f32 %v843_v29, %v842_v13  ;;  %3437 = vrcp.f32 %v835_v1  ;;  %v860_v49 = vadd.f32 %v859_v44, %v858_v32  ;;  %v1004_v5 = vsel %vm26_vm0, %v4776_v25, -inf }
  0xd2   :  { %v992_v28 = vrot.slane %v991_v40, 1  ;;  %v999_v8 = vrot.slane %v998_v53, 2  ;;  %v4794_v55 = vadd.f32 %v4617_v61, %v4434_v14  ;;  %v853_v45 = vadd.f32 %v852_v26, %v851_v39  ;;  %v4810_v61 = vld [vmem:[%s7142_s0 + $0x210] sm:$0xff] }
  0xd3   :  { %3439 = vrcp.f32 %v844_v42  ;;  %v4796_v33 = vmax.f32 %v1003_v16, %v1004_v5  ;;  %v861_v15 = vrot.slane %v860_v49, 1  ;;  %v7297_v62 = vrot.slane %v4716_v60, 1 }
  0xd4   :  { %v3428_v43 = vpop.eup %3427  ;;  %v1000_v4 = vmax.f32 %v998_v53, %v999_v8  ;;  %v1012_v22 = vsel %vm26_vm0, %v4781_v51, -inf  ;;  %3441 = vrcp.f32 %v853_v45  ;;  %v1013_v12 = vsel %vm26_vm0, %v4788_v20, -inf }
  0xd5   :  { %v4801_v0 = vmax.f32 %v4716_v60, %v7297_v62  ;;  %v872_v58 = vmul.f32 %v3428_v43, %v4667_v19  ;;  %v873_v14 = vmul.f32 %v3428_v43, %v4671_v10  ;;  %v3430_v13 = vpop.eup %3429  ;;  %v862_v60 = vadd.f32 %v861_v15, %v860_v49 }
  0xd6   :  { %v7298_v36 = vrot.slane %v4730_v50, 1  ;;  %v4819_v35 = vmax.f32 %v991_v40, %v992_v28  ;;  %v1006_v19 = vrot.slane %v4796_v33, 4  ;;  %v874_v10 = vmul.f32 %v3430_v13, %v4677_v3 }
  0xd7   :  { %v875_v11 = vmul.f32 %v3430_v13, %v4685_v54  ;;  %v890_v1 = vsel %vm26_vm0, %v872_v58, 0.0  ;;  %v907_v29 = vsel %vm26_vm0, %v873_v14, 0.0  ;;  %v3432_v39 = vpop.eup %3431  ;;  %3443 = vrcp.f32 %v862_v60 }
  0xd8   :  { %v4817_v32 = vmax.f32 %v4730_v50, %v7298_v36  ;;  %v1001_v44 = vrot.slane %v1000_v4, 1  ;;  %v4826_v53 = vmax.f32 %v1012_v22, %v1013_v12  ;;  %v4830_v50 = vsel %vm26_vm0, %v4810_v61, -inf  ;;  %v3434_v40 = vpop.eup %3433 }
  0xd9   :  { %v876_v42 = vmul.f32 %v3432_v39, %v4689_v2  ;;  %v877_v3 = vmul.f32 %v3432_v39, %v4695_v6  ;;  %v891_v54 = vsel %vm26_vm0, %v874_v10, 0.0  ;;  %v908_v26 = vsel %vm26_vm0, %v875_v11, 0.0  ;;  %v3436_v16 = vpop.eup %3435 }
  0xda   :  { %v878_v49 = vmul.f32 %v3434_v40, %v4704_v17  ;;  %v879_v28 = vmul.f32 %v3434_v40, %v4708_v47  ;;  %v892_v8 = vadd.f32 %v891_v54, %v890_v1  ;;  %v909_v5 = vadd.f32 %v908_v26, %v907_v29 }
  0xdb   :  { %v3438_v45 = vpop.eup %3437  ;;  %v880_v43 = vmul.f32 %v3436_v16, %v4710_v34  ;;  %v881_v15 = vmul.f32 %v3436_v16, %v4722_v57  ;;  %v893_v2 = vsel %vm26_vm0, %v876_v42, 0.0  ;;  %v910_v6 = vsel %vm26_vm0, %v877_v3, 0.0 }
  0xdc   :  { %v882_v62 = vmul.f32 %v3438_v45, %v4724_v24  ;;  %v883_v22 = vmul.f32 %v3438_v45, %v4733_v30  ;;  %v894_v12 = vadd.f32 %v893_v2, %v892_v8  ;;  %v895_v17 = vsel %vm26_vm0, %v878_v49, 0.0 }
  0xdd   :  { %v3440_v13 = vpop.eup %3439  ;;  %v897_v47 = vsel %vm26_vm0, %v880_v43, 0.0  ;;  %v911_v60 = vadd.f32 %v910_v6, %v909_v5  ;;  %v912_v36 = vsel %vm26_vm0, %v879_v28, 0.0  ;;  %v4848_v34 = vadd.f32 %v872_v58, %v4487_v9 }
  0xde   :  { %v884_v57 = vmul.f32 %v3440_v13, %v4735_v7  ;;  %v885_v1 = vmul.f32 %v3440_v13, %v4742_v31  ;;  %v896_v29 = vadd.f32 %v895_v17, %v894_v12  ;;  %v914_v24 = vsel %vm26_vm0, %v881_v15, 0.0  ;;  %v3442_v30 = vpop.eup %3441 }
  0xdf   :  { %7299 = vst [vmem:[#allocation20_spill] sm:$0xff] %v4848_v34  ;;  %v899_v39 = vsel %vm26_vm0, %v882_v62, 0.0  ;;  %v913_v40 = vadd.f32 %v912_v36, %v911_v60  ;;  %v4855_v54 = vadd.f32 %v873_v14, %v4494_v21  ;;  %v4857_v26 = vmax.f32 %v1000_v4, %v1001_v44  ;;  %v7316_v36 = vld [vmem:[#allocation5_spill] sm:$0xff] }
  0xe0   :  { %v886_v16 = vmul.f32 %v3442_v30, %v4744_v18  ;;  %v887_v9 = vmul.f32 %v3442_v30, %v4750_v23  ;;  %v898_v58 = vadd.f32 %v897_v47, %v896_v29  ;;  %v916_v7 = vsel %vm26_vm0, %v883_v22, 0.0  ;;  %v7314_v47 = vld [vmem:[#allocation4_spill] sm:$0xff]  ;;  %v7318_v29 = vld [vmem:[#allocation6_spill] sm:$0xff] }
  0xe1   :  { %7300 = vst [vmem:[#allocation21_spill] sm:$0xff] %v4855_v54  ;;  %v901_v31 = vsel %vm26_vm0, %v884_v57, 0.0  ;;  %v915_v8 = vadd.f32 %v914_v24, %v913_v40  ;;  %v4864_v5 = vadd.f32 %v874_v10, %v4501_v41  ;;  %v4867_v45 = vadd.f32 %v875_v11, %v4504_v59  ;;  %v3444_v21 = vpop.eup %3443  ;;  %v4927_v30 = vld [vmem:[%s7142_s0 + $0x230] sm:$0xff] }
  0xe2   :  { %v900_v14 = vadd.f32 %v899_v39, %v898_v58  ;;  %v918_v4 = vsel %vm26_vm0, %v885_v1, 0.0  ;;  %v4871_v18 = vadd.f32 %v876_v42, %v4508_v27  ;;  %v4874_v23 = vadd.f32 %v877_v3, %v4511_v38  ;;  %v4896_v3 = vld [vmem:[%s7142_s0 + $0x218] sm:$0xff] }
  0xe3   :  { %7301 = vst [vmem:[#allocation22_spill] sm:$0xff] %v4864_v5  ;;  %7302 = vst [vmem:[#allocation23_spill] sm:$0xff] %v4867_v45  ;;  %v888_v44 = vmul.f32 %v3444_v21, %v4753_v48  ;;  %v889_v2 = vmul.f32 %v3444_v21, %v4757_v63  ;;  %v903_v41 = vsel %vm26_vm0, %v886_v16, 0.0  ;;  %v917_v10 = vadd.f32 %v916_v7, %v915_v8  ;;  %v7308_v48 = vld [vmem:[#allocation19_spill] sm:$0xff]  ;;  %v4932_v39 = vld [vmem:[%s7142_s0 + $0x238] sm:$0xff] }
  0xe4   :  { %7303 = vst [vmem:[#allocation24_spill] sm:$0xff] %v4871_v18  ;;  %7304 = vst [vmem:[#allocation25_spill] sm:$0xff] %v4874_v23  ;;  %v902_v6 = vadd.f32 %v901_v31, %v900_v14  ;;  %v920_v59 = vsel %vm26_vm0, %v887_v9, 0.0  ;;  %v4881_v11 = vadd.f32 %v878_v49, %v4518_v37  ;;  %v4884_v12 = vadd.f32 %v879_v28, %v4521_v46  ;;  %v7310_v49 = vld [vmem:[#allocation2_spill] sm:$0xff]  ;;  %v7312_v28 = vld [vmem:[#allocation3_spill] sm:$0xff] }
  0xe5   :  { %v905_v27 = vsel %vm26_vm0, %v888_v44, 0.0  ;;  %v919_v38 = vadd.f32 %v918_v4, %v917_v10  ;;  %v4888_v42 = vadd.f32 %v880_v43, %v4525_v52  ;;  %v4891_v63 = vadd.f32 %v881_v15, %v7308_v48  ;;  %v4908_v52 = vld [vmem:[%s7142_s0 + $0x220] sm:$0xff]  ;;  %v4913_v43 = vld [vmem:[%s7142_s0 + $0x228] sm:$0xff] }
  0xe6   :  { %7305 = vst [vmem:[#allocation26_spill] sm:$0xff] %v4881_v11  ;;  %7306 = vst [vmem:[#allocation27_spill] sm:$0xff] %v4884_v12  ;;  %v904_v17 = vadd.f32 %v903_v41, %v902_v6  ;;  %v922_v37 = vsel %vm26_vm0, %v889_v2, 0.0  ;;  %v4900_v46 = vadd.f32 %v882_v62, %v7310_v49  ;;  %v4903_v13 = vadd.f32 %v883_v22, %v7312_v28  ;;  %v7324_v28 = vld [vmem:[#allocation9_spill] sm:$0xff] }
  0xe7   :  { %7307 = vst [vmem:[#allocation28_spill] sm:$0xff] %v4888_v42  ;;  %7309 = vst [vmem:[#allocation19_spill] sm:$0xff] %v4891_v63  ;;  %v921_v15 = vadd.f32 %v920_v59, %v919_v38  ;;  %v4916_v60 = vadd.f32 %v884_v57, %v7314_v47  ;;  %v4919_v62 = vadd.f32 %v885_v1, %v7316_v36  ;;  %v1015_v1 = vrot.slane %v4826_v53, 4  ;;  %v7320_v38 = vld [vmem:[#allocation7_spill] sm:$0xff] }
  0xe8   :  { %7311 = vst [vmem:[#allocation2_spill] sm:$0xff] %v4900_v46  ;;  %7313 = vst [vmem:[#allocation3_spill] sm:$0xff] %v4903_v13  ;;  %v4922_v22 = vadd.f32 %v886_v16, %v7318_v29  ;;  %v906_v24 = vadd.f32 %v905_v27, %v904_v17  ;;  %v1007_v57 = vmax.f32 %v4796_v33, %v1006_v19  ;;  %v1022_v40 = vsel %vm26_vm0, %v4896_v3, -inf  ;;  %v7322_v17 = vld [vmem:[#allocation8_spill] sm:$0xff] }
  0xe9   :  { %7315 = vst [vmem:[#allocation4_spill] sm:$0xff] %v4916_v60  ;;  %7317 = vst [vmem:[#allocation5_spill] sm:$0xff] %v4919_v62  ;;  %v923_v16 = vadd.f32 %v922_v37, %v921_v15  ;;  %v1023_v58 = vmax.f32 %v4830_v50, %v1022_v40  ;;  %v1030_v7 = vsel %vm26_vm0, %v4908_v52, -inf  ;;  %v1031_v31 = vsel %vm26_vm0, %v4913_v43, -inf }
  0xea   :  { %7319 = vst [vmem:[#allocation6_spill] sm:$0xff] %v4922_v22  ;;  %v3122_v8 = vadd.f32 -1.0, %v906_v24  ;;  %v1008_v21 = vrot.slane %v1007_v57, 2  ;;  %v1016_v14 = vmax.f32 %v4826_v53, %v1015_v1  ;;  %v1032_v4 = vmax.f32 %v1030_v7, %v1031_v31  ;;  %v7327_v7 = vld [vmem:[#allocation11_spill] sm:$0xff] }
  0xeb   :  { %v3123_v33 = vadd.f32 -1.0, %v923_v16  ;;  %v1024_v19 = vrot.slane %v1023_v58, 4  ;;  %v1039_v41 = vsel %vm26_vm0, %v4927_v30, -inf  ;;  %v1040_v10 = vsel %vm26_vm0, %v4932_v39, -inf }
  0xec   :  { %v926_v50 = vmul.f32 %v3122_v8, %v3122_v8  ;;  %v1009_v6 = vmax.f32 %v1007_v57, %v1008_v21  ;;  %v1017_v59 = vrot.slane %v1016_v14, 2  ;;  %v1033_v27 = vrot.slane %v1032_v4, 4  ;;  %v7326_v57 = vld [vmem:[#allocation12_spill] sm:$0xff] }
  0xed   :  { %v4951_v48 = vadd.f32 %v887_v9, %v7320_v38  ;;  %v4954_v37 = vadd.f32 %v888_v44, %v7322_v17  ;;  %v1025_v53 = vmax.f32 %v1023_v58, %v1024_v19  ;;  %v1041_v49 = vmax.f32 %v1039_v41, %v1040_v10  ;;  %v7330_v10 = vld [vmem:[#allocation15_spill] sm:$0xff]  ;;  %v7332_v17 = vld [vmem:[#allocation17_spill] sm:$0xff] }
  0xee   :  { %v4957_v15 = vadd.f32 %v889_v2, %v7324_v28  ;;  %v1010_v47 = vrot.slane %v1009_v6, 1  ;;  %v1018_v36 = vmax.f32 %v1016_v14, %v1017_v59  ;;  %v1034_v29 = vmax.f32 %v1032_v4, %v1033_v27  ;;  %v7328_v2 = vld [vmem:[#allocation13_spill] sm:$0xff]  ;;  %v7329_v14 = vld [vmem:[#allocation14_spill] sm:$0xff]  ;;  %v7331_v27 = vld [vmem:[#allocation16_spill] sm:$0xff] }
  0xef   :  { %7321 = vst [vmem:[#allocation7_spill] sm:$0xff] %v4951_v48  ;;  %7323 = vst [vmem:[#allocation8_spill] sm:$0xff] %v4954_v37  ;;  %v927_v24 = vmul.f32 %v3123_v33, %v3123_v33  ;;  %v1026_v1 = vrot.slane %v1025_v53, 2  ;;  %v1042_v40 = vrot.slane %v1041_v49, 4  ;;  %v1048_v16 = vsub.f32 %v7326_v57, %v4801_v0 }
  0xf0   :  { %7325 = vst [vmem:[#allocation9_spill] sm:$0xff] %v4957_v15  ;;  %v4962_v9 = vadd.f32 %v926_v50, %v7327_v7  ;;  %v1011_v31 = vmax.f32 %v1009_v6, %v1010_v47  ;;  %v1019_v44 = vrot.slane %v1018_v36, 1  ;;  %v1035_v8 = vrot.slane %v1034_v29, 2  ;;  %v7334_v47 = vld [vmem:[#allocation10_spill] sm:$0xff] }
  0xf1   :  { %v1027_v58 = vmax.f32 %v1025_v53, %v1026_v1  ;;  %v1043_v21 = vmax.f32 %v1041_v49, %v1042_v40  ;;  %v1049_v19 = vsub.f32 %v7328_v2, %v4801_v0  ;;  %v1050_v4 = vsub.f32 %v7329_v14, %v4817_v32  ;;  %v7333_v49 = vld [vmem:[#allocation18_spill] sm:$0xff] }
  0xf2   :  { %v1020_v33 = vmax.f32 %v1018_v36, %v1019_v44  ;;  %v1036_v41 = vmax.f32 %v1034_v29, %v1035_v8  ;;  %v1051_v59 = vsub.f32 %v7330_v10, %v4817_v32  ;;  %v1052_v50 = vsub.f32 %v7331_v27, %v4819_v35 }
  0xf3   :  { %v1028_v38 = vrot.slane %v1027_v58, 1  ;;  %v1044_v6 = vrot.slane %v1043_v21, 2  ;;  %v1053_v53 = vsub.f32 %v7332_v17, %v4819_v35  ;;  %v1054_v28 = vsub.f32 %v7333_v49, %v4857_v26 }
  0xf4   :  { %v1037_v0 = vrot.slane %v1036_v41, 1  ;;  %v1055_v1 = vsub.f32 %v7334_v47, %v4857_v26  ;;  %v1056_v36 = vsub.f32 %v4771_v56, %v1011_v31  ;;  %v1057_v29 = vsub.f32 %v4776_v25, %v1011_v31 }
  0xf5   :  { %v1029_v32 = vmax.f32 %v1027_v58, %v1028_v38  ;;  %v1045_v40 = vmax.f32 %v1043_v21, %v1044_v6  ;;  %v1066_v57 = vmul.f32 1.442695, %v1048_v16  ;;  %v1068_v7 = vmul.f32 1.442695, %v1049_v19 }
  0xf6   :  { %v1038_v44 = vmax.f32 %v1036_v41, %v1037_v0  ;;  %v1058_v8 = vsub.f32 %v4781_v51, %v1020_v33  ;;  %v1070_v2 = vmul.f32 1.442695, %v1050_v4  ;;  %v1072_v35 = vmul.f32 1.442695, %v1051_v59  ;;  %v5009_v41 = vld [vmem:[%s7142_s0 + $0x258] sm:$0xff]  ;;  %v5014_v59 = vld [vmem:[%s7142_s0 + $0x260] sm:$0xff] }
  0xf7   :  { %v1046_v14 = vrot.slane %v1045_v40, 1  ;;  %v1059_v10 = vsub.f32 %v4788_v20, %v1020_v33  ;;  %3445 = vpow2.f32 %v1066_v57  ;;  %v1074_v27 = vmul.f32 1.442695, %v1052_v50  ;;  %v5019_v50 = vld [vmem:[%s7142_s0 + $0x268] sm:$0xff] }
  0xf8   :  { %v1060_v26 = vsub.f32 %v4810_v61, %v1029_v32  ;;  %v1061_v56 = vsub.f32 %v4896_v3, %v1029_v32  ;;  %3447 = vpow2.f32 %v1068_v7  ;;  %v1076_v25 = vmul.f32 1.442695, %v1053_v53  ;;  %v4992_v61 = vld [vmem:[%s7142_s0 + $0x240] sm:$0xff]  ;;  %v4997_v3 = vld [vmem:[%s7142_s0 + $0x248] sm:$0xff]  ;;  %v5043_v7 = vld [vmem:[%s7142_s0 + $0x278] sm:$0xff] }
  0xf9   :  { %v1047_v31 = vmax.f32 %v1045_v40, %v1046_v14  ;;  %v1062_v16 = vsub.f32 %v4908_v52, %v1038_v44  ;;  %3449 = vpow2.f32 %v1070_v2  ;;  %v1078_v58 = vmul.f32 1.442695, %v1054_v28  ;;  %v5002_v52 = vld [vmem:[%s7142_s0 + $0x250] sm:$0xff] }
  0xfa   :  { %v4986_v51 = vadd.f32 %v927_v24, %v4794_v55  ;;  %v1063_v21 = vsub.f32 %v4913_v43, %v1038_v44  ;;  %3451 = vpow2.f32 %v1072_v35  ;;  %v1080_v20 = vmul.f32 1.442695, %v1055_v1  ;;  %v5030_v28 = vld [vmem:[%s7142_s0 + $0x270] sm:$0xff] }
  0xfb   :  { %3453 = vpow2.f32 %v1074_v27  ;;  %v1082_v55 = vmul.f32 1.442695, %v1056_v36  ;;  %v1084_v43 = vmul.f32 1.442695, %v1057_v29  ;;  %v1086_v24 = vmul.f32 1.442695, %v1058_v8 }
  0xfc   :  { %v1064_v19 = vsub.f32 %v4927_v30, %v1047_v31  ;;  %v1065_v4 = vsub.f32 %v4932_v39, %v1047_v31  ;;  %3455 = vpow2.f32 %v1076_v25  ;;  %v1088_v33 = vmul.f32 1.442695, %v1059_v10 }
  0xfd   :  { %3457 = vpow2.f32 %v1078_v58  ;;  %v1090_v30 = vmul.f32 1.442695, %v1060_v26  ;;  %v1092_v39 = vmul.f32 1.442695, %v1061_v56  ;;  %v1094_v38 = vmul.f32 1.442695, %v1062_v16 }
  0xfe   :  { %3459 = vpow2.f32 %v1080_v20  ;;  %v1269_v6 = vsel %vm26_vm0, %v4992_v61, -inf  ;;  %v1270_v17 = vsel %vm26_vm0, %v4997_v3, -inf  ;;  %v1278_v53 = vsel %vm26_vm0, %v5002_v52, -inf }
  0xff   :  { %3461 = vpow2.f32 %v1082_v55  ;;  %v1096_v49 = vmul.f32 1.442695, %v1063_v21  ;;  %v1271_v0 = vmax.f32 %v1269_v6, %v1270_v17  ;;  %v1279_v47 = vsel %vm26_vm0, %v5009_v41, -inf }
 0x100   :  { %3463 = vpow2.f32 %v1084_v43  ;;  %v1280_v1 = vmax.f32 %v1278_v53, %v1279_v47  ;;  %v1287_v36 = vsel %vm26_vm0, %v5014_v59, -inf  ;;  %v1288_v29 = vsel %vm26_vm0, %v5019_v50, -inf }
 0x101   :  { %v5038_v32 = vpop.eup %3445  ;;  %3465 = vpow2.f32 %v1086_v24  ;;  %v1098_v40 = vmul.f32 1.442695, %v1064_v19  ;;  %v1100_v57 = vmul.f32 1.442695, %v1065_v4  ;;  %v1272_v44 = vrot.slane %v1271_v0, 4 }
 0x102   :  { %v5045_v8 = vpop.eup %3447  ;;  %3467 = vpow2.f32 %v1088_v33  ;;  %v1102_v2 = vsel %vm26_vm0, %v5038_v32, 0.0  ;;  %v1281_v35 = vrot.slane %v1280_v1, 4  ;;  %v1296_v14 = vsel %vm26_vm0, %v5030_v28, -inf }
 0x103   :  { %v5051_v10 = vpop.eup %3449  ;;  %3469 = vpow2.f32 %v1090_v30  ;;  %v1103_v27 = vsel %vm26_vm0, %v5045_v8, 0.0  ;;  %v1273_v26 = vmax.f32 %v1271_v0, %v1272_v44  ;;  %v1289_v56 = vmax.f32 %v1287_v36, %v1288_v29 }
 0x104   :  { %v5055_v25 = vpop.eup %3451  ;;  %3471 = vpow2.f32 %v1092_v39  ;;  %v1104_v31 = vadd.f32 %v1103_v27, %v1102_v2  ;;  %v1111_v16 = vsel %vm26_vm0, %v5051_v10, 0.0  ;;  %v1297_v58 = vsel %vm26_vm0, %v5043_v7, -inf }
 0x105   :  { %v5061_v21 = vpop.eup %3453  ;;  %3473 = vpow2.f32 %v1094_v38  ;;  %v1112_v20 = vsel %vm26_vm0, %v5055_v25, 0.0  ;;  %v1274_v55 = vrot.slane %v1273_v26, 2  ;;  %v1282_v43 = vmax.f32 %v1280_v1, %v1281_v35 }
 0x106   :  { %v5065_v24 = vpop.eup %3455  ;;  %3475 = vpow2.f32 %v1096_v49  ;;  %v1105_v19 = vrot.slane %v1104_v31, 4  ;;  %v1113_v4 = vadd.f32 %v1112_v20, %v1111_v16  ;;  %v1120_v33 = vsel %vm26_vm0, %v5061_v21, 0.0 }
 0x107   :  { %v5069_v30 = vpop.eup %3457  ;;  %3477 = vpow2.f32 %v1098_v40  ;;  %v1121_v39 = vsel %vm26_vm0, %v5065_v24, 0.0  ;;  %v5073_v38 = vmax.f32 %v1273_v26, %v1274_v55  ;;  %v1290_v6 = vrot.slane %v1289_v56, 4 }
 0x108   :  { %v5075_v17 = vpop.eup %3459  ;;  %3479 = vpow2.f32 %v1100_v57  ;;  %v1106_v53 = vadd.f32 %v1105_v19, %v1104_v31  ;;  %v1114_v0 = vrot.slane %v1113_v4, 4  ;;  %v1122_v49 = vadd.f32 %v1121_v39, %v1120_v33 }
 0x109   :  { %v5077_v47 = vpop.eup %3461  ;;  %v1129_v1 = vsel %vm26_vm0, %v5069_v30, 0.0  ;;  %v1130_v36 = vsel %vm26_vm0, %v5075_v17, 0.0  ;;  %v1283_v29 = vrot.slane %v1282_v43, 2  ;;  %v5083_v40 = vmax.f32 %v1296_v14, %v1297_v58 }
 0x10a   :  { %v5085_v44 = vpop.eup %3463  ;;  %v1107_v2 = vrot.slane %v1106_v53, 2  ;;  %v1115_v35 = vadd.f32 %v1114_v0, %v1113_v4  ;;  %v1123_v27 = vrot.slane %v1122_v49, 4  ;;  %v1131_v57 = vadd.f32 %v1130_v36, %v1129_v1 }
 0x10b   :  { %v5087_v26 = vpop.eup %3465  ;;  %v1138_v31 = vsel %vm26_vm0, %v5077_v47, 0.0  ;;  %v1139_v16 = vsel %vm26_vm0, %v5085_v44, 0.0  ;;  %v1291_v55 = vmax.f32 %v1289_v56, %v1290_v6  ;;  %v5102_v15 = vmax.f32 %v1282_v43, %v1283_v29 }
 0x10c   :  { %v5094_v19 = vpop.eup %3467  ;;  %v1108_v14 = vadd.f32 %v1107_v2, %v1106_v53  ;;  %v1116_v58 = vrot.slane %v1115_v35, 2  ;;  %v1124_v33 = vadd.f32 %v1123_v27, %v1122_v49  ;;  %v1132_v39 = vrot.slane %v1131_v57, 4 }
 0x10d   :  { %v5096_v4 = vpop.eup %3469  ;;  %v1140_v0 = vadd.f32 %v1139_v16, %v1138_v31  ;;  %v1147_v1 = vsel %vm26_vm0, %v5087_v26, 0.0  ;;  %v1148_v36 = vsel %vm26_vm0, %v5094_v19, 0.0  ;;  %v1292_v11 = vrot.slane %v1291_v55, 2 }
 0x10e   :  { %v5104_v37 = vpop.eup %3471  ;;  %v1109_v56 = vrot.slane %v1108_v14, 1  ;;  %v1117_v6 = vadd.f32 %v1116_v58, %v1115_v35  ;;  %v1125_v20 = vrot.slane %v1124_v33, 2  ;;  %v1133_v53 = vadd.f32 %v1132_v39, %v1131_v57 }
 0x10f   :  { %v5106_v2 = vpop.eup %3473  ;;  %v1141_v49 = vrot.slane %v1140_v0, 4  ;;  %v1149_v27 = vadd.f32 %v1148_v36, %v1147_v1  ;;  %v1156_v31 = vsel %vm26_vm0, %v5096_v4, 0.0  ;;  %v1157_v16 = vsel %vm26_vm0, %v5104_v37, 0.0 }
 0x110   :  { %v5112_v48 = vpop.eup %3475  ;;  %v1110_v43 = vadd.f32 %v1109_v56, %v1108_v14  ;;  %v1118_v29 = vrot.slane %v1117_v6, 1  ;;  %v1126_v22 = vadd.f32 %v1125_v20, %v1124_v33  ;;  %v1134_v62 = vrot.slane %v1133_v53, 2 }
 0x111   :  { %v5114_v60 = vpop.eup %3477  ;;  %v1142_v35 = vadd.f32 %v1141_v49, %v1140_v0  ;;  %v1150_v57 = vrot.slane %v1149_v27, 4  ;;  %v1158_v58 = vadd.f32 %v1157_v16, %v1156_v31  ;;  %v1165_v39 = vsel %vm26_vm0, %v5106_v2, 0.0 }
 0x112   :  { %v5118_v1 = vpop.eup %3479  ;;  %v1119_v36 = vadd.f32 %v1118_v29, %v1117_v6  ;;  %v1127_v13 = vrot.slane %v1126_v22, 1  ;;  %v1135_v46 = vadd.f32 %v1134_v62, %v1133_v53  ;;  %v1166_v63 = vsel %vm26_vm0, %v5112_v48, 0.0 }
 0x113   :  { %v1143_v14 = vrot.slane %v1142_v35, 2  ;;  %v1151_v56 = vadd.f32 %v1150_v57, %v1149_v27  ;;  %v1159_v20 = vrot.slane %v1158_v58, 4  ;;  %v1167_v33 = vadd.f32 %v1166_v63, %v1165_v39 }
 0x114   :  { %v1128_v42 = vadd.f32 %v1127_v13, %v1126_v22  ;;  %v1136_v12 = vrot.slane %v1135_v46, 1  ;;  %v1174_v0 = vsel %vm26_vm0, %v5114_v60, 0.0  ;;  %v1175_v49 = vsel %vm26_vm0, %v5118_v1, 0.0 }
 0x115   :  { %v1144_v31 = vadd.f32 %v1143_v14, %v1142_v35  ;;  %v1152_v16 = vrot.slane %v1151_v56, 2  ;;  %v1160_v6 = vadd.f32 %v1159_v20, %v1158_v58  ;;  %v1168_v29 = vrot.slane %v1167_v33, 4 }
 0x116   :  { %v1137_v62 = vadd.f32 %v1136_v12, %v1135_v46  ;;  %v1176_v53 = vadd.f32 %v1175_v49, %v1174_v0  ;;  %3481 = vrcp.f32 %v1110_v43  ;;  %v1293_v22 = vmax.f32 %v1291_v55, %v1292_v11  ;;  %v5130_v12 = vld [vmem:[%s7142_s0 + $0x280] sm:$0xff] }
 0x117   :  { %v1145_v23 = vrot.slane %v1144_v31, 1  ;;  %v1153_v27 = vadd.f32 %v1152_v16, %v1151_v56  ;;  %v1161_v57 = vrot.slane %v1160_v6, 2  ;;  %v1169_v63 = vadd.f32 %v1168_v29, %v1167_v33  ;;  %v5163_v29 = vld [vmem:[%s7142_s0 + $0x2a0] sm:$0xff] }
 0x118   :  { %v1177_v13 = vrot.slane %v1176_v53, 4  ;;  %3483 = vrcp.f32 %v1119_v36  ;;  %v1299_v39 = vrot.slane %v5083_v40, 4  ;;  %v7335_v46 = vrot.slane %v5073_v38, 1  ;;  %v5146_v36 = vld [vmem:[%s7142_s0 + $0x290] sm:$0xff] }
 0x119   :  { %v1146_v18 = vadd.f32 %v1145_v23, %v1144_v31  ;;  %v1154_v45 = vrot.slane %v1153_v27, 1  ;;  %v1162_v5 = vadd.f32 %v1161_v57, %v1160_v6  ;;  %v1170_v35 = vrot.slane %v1169_v63, 2 }
 0x11a   :  { %v1178_v14 = vadd.f32 %v1177_v13, %v1176_v53  ;;  %3485 = vrcp.f32 %v1128_v42  ;;  %v5135_v43 = vmax.f32 %v5073_v38, %v7335_v46  ;;  %v1300_v11 = vmax.f32 %v5083_v40, %v1299_v39  ;;  %v5141_v42 = vld [vmem:[%s7142_s0 + $0x288] sm:$0xff]  ;;  %v5151_v38 = vld [vmem:[%s7142_s0 + $0x298] sm:$0xff] }
 0x11b   :  { %v1155_v55 = vadd.f32 %v1154_v45, %v1153_v27  ;;  %v1163_v58 = vrot.slane %v1162_v5, 1  ;;  %v1171_v23 = vadd.f32 %v1170_v35, %v1169_v63  ;;  %3487 = vrcp.f32 %v1137_v62 }
 0x11c   :  { %v1179_v56 = vrot.slane %v1178_v14, 2  ;;  %3489 = vrcp.f32 %v1146_v18  ;;  %v1285_v45 = vrot.slane %v5102_v15, 1  ;;  %v1294_v40 = vrot.slane %v1293_v22, 1 }
 0x11d   :  { %v1164_v20 = vadd.f32 %v1163_v58, %v1162_v5  ;;  %v1172_v33 = vrot.slane %v1171_v23, 1  ;;  %3491 = vrcp.f32 %v1155_v55  ;;  %v1305_v0 = vsel %vm26_vm0, %v5130_v12, -inf }
 0x11e   :  { %v1180_v49 = vadd.f32 %v1179_v56, %v1178_v14  ;;  %v1301_v31 = vrot.slane %v1300_v11, 2  ;;  %v1306_v16 = vsel %vm26_vm0, %v5141_v42, -inf  ;;  %v1314_v18 = vsel %vm26_vm0, %v5146_v36, -inf  ;;  %v5181_v14 = vld [vmem:[%s7142_s0 + $0x2a8] sm:$0xff] }
 0x11f   :  { %v1173_v6 = vadd.f32 %v1172_v33, %v1171_v23  ;;  %3493 = vrcp.f32 %v1164_v20  ;;  %v1307_v5 = vmax.f32 %v1305_v0, %v1306_v16  ;;  %v1315_v62 = vsel %vm26_vm0, %v5151_v38, -inf }
 0x120   :  { %v3482_v53 = vpop.eup %3481  ;;  %v1181_v27 = vrot.slane %v1180_v49, 1  ;;  %v5168_v57 = vmax.f32 %v5102_v15, %v1285_v45  ;;  %v5170_v63 = vmax.f32 %v1293_v22, %v1294_v40  ;;  %v1316_v13 = vmax.f32 %v1314_v18, %v1315_v62 }
 0x121   :  { %3495 = vrcp.f32 %v1173_v6  ;;  %v5173_v39 = vmul.f32 %v3482_v53, %v5038_v32  ;;  %v5176_v35 = vmul.f32 %v3482_v53, %v5045_v8  ;;  %v1308_v46 = vrot.slane %v1307_v5, 4 }
 0x122   :  { %v3484_v55 = vpop.eup %3483  ;;  %v1182_v58 = vadd.f32 %v1181_v27, %v1180_v49  ;;  %v5183_v15 = vmax.f32 %v1300_v11, %v1301_v31  ;;  %v1317_v22 = vrot.slane %v1316_v13, 4  ;;  %v1323_v23 = vsel %vm26_vm0, %v5163_v29, -inf }
 0x123   :  { %v5188_v32 = vmul.f32 %v3484_v55, %v5051_v10  ;;  %v5191_v8 = vmul.f32 %v3484_v55, %v5055_v25  ;;  %v1210_v56 = vsel %vm26_vm0, %v5173_v39, 0.0  ;;  %v1227_v45 = vsel %vm26_vm0, %v5176_v35, 0.0 }
 0x124   :  { %v3486_v40 = vpop.eup %3485  ;;  %3497 = vrcp.f32 %v1182_v58  ;;  %v1309_v11 = vmax.f32 %v1307_v5, %v1308_v46  ;;  %v1318_v20 = vmax.f32 %v1316_v13, %v1317_v22  ;;  %v1324_v33 = vsel %vm26_vm0, %v5181_v14, -inf }
 0x125   :  { %v3488_v0 = vpop.eup %3487  ;;  %v5200_v10 = vmul.f32 %v3486_v40, %v5061_v21  ;;  %v5203_v25 = vmul.f32 %v3486_v40, %v5065_v24  ;;  %v1211_v49 = vsel %vm26_vm0, %v5188_v32, 0.0  ;;  %v1228_v31 = vsel %vm26_vm0, %v5191_v8, 0.0 }
 0x126   :  { %v3490_v16 = vpop.eup %3489  ;;  %v5210_v18 = vmul.f32 %v3488_v0, %v5069_v30  ;;  %v5213_v6 = vmul.f32 %v3488_v0, %v5075_v17  ;;  %v1212_v5 = vadd.f32 %v1211_v49, %v1210_v56  ;;  %v1229_v62 = vadd.f32 %v1228_v31, %v1227_v45 }
 0x127   :  { %v3492_v21 = vpop.eup %3491  ;;  %v5216_v53 = vmul.f32 %v3490_v16, %v5077_v47  ;;  %v5219_v24 = vmul.f32 %v3490_v16, %v5085_v44  ;;  %v1213_v27 = vsel %vm26_vm0, %v5200_v10, 0.0  ;;  %v1230_v13 = vsel %vm26_vm0, %v5203_v25, 0.0 }
 0x128   :  { %v5226_v30 = vmul.f32 %v3492_v21, %v5087_v26  ;;  %v5229_v17 = vmul.f32 %v3492_v21, %v5094_v19  ;;  %v1214_v46 = vadd.f32 %v1213_v27, %v1212_v5  ;;  %v1215_v47 = vsel %vm26_vm0, %v5210_v18, 0.0  ;;  %v5260_v27 = vld [vmem:[%s7142_s0 + $0x2b0] sm:$0xff] }
 0x129   :  { %v3494_v55 = vpop.eup %3493  ;;  %v1217_v44 = vsel %vm26_vm0, %v5216_v53, 0.0  ;;  %v1231_v58 = vadd.f32 %v1230_v13, %v1229_v62  ;;  %v1232_v22 = vsel %vm26_vm0, %v5213_v6, 0.0  ;;  %v1325_v56 = vmax.f32 %v1323_v23, %v1324_v33 }
 0x12a   :  { %7336 = vst [vmem:[#allocation12_spill] sm:$0xff] %v5229_v17  ;;  %v5238_v45 = vmul.f32 %v3494_v55, %v5096_v4  ;;  %v5241_v26 = vmul.f32 %v3494_v55, %v5104_v37  ;;  %v1216_v19 = vadd.f32 %v1215_v47, %v1214_v46  ;;  %v1234_v40 = vsel %vm26_vm0, %v5219_v24, 0.0 }
 0x12b   :  { %v3496_v0 = vpop.eup %3495  ;;  %v1219_v49 = vsel %vm26_vm0, %v5226_v30, 0.0  ;;  %v1233_v31 = vadd.f32 %v1232_v22, %v1231_v58  ;;  %v1310_v16 = vrot.slane %v1309_v11, 2  ;;  %v1319_v5 = vrot.slane %v1318_v20, 2 }
 0x12c   :  { %7337 = vst [vmem:[#allocation11_spill] sm:$0xff] %v5238_v45  ;;  %7338 = vst [vmem:[#allocation13_spill] sm:$0xff] %v5241_v26  ;;  %v5248_v62 = vmul.f32 %v3496_v0, %v5106_v2  ;;  %v5251_v4 = vmul.f32 %v3496_v0, %v5112_v48  ;;  %v1218_v23 = vadd.f32 %v1217_v44, %v1216_v19  ;;  %v1236_v37 = vsel %vm26_vm0, %v5229_v17, 0.0 }
 0x12d   :  { %v1221_v33 = vsel %vm26_vm0, %v5238_v45, 0.0  ;;  %v1235_v21 = vadd.f32 %v1234_v40, %v1233_v31  ;;  %v1311_v13 = vmax.f32 %v1309_v11, %v1310_v16  ;;  %v1320_v46 = vmax.f32 %v1318_v20, %v1319_v5  ;;  %v5276_v11 = vld [vmem:[%s7142_s0 + $0x2b8] sm:$0xff] }
 0x12e   :  { %7339 = vst [vmem:[#allocation14_spill] sm:$0xff] %v5248_v62  ;;  %7340 = vst [vmem:[#allocation15_spill] sm:$0xff] %v5251_v4  ;;  %v3498_v2 = vpop.eup %3497  ;;  %v1220_v47 = vadd.f32 %v1219_v49, %v1218_v23  ;;  %v1238_v48 = vsel %vm26_vm0, %v5241_v26, 0.0  ;;  %v1303_v55 = vrot.slane %v5183_v15, 1  ;;  %v1326_v44 = vrot.slane %v1325_v56, 4 }
 0x12f   :  { %v5266_v58 = vmul.f32 %v3498_v2, %v5114_v60  ;;  %v5269_v22 = vmul.f32 %v3498_v2, %v5118_v1  ;;  %v1223_v19 = vsel %vm26_vm0, %v5248_v62, 0.0  ;;  %v1237_v40 = vadd.f32 %v1236_v37, %v1235_v21  ;;  %v5283_v60 = vld [vmem:[%s7142_s0 + $0x2c0] sm:$0xff]  ;;  %v5288_v1 = vld [vmem:[%s7142_s0 + $0x2c8] sm:$0xff] }
 0x130   :  { %v1222_v20 = vadd.f32 %v1221_v33, %v1220_v47  ;;  %v1240_v0 = vsel %vm26_vm0, %v5251_v4, 0.0  ;;  %v1327_v49 = vmax.f32 %v1325_v56, %v1326_v44  ;;  %v1332_v31 = vsel %vm26_vm0, %v5260_v27, -inf }
 0x131   :  { %7341 = vst [vmem:[#allocation16_spill] sm:$0xff] %v5266_v58  ;;  %7342 = vst [vmem:[#allocation17_spill] sm:$0xff] %v5269_v22  ;;  %v1225_v16 = vsel %vm26_vm0, %v5266_v58, 0.0  ;;  %v1239_v5 = vadd.f32 %v1238_v48, %v1237_v40  ;;  %v1312_v23 = vrot.slane %v1311_v13, 1  ;;  %v1321_v37 = vrot.slane %v1320_v46, 1 }
 0x132   :  { %v1224_v33 = vadd.f32 %v1223_v19, %v1222_v20  ;;  %v1242_v21 = vsel %vm26_vm0, %v5269_v22, 0.0  ;;  %v1328_v2 = vrot.slane %v1327_v49, 2  ;;  %v1333_v47 = vsel %vm26_vm0, %v5276_v11, -inf }
 0x133   :  { %v1241_v54 = vadd.f32 %v1240_v0, %v1239_v5  ;;  %v1334_v34 = vmax.f32 %v1332_v31, %v1333_v47  ;;  %v1341_v56 = vsel %vm26_vm0, %v5283_v60, -inf  ;;  %v1342_v44 = vsel %vm26_vm0, %v5288_v1, -inf }
 0x134   :  { %v1226_v58 = vadd.f32 %v1225_v16, %v1224_v33  ;;  %v1304_v48 = vmax.f32 %v5183_v15, %v1303_v55  ;;  %v1329_v40 = vmax.f32 %v1327_v49, %v1328_v2  ;;  %v1343_v19 = vmax.f32 %v1341_v56, %v1342_v44 }
 0x135   :  { %v1243_v20 = vadd.f32 %v1242_v21, %v1241_v54  ;;  %v1313_v4 = vmax.f32 %v1311_v13, %v1312_v23  ;;  %v1322_v22 = vmax.f32 %v1320_v46, %v1321_v37  ;;  %v1335_v62 = vrot.slane %v1334_v34, 4 }
 0x136   :  { %v3142_v26 = vadd.f32 -1.0, %v1226_v58  ;;  %v1330_v45 = vrot.slane %v1329_v40, 1  ;;  %v1344_v17 = vrot.slane %v1343_v19, 4  ;;  %v1350_v0 = vsub.f32 %v4992_v61, %v5135_v43 }
 0x137   :  { %v3143_v31 = vadd.f32 -1.0, %v1243_v20  ;;  %v1336_v5 = vmax.f32 %v1334_v34, %v1335_v62  ;;  %v1351_v47 = vsub.f32 %v4997_v3, %v5135_v43  ;;  %v1352_v15 = vsub.f32 %v5002_v52, %v5168_v57 }
 0x138   :  { %v1246_v55 = vmul.f32 %v3142_v26, %v3142_v26  ;;  %v1345_v49 = vmax.f32 %v1343_v19, %v1344_v17  ;;  %v1353_v54 = vsub.f32 %v5009_v41, %v5168_v57  ;;  %v1354_v13 = vsub.f32 %v5014_v59, %v5170_v63 }
 0x139   :  { %v1247_v46 = vmul.f32 %v3143_v31, %v3143_v31  ;;  %v1331_v58 = vmax.f32 %v1329_v40, %v1330_v45  ;;  %v1337_v16 = vrot.slane %v1336_v5, 2  ;;  %v1355_v34 = vsub.f32 %v5019_v50, %v5170_v63  ;;  %v5346_v40 = vld [vmem:[%s7142_s0 + $0x2e0] sm:$0xff] }
 0x13a   :  { %v1346_v61 = vrot.slane %v1345_v49, 2  ;;  %v1356_v3 = vsub.f32 %v5030_v28, %v1304_v48  ;;  %v1357_v43 = vsub.f32 %v5043_v7, %v1304_v48  ;;  %v1358_v52 = vsub.f32 %v5130_v12, %v1313_v4  ;;  %7347 = vst [vmem:[#allocation31_spill] sm:$0xff] %v5346_v40 }
 0x13b   :  { %v5319_v17 = vadd.f32 %v1246_v55, %v4962_v9  ;;  %v1338_v41 = vmax.f32 %v1336_v5, %v1337_v16  ;;  %v1359_v57 = vsub.f32 %v5141_v42, %v1313_v4  ;;  %v1360_v59 = vsub.f32 %v5146_v36, %v1322_v22  ;;  %v5330_v9 = vld [vmem:[%s7142_s0 + $0x2d0] sm:$0xff] }
 0x13c   :  { %v5324_v45 = vadd.f32 %v1247_v46, %v4986_v51  ;;  %v1347_v26 = vmax.f32 %v1345_v49, %v1346_v61  ;;  %v1368_v50 = vmul.f32 1.442695, %v1350_v0  ;;  %v1370_v63 = vmul.f32 1.442695, %v1351_v47  ;;  %7345 = vst [vmem:[#allocation29_spill] sm:$0xff] %v5330_v9 }
 0x13d   :  { %7343 = vst [vmem:[#allocation18_spill] sm:$0xff] %v5319_v17  ;;  %v1339_v62 = vrot.slane %v1338_v41, 1  ;;  %v1361_v28 = vsub.f32 %v5151_v38, %v1322_v22  ;;  %v1372_v7 = vmul.f32 1.442695, %v1352_v15  ;;  %v1374_v23 = vmul.f32 1.442695, %v1353_v54 }
 0x13e   :  { %7344 = vst [vmem:[#allocation10_spill] sm:$0xff] %v5324_v45  ;;  %v1348_v12 = vrot.slane %v1347_v26, 1  ;;  %v1362_v42 = vsub.f32 %v5163_v29, %v1331_v58  ;;  %3499 = vpow2.f32 %v1368_v50  ;;  %v1376_v36 = vmul.f32 1.442695, %v1354_v13  ;;  %v5340_v29 = vld [vmem:[%s7142_s0 + $0x2d8] sm:$0xff]  ;;  %v5374_v54 = vld [vmem:[%s7142_s0 + $0x300] sm:$0xff] }
 0x13f   :  { %v1340_v51 = vmax.f32 %v1338_v41, %v1339_v62  ;;  %v1363_v4 = vsub.f32 %v5181_v14, %v1331_v58  ;;  %3501 = vpow2.f32 %v1370_v63  ;;  %v1378_v37 = vmul.f32 1.442695, %v1355_v34  ;;  %7346 = vst [vmem:[#allocation30_spill] sm:$0xff] %v5340_v29  ;;  %v5363_v15 = vld [vmem:[%s7142_s0 + $0x2f8] sm:$0xff]  ;;  %7351 = vst [vmem:[#allocation35_spill] sm:$0xff] %v5374_v54  ;;  %v5379_v13 = vld [vmem:[%s7142_s0 + $0x308] sm:$0xff] }
 0x140   :  { %v1349_v33 = vmax.f32 %v1347_v26, %v1348_v12  ;;  %3503 = vpow2.f32 %v1372_v7  ;;  %v1380_v38 = vmul.f32 1.442695, %v1356_v3  ;;  %v1589_v22 = vsel %vm26_vm0, %v5330_v9, -inf  ;;  %7350 = vst [vmem:[#allocation34_spill] sm:$0xff] %v5363_v15  ;;  %7352 = vst [vmem:[#allocation36_spill] sm:$0xff] %v5379_v13 }
 0x141   :  { %v1364_v21 = vsub.f32 %v5260_v27, %v1340_v51  ;;  %3505 = vpow2.f32 %v1374_v23  ;;  %v1382_v2 = vmul.f32 1.442695, %v1357_v43  ;;  %v1384_v56 = vmul.f32 1.442695, %v1358_v52  ;;  %v5351_v27 = vld [vmem:[%s7142_s0 + $0x2e8] sm:$0xff] }
 0x142   :  { %v1365_v14 = vsub.f32 %v5276_v11, %v1340_v51  ;;  %3507 = vpow2.f32 %v1376_v36  ;;  %v1386_v44 = vmul.f32 1.442695, %v1359_v57  ;;  %v1388_v48 = vmul.f32 1.442695, %v1360_v59  ;;  %7348 = vst [vmem:[#allocation32_spill] sm:$0xff] %v5351_v27  ;;  %v5358_v11 = vld [vmem:[%s7142_s0 + $0x2f0] sm:$0xff] }
 0x143   :  { %v1366_v19 = vsub.f32 %v5283_v60, %v1349_v33  ;;  %v1367_v20 = vsub.f32 %v5288_v1, %v1349_v33  ;;  %3509 = vpow2.f32 %v1378_v37  ;;  %v1390_v0 = vmul.f32 1.442695, %v1361_v28  ;;  %7349 = vst [vmem:[#allocation33_spill] sm:$0xff] %v5358_v11 }
 0x144   :  { %3511 = vpow2.f32 %v1380_v38  ;;  %v1392_v31 = vmul.f32 1.442695, %v1362_v42  ;;  %v1394_v5 = vmul.f32 1.442695, %v1363_v4  ;;  %v1396_v47 = vmul.f32 1.442695, %v1364_v21 }
 0x145   :  { %3513 = vpow2.f32 %v1382_v2  ;;  %v1590_v60 = vsel %vm26_vm0, %v5340_v29, -inf  ;;  %v1598_v1 = vsel %vm26_vm0, %v5346_v40, -inf  ;;  %v1599_v55 = vsel %vm26_vm0, %v5351_v27, -inf }
 0x146   :  { %3515 = vpow2.f32 %v1384_v56  ;;  %v1398_v49 = vmul.f32 1.442695, %v1365_v14  ;;  %v1591_v46 = vmax.f32 %v1589_v22, %v1590_v60  ;;  %v1600_v58 = vmax.f32 %v1598_v1, %v1599_v55  ;;  %v5416_v56 = vld [vmem:[%s7142_s0 + $0x310] sm:$0xff] }
 0x147   :  { %3517 = vpow2.f32 %v1386_v44  ;;  %v1400_v16 = vmul.f32 1.442695, %v1366_v19  ;;  %v1402_v34 = vmul.f32 1.442695, %v1367_v20  ;;  %v1607_v61 = vsel %vm26_vm0, %v5358_v11, -inf  ;;  %7353 = vst [vmem:[#allocation37_spill] sm:$0xff] %v5416_v56 }
 0x148   :  { %v5383_v3 = vpop.eup %3499  ;;  %3519 = vpow2.f32 %v1388_v48  ;;  %v1592_v43 = vrot.slane %v1591_v46, 4  ;;  %v1601_v52 = vrot.slane %v1600_v58, 4  ;;  %v1608_v41 = vsel %vm26_vm0, %v5363_v15, -inf }
 0x149   :  { %v5387_v57 = vpop.eup %3501  ;;  %3521 = vpow2.f32 %v1390_v0  ;;  %v1404_v59 = vsel %vm26_vm0, %v5383_v3, 0.0  ;;  %v1616_v26 = vsel %vm26_vm0, %v5374_v54, -inf  ;;  %v1617_v50 = vsel %vm26_vm0, %v5379_v13, -inf }
 0x14a   :  { %v5395_v63 = vpop.eup %3503  ;;  %3523 = vpow2.f32 %v1392_v31  ;;  %v1405_v62 = vsel %vm26_vm0, %v5387_v57, 0.0  ;;  %v1593_v28 = vmax.f32 %v1591_v46, %v1592_v43  ;;  %v1602_v7 = vmax.f32 %v1600_v58, %v1601_v52 }
 0x14b   :  { %v5399_v23 = vpop.eup %3505  ;;  %3525 = vpow2.f32 %v1394_v5  ;;  %v1406_v12 = vadd.f32 %v1405_v62, %v1404_v59  ;;  %v1413_v42 = vsel %vm26_vm0, %v5395_v63, 0.0  ;;  %v1609_v36 = vmax.f32 %v1607_v61, %v1608_v41 }
 0x14c   :  { %v5403_v51 = vpop.eup %3507  ;;  %3527 = vpow2.f32 %v1396_v47  ;;  %v1414_v4 = vsel %vm26_vm0, %v5399_v23, 0.0  ;;  %v1594_v37 = vrot.slane %v1593_v28, 2  ;;  %v5407_v33 = vmax.f32 %v1616_v26, %v1617_v50 }
 0x14d   :  { %v5409_v38 = vpop.eup %3509  ;;  %3529 = vpow2.f32 %v1398_v49  ;;  %v1407_v22 = vrot.slane %v1406_v12, 4  ;;  %v1415_v21 = vadd.f32 %v1414_v4, %v1413_v42  ;;  %v1422_v2 = vsel %vm26_vm0, %v5403_v51, 0.0 }
 0x14e   :  { %v5418_v14 = vpop.eup %3511  ;;  %3531 = vpow2.f32 %v1400_v16  ;;  %v1423_v44 = vsel %vm26_vm0, %v5409_v38, 0.0  ;;  %v5422_v48 = vmax.f32 %v1593_v28, %v1594_v37  ;;  %v1603_v19 = vrot.slane %v1602_v7, 2 }
 0x14f   :  { %v5424_v20 = vpop.eup %3513  ;;  %3533 = vpow2.f32 %v1402_v34  ;;  %v1408_v0 = vadd.f32 %v1407_v22, %v1406_v12  ;;  %v1416_v31 = vrot.slane %v1415_v21, 4  ;;  %v1424_v5 = vadd.f32 %v1423_v44, %v1422_v2 }
 0x150   :  { %v5426_v47 = vpop.eup %3515  ;;  %v1431_v60 = vsel %vm26_vm0, %v5418_v14, 0.0  ;;  %v1432_v1 = vsel %vm26_vm0, %v5424_v20, 0.0  ;;  %v1610_v55 = vrot.slane %v1609_v36, 4  ;;  %v5434_v49 = vsel %vm26_vm0, %v5416_v56, -inf }
 0x151   :  { %v5436_v46 = vpop.eup %3517  ;;  %v1409_v58 = vrot.slane %v1408_v0, 2  ;;  %v1417_v16 = vadd.f32 %v1416_v31, %v1415_v21  ;;  %v1425_v34 = vrot.slane %v1424_v5, 4  ;;  %v1433_v61 = vadd.f32 %v1432_v1, %v1431_v60 }
 0x152   :  { %v5438_v43 = vpop.eup %3519  ;;  %v1440_v52 = vsel %vm26_vm0, %v5426_v47, 0.0  ;;  %v1441_v41 = vsel %vm26_vm0, %v5436_v46, 0.0  ;;  %v5445_v26 = vmax.f32 %v1602_v7, %v1603_v19  ;;  %v1611_v2 = vmax.f32 %v1609_v36, %v1610_v55 }
 0x153   :  { %v5447_v50 = vpop.eup %3521  ;;  %v1410_v62 = vadd.f32 %v1409_v58, %v1408_v0  ;;  %v1418_v28 = vrot.slane %v1417_v16, 2  ;;  %v1426_v12 = vadd.f32 %v1425_v34, %v1424_v5  ;;  %v1434_v42 = vrot.slane %v1433_v61, 4 }
 0x154   :  { %v5449_v4 = vpop.eup %3523  ;;  %v1442_v37 = vadd.f32 %v1441_v41, %v1440_v52  ;;  %v1449_v22 = vsel %vm26_vm0, %v5438_v43, 0.0  ;;  %v1450_v21 = vsel %vm26_vm0, %v5447_v50, 0.0  ;;  %v1612_v11 = vrot.slane %v1611_v2, 2 }
 0x155   :  { %v5455_v44 = vpop.eup %3525  ;;  %v1411_v7 = vrot.slane %v1410_v62, 1  ;;  %v1419_v19 = vadd.f32 %v1418_v28, %v1417_v16  ;;  %v1427_v31 = vrot.slane %v1426_v12, 2  ;;  %v1435_v60 = vadd.f32 %v1434_v42, %v1433_v61 }
 0x156   :  { %v5457_v0 = vpop.eup %3527  ;;  %v1443_v5 = vrot.slane %v1442_v37, 4  ;;  %v1451_v1 = vadd.f32 %v1450_v21, %v1449_v22  ;;  %v1458_v58 = vsel %vm26_vm0, %v5449_v4, 0.0  ;;  %v1459_v34 = vsel %vm26_vm0, %v5455_v44, 0.0 }
 0x157   :  { %v5463_v52 = vpop.eup %3529  ;;  %v1412_v41 = vadd.f32 %v1411_v7, %v1410_v62  ;;  %v1420_v36 = vrot.slane %v1419_v19, 1  ;;  %v1428_v55 = vadd.f32 %v1427_v31, %v1426_v12  ;;  %v1436_v59 = vrot.slane %v1435_v60, 2 }
 0x158   :  { %v5465_v45 = vpop.eup %3531  ;;  %v1444_v16 = vadd.f32 %v1443_v5, %v1442_v37  ;;  %v1452_v61 = vrot.slane %v1451_v1, 4  ;;  %v1460_v28 = vadd.f32 %v1459_v34, %v1458_v58  ;;  %v1467_v42 = vsel %vm26_vm0, %v5457_v0, 0.0 }
 0x159   :  { %v5469_v22 = vpop.eup %3533  ;;  %v1421_v21 = vadd.f32 %v1420_v36, %v1419_v19  ;;  %v1429_v17 = vrot.slane %v1428_v55, 1  ;;  %v1437_v56 = vadd.f32 %v1436_v59, %v1435_v60  ;;  %v1468_v13 = vsel %vm26_vm0, %v5463_v52, 0.0 }
 0x15a   :  { %v1445_v62 = vrot.slane %v1444_v16, 2  ;;  %v1453_v7 = vadd.f32 %v1452_v61, %v1451_v1  ;;  %v1461_v12 = vrot.slane %v1460_v28, 4  ;;  %v1469_v31 = vadd.f32 %v1468_v13, %v1467_v42 }
 0x15b   :  { %v1430_v54 = vadd.f32 %v1429_v17, %v1428_v55  ;;  %v1438_v15 = vrot.slane %v1437_v56, 1  ;;  %v1476_v37 = vsel %vm26_vm0, %v5465_v45, 0.0  ;;  %v1477_v5 = vsel %vm26_vm0, %v5469_v22, 0.0 }
 0x15c   :  { %v1446_v58 = vadd.f32 %v1445_v62, %v1444_v16  ;;  %v1454_v34 = vrot.slane %v1453_v7, 2  ;;  %v1462_v19 = vadd.f32 %v1461_v12, %v1460_v28  ;;  %v1470_v36 = vrot.slane %v1469_v31, 4 }
 0x15d   :  { %v1439_v59 = vadd.f32 %v1438_v15, %v1437_v56  ;;  %v1478_v60 = vadd.f32 %v1477_v5, %v1476_v37  ;;  %3535 = vrcp.f32 %v1412_v41  ;;  %v1613_v55 = vmax.f32 %v1611_v2, %v1612_v11  ;;  %v5481_v15 = vld [vmem:[%s7142_s0 + $0x318] sm:$0xff] }
 0x15e   :  { %v1447_v27 = vrot.slane %v1446_v58, 1  ;;  %v1455_v1 = vadd.f32 %v1454_v34, %v1453_v7  ;;  %v1463_v61 = vrot.slane %v1462_v19, 2  ;;  %v1471_v13 = vadd.f32 %v1470_v36, %v1469_v31 }
 0x15f   :  { %v1479_v17 = vrot.slane %v1478_v60, 4  ;;  %3537 = vrcp.f32 %v1421_v21  ;;  %v1619_v42 = vrot.slane %v5407_v33, 4  ;;  %v1605_v56 = vrot.slane %v5445_v26, 1 }
 0x160   :  { %v1448_v40 = vadd.f32 %v1447_v27, %v1446_v58  ;;  %v1456_v29 = vrot.slane %v1455_v1, 1  ;;  %v1464_v9 = vadd.f32 %v1463_v61, %v1462_v19  ;;  %v1472_v16 = vrot.slane %v1471_v13, 2  ;;  %v5488_v27 = vld [vmem:[%s7142_s0 + $0x320] sm:$0xff]  ;;  %v5503_v19 = vld [vmem:[%s7142_s0 + $0x330] sm:$0xff] }
 0x161   :  { %v1480_v62 = vadd.f32 %v1479_v17, %v1478_v60  ;;  %3539 = vrcp.f32 %v1430_v54  ;;  %v1620_v41 = vmax.f32 %v5407_v33, %v1619_v42  ;;  %v5493_v54 = vld [vmem:[%s7142_s0 + $0x328] sm:$0xff]  ;;  %v1614_v7 = vrot.slane %v1613_v55, 1 }
 0x162   :  { %v1457_v28 = vadd.f32 %v1456_v29, %v1455_v1  ;;  %v1465_v21 = vrot.slane %v1464_v9, 1  ;;  %v1473_v11 = vadd.f32 %v1472_v16, %v1471_v13  ;;  %3541 = vrcp.f32 %v1439_v59 }
 0x163   :  { %v1481_v2 = vrot.slane %v1480_v62, 2  ;;  %3543 = vrcp.f32 %v1448_v40  ;;  %v1621_v12 = vrot.slane %v1620_v41, 2  ;;  %v1626_v29 = vsel %vm26_vm0, %v5481_v15, -inf }
 0x164   :  { %v1466_v31 = vadd.f32 %v1465_v21, %v1464_v9  ;;  %v1474_v33 = vrot.slane %v1473_v11, 1  ;;  %3545 = vrcp.f32 %v1457_v28  ;;  %v1627_v58 = vmax.f32 %v5434_v49, %v1626_v29  ;;  %v5508_v9 = vld [vmem:[%s7142_s0 + $0x338] sm:$0xff] }
 0x165   :  { %v1482_v37 = vadd.f32 %v1481_v2, %v1480_v62  ;;  %v1622_v5 = vmax.f32 %v1620_v41, %v1621_v12  ;;  %v1634_v40 = vsel %vm26_vm0, %v5488_v27, -inf  ;;  %v7354_v36 = vrot.slane %v5422_v48, 1 }
 0x166   :  { %v1475_v34 = vadd.f32 %v1474_v33, %v1473_v11  ;;  %3547 = vrcp.f32 %v1466_v31  ;;  %v1635_v49 = vsel %vm26_vm0, %v5493_v54, -inf  ;;  %v1628_v13 = vrot.slane %v1627_v58, 4 }
 0x167   :  { %v5513_v59 = vmax.f32 %v5422_v48, %v7354_v36  ;;  %v3536_v60 = vpop.eup %3535  ;;  %v1483_v1 = vrot.slane %v1482_v37, 1  ;;  %v1623_v61 = vrot.slane %v1622_v5, 1  ;;  %v5517_v17 = vmax.f32 %v1634_v40, %v1635_v49 }
 0x168   :  { %3549 = vrcp.f32 %v1475_v34  ;;  %v1494_v42 = vmul.f32 %v3536_v60, %v5383_v3  ;;  %v1495_v16 = vmul.f32 %v3536_v60, %v5387_v57  ;;  %v5522_v62 = vmax.f32 %v5445_v26, %v1605_v56 }
 0x169   :  { %v3538_v41 = vpop.eup %3537  ;;  %v1484_v48 = vadd.f32 %v1483_v1, %v1482_v37  ;;  %v5524_v28 = vmax.f32 %v1613_v55, %v1614_v7  ;;  %v5528_v21 = vsel %vm26_vm0, %v5503_v19, -inf  ;;  %v5532_v11 = vsel %vm26_vm0, %v5508_v9, -inf }
 0x16a   :  { %v1496_v2 = vmul.f32 %v3538_v41, %v5395_v63  ;;  %v1497_v3 = vmul.f32 %v3538_v41, %v5399_v23  ;;  %v1512_v57 = vsel %vm26_vm0, %v1494_v42, 0.0  ;;  %v1529_v26 = vsel %vm26_vm0, %v1495_v16, 0.0 }
 0x16b   :  { %v3540_v56 = vpop.eup %3539  ;;  %3551 = vrcp.f32 %v1484_v48  ;;  %v5538_v55 = vmax.f32 %v1622_v5, %v1623_v61  ;;  %v5540_v7 = vmax.f32 %v1627_v58, %v1628_v13  ;;  %v1637_v12 = vrot.slane %v5517_v17, 4 }
 0x16c   :  { %v3542_v31 = vpop.eup %3541  ;;  %v1498_v33 = vmul.f32 %v3540_v56, %v5403_v51  ;;  %v1499_v29 = vmul.f32 %v3540_v56, %v5409_v38  ;;  %v1513_v63 = vsel %vm26_vm0, %v1496_v2, 0.0  ;;  %v1530_v23 = vsel %vm26_vm0, %v1497_v3, 0.0 }
 0x16d   :  { %v3544_v37 = vpop.eup %3543  ;;  %v1500_v40 = vmul.f32 %v3542_v31, %v5418_v14  ;;  %v1501_v34 = vmul.f32 %v3542_v31, %v5424_v20  ;;  %v1514_v5 = vadd.f32 %v1513_v63, %v1512_v57  ;;  %v1531_v36 = vadd.f32 %v1530_v23, %v1529_v26 }
 0x16e   :  { %v3546_v58 = vpop.eup %3545  ;;  %v1502_v49 = vmul.f32 %v3544_v37, %v5426_v47  ;;  %v1503_v60 = vmul.f32 %v3544_v37, %v5436_v46  ;;  %v1515_v51 = vsel %vm26_vm0, %v1498_v33, 0.0  ;;  %v1532_v38 = vsel %vm26_vm0, %v1499_v29, 0.0 }
 0x16f   :  { %v1504_v1 = vmul.f32 %v3546_v58, %v5438_v43  ;;  %v1505_v61 = vmul.f32 %v3546_v58, %v5447_v50  ;;  %v1516_v13 = vadd.f32 %v1515_v51, %v1514_v5  ;;  %v1517_v14 = vsel %vm26_vm0, %v1500_v40, 0.0 }
 0x170   :  { %v3548_v41 = vpop.eup %3547  ;;  %v1519_v20 = vsel %vm26_vm0, %v1502_v49, 0.0  ;;  %v1533_v48 = vadd.f32 %v1532_v38, %v1531_v36  ;;  %v1534_v57 = vsel %vm26_vm0, %v1501_v34, 0.0  ;;  %v5559_v47 = vadd.f32 %v1494_v42, %v5173_v39 }
 0x171   :  { %v1506_v46 = vmul.f32 %v3548_v41, %v5449_v4  ;;  %v1507_v26 = vmul.f32 %v3548_v41, %v5455_v44  ;;  %v1518_v56 = vadd.f32 %v1517_v14, %v1516_v13  ;;  %v1536_v43 = vsel %vm26_vm0, %v1503_v60, 0.0 }
 0x172   :  { %v3550_v50 = vpop.eup %3549  ;;  %v1521_v31 = vsel %vm26_vm0, %v1504_v1, 0.0  ;;  %v1535_v63 = vadd.f32 %v1534_v57, %v1533_v48  ;;  %v5566_v23 = vadd.f32 %v1495_v16, %v5176_v35  ;;  %v1630_v37 = vrot.slane %v5540_v7, 2 }
 0x173   :  { %v1508_v5 = vmul.f32 %v3550_v50, %v5457_v0  ;;  %v1509_v39 = vmul.f32 %v3550_v50, %v5463_v52  ;;  %v1520_v42 = vadd.f32 %v1519_v20, %v1518_v56  ;;  %v1538_v4 = vsel %vm26_vm0, %v1505_v61, 0.0 }
 0x174   :  { %v1523_v44 = vsel %vm26_vm0, %v1506_v46, 0.0  ;;  %v1537_v36 = vadd.f32 %v1536_v43, %v1535_v63  ;;  %v5574_v58 = vadd.f32 %v1496_v2, %v5188_v32  ;;  %v5577_v51 = vadd.f32 %v1497_v3, %v5191_v8  ;;  %v5637_v43 = vld [vmem:[%s7142_s0 + $0x358] sm:$0xff] }
 0x175   :  { %v3552_v35 = vpop.eup %3551  ;;  %v1522_v16 = vadd.f32 %v1521_v31, %v1520_v42  ;;  %v1540_v38 = vsel %vm26_vm0, %v1507_v26, 0.0  ;;  %v5581_v0 = vadd.f32 %v1498_v33, %v5200_v10  ;;  %v5584_v52 = vadd.f32 %v1499_v29, %v5203_v25 }
 0x176   :  { %v1510_v13 = vmul.f32 %v3552_v35, %v5465_v45  ;;  %v1511_v14 = vmul.f32 %v3552_v35, %v5469_v22  ;;  %v1525_v32 = vsel %vm26_vm0, %v1508_v5, 0.0  ;;  %v1539_v2 = vadd.f32 %v1538_v4, %v1537_v36  ;;  %v7364_v35 = vld [vmem:[#allocation15_spill] sm:$0xff] }
 0x177   :  { %v1524_v41 = vadd.f32 %v1523_v44, %v1522_v16  ;;  %v1542_v8 = vsel %vm26_vm0, %v1509_v39, 0.0  ;;  %v5591_v3 = vadd.f32 %v1500_v40, %v5210_v18  ;;  %v5594_v20 = vadd.f32 %v1501_v34, %v5213_v6  ;;  %v7356_v18 = vld [vmem:[#allocation12_spill] sm:$0xff]  ;;  %v5613_v6 = vld [vmem:[%s7142_s0 + $0x340] sm:$0xff]  ;;  %v7358_v34 = vld [vmem:[#allocation11_spill] sm:$0xff] }
 0x178   :  { %v1527_v10 = vsel %vm26_vm0, %v1510_v13, 0.0  ;;  %v1541_v25 = vadd.f32 %v1540_v38, %v1539_v2  ;;  %v5598_v33 = vadd.f32 %v1502_v49, %v5216_v53  ;;  %v5601_v45 = vadd.f32 %v1503_v60, %v5219_v24  ;;  %v5618_v53 = vld [vmem:[%s7142_s0 + $0x348] sm:$0xff]  ;;  %v5623_v24 = vld [vmem:[%s7142_s0 + $0x350] sm:$0xff]  ;;  %v7360_v60 = vld [vmem:[#allocation13_spill] sm:$0xff] }
 0x179   :  { %v1526_v22 = vadd.f32 %v1525_v32, %v1524_v41  ;;  %v1544_v29 = vsel %vm26_vm0, %v1511_v14, 0.0  ;;  %v5605_v48 = vadd.f32 %v1504_v1, %v5226_v30  ;;  %v5608_v40 = vadd.f32 %v1505_v61, %v7356_v18  ;;  %v7362_v61 = vld [vmem:[#allocation14_spill] sm:$0xff]  ;;  %v7368_v38 = vld [vmem:[#allocation17_spill] sm:$0xff] }
 0x17a   :  { %v1543_v30 = vadd.f32 %v1542_v8, %v1541_v25  ;;  %v5626_v49 = vadd.f32 %v1506_v46, %v7358_v34  ;;  %v5629_v1 = vadd.f32 %v1507_v26, %v7360_v60  ;;  %v5632_v57 = vadd.f32 %v1508_v5, %v7362_v61 }
 0x17b   :  { %7355 = vst [vmem:[#allocation38_spill] sm:$0xff] %v5605_v48  ;;  %7357 = vst [vmem:[#allocation12_spill] sm:$0xff] %v5608_v40  ;;  %v1528_v56 = vadd.f32 %v1527_v10, %v1526_v22  ;;  %v1631_v50 = vmax.f32 %v5540_v7, %v1630_v37  ;;  %v1638_v31 = vmax.f32 %v5517_v17, %v1637_v12  ;;  %v1652_v63 = vsel %vm26_vm0, %v5613_v6, -inf  ;;  %v7370_v22 = vld [vmem:[#allocation29_spill] sm:$0xff] }
 0x17c   :  { %7359 = vst [vmem:[#allocation11_spill] sm:$0xff] %v5626_v49  ;;  %7361 = vst [vmem:[#allocation13_spill] sm:$0xff] %v5629_v1  ;;  %v1645_v46 = vmax.f32 %v5528_v21, %v5532_v11  ;;  %v1545_v26 = vadd.f32 %v1544_v29, %v1543_v30  ;;  %v1653_v5 = vsel %vm26_vm0, %v5618_v53, -inf  ;;  %v1661_v42 = vsel %vm26_vm0, %v5623_v24, -inf  ;;  %v7366_v11 = vld [vmem:[#allocation16_spill] sm:$0xff] }
 0x17d   :  { %7363 = vst [vmem:[#allocation14_spill] sm:$0xff] %v5632_v57  ;;  %v3162_v4 = vadd.f32 -1.0, %v1528_v56  ;;  %v1632_v44 = vrot.slane %v1631_v50, 1  ;;  %v1639_v7 = vrot.slane %v1638_v31, 2  ;;  %v5652_v17 = vadd.f32 %v1509_v39, %v7364_v35 }
 0x17e   :  { %v1646_v37 = vrot.slane %v1645_v46, 4  ;;  %v3163_v36 = vadd.f32 -1.0, %v1545_v26  ;;  %v1654_v12 = vmax.f32 %v1652_v63, %v1653_v5  ;;  %v1662_v21 = vsel %vm26_vm0, %v5637_v43, -inf  ;;  %v7373_v63 = vld [vmem:[#allocation32_spill] sm:$0xff] }
 0x17f   :  { %7365 = vst [vmem:[#allocation15_spill] sm:$0xff] %v5652_v17  ;;  %v5657_v16 = vadd.f32 %v1510_v13, %v7366_v11  ;;  %v5660_v32 = vadd.f32 %v1511_v14, %v7368_v38  ;;  %v1640_v2 = vmax.f32 %v1638_v31, %v1639_v7  ;;  %v1548_v8 = vmul.f32 %v3162_v4, %v3162_v4  ;;  %v7371_v13 = vld [vmem:[#allocation30_spill] sm:$0xff]  ;;  %v7372_v14 = vld [vmem:[#allocation31_spill] sm:$0xff]  ;;  %v7378_v11 = vld [vmem:[#allocation37_spill] sm:$0xff] }
 0x180   :  { %v1647_v41 = vmax.f32 %v1645_v46, %v1646_v37  ;;  %v1655_v10 = vrot.slane %v1654_v12, 4  ;;  %v1663_v25 = vmax.f32 %v1661_v42, %v1662_v21  ;;  %v1670_v29 = vsub.f32 %v7370_v22, %v5513_v59  ;;  %v7374_v42 = vld [vmem:[#allocation33_spill] sm:$0xff] }
 0x181   :  { %7367 = vst [vmem:[#allocation16_spill] sm:$0xff] %v5657_v16  ;;  %7369 = vst [vmem:[#allocation17_spill] sm:$0xff] %v5660_v32  ;;  %v5664_v39 = vmul.f32 %v3163_v36, %v3163_v36  ;;  %v1633_v18 = vmax.f32 %v1631_v50, %v1632_v44  ;;  %v1641_v30 = vrot.slane %v1640_v2, 1  ;;  %v1671_v56 = vsub.f32 %v7371_v13, %v5513_v59  ;;  %v7375_v44 = vld [vmem:[#allocation34_spill] sm:$0xff]  ;;  %v7376_v36 = vld [vmem:[#allocation35_spill] sm:$0xff] }
 0x182   :  { %v1648_v34 = vrot.slane %v1647_v41, 2  ;;  %v1656_v60 = vmax.f32 %v1654_v12, %v1655_v10  ;;  %v1664_v61 = vrot.slane %v1663_v25, 4  ;;  %v1672_v31 = vsub.f32 %v7372_v14, %v5522_v62  ;;  %v7377_v12 = vld [vmem:[#allocation36_spill] sm:$0xff] }
 0x183   :  { %v1642_v46 = vmax.f32 %v1640_v2, %v1641_v30  ;;  %v1673_v5 = vsub.f32 %v7373_v63, %v5522_v62  ;;  %v1674_v4 = vsub.f32 %v7374_v42, %v5524_v28  ;;  %v1675_v37 = vsub.f32 %v7375_v44, %v5524_v28  ;;  %v5705_v44 = vld [vmem:[%s7142_s0 + $0x370] sm:$0xff] }
 0x184   :  { %v1649_v26 = vmax.f32 %v1647_v41, %v1648_v34  ;;  %v1657_v7 = vrot.slane %v1656_v60, 2  ;;  %v1665_v50 = vmax.f32 %v1663_v25, %v1664_v61  ;;  %v1676_v35 = vsub.f32 %v7376_v36, %v5538_v55  ;;  %7383 = vst [vmem:[#allocation32_spill] sm:$0xff] %v5705_v44 }
 0x185   :  { %v1677_v21 = vsub.f32 %v7377_v12, %v5538_v55  ;;  %v1678_v38 = vsub.f32 %v7378_v11, %v1633_v18  ;;  %v1679_v2 = vsub.f32 %v5481_v15, %v1633_v18  ;;  %v1680_v10 = vsub.f32 %v5488_v27, %v1642_v46 }
 0x186   :  { %v1650_v59 = vrot.slane %v1649_v26, 1  ;;  %v1658_v62 = vmax.f32 %v1656_v60, %v1657_v7  ;;  %v1666_v41 = vrot.slane %v1665_v50, 2  ;;  %v1688_v22 = vmul.f32 1.442695, %v1670_v29  ;;  %v5699_v7 = vld [vmem:[%s7142_s0 + $0x368] sm:$0xff] }
 0x187   :  { %v1690_v30 = vmul.f32 1.442695, %v1671_v56  ;;  %v1692_v34 = vmul.f32 1.442695, %v1672_v31  ;;  %v1694_v28 = vmul.f32 1.442695, %v1673_v5  ;;  %v1681_v63 = vsub.f32 %v5493_v54, %v1642_v46 }
 0x188   :  { %v1651_v25 = vmax.f32 %v1649_v26, %v1650_v59  ;;  %v1659_v61 = vrot.slane %v1658_v62, 1  ;;  %v1667_v13 = vmax.f32 %v1665_v50, %v1666_v41  ;;  %3553 = vpow2.f32 %v1688_v22  ;;  %v5691_v54 = vld [vmem:[%s7142_s0 + $0x360] sm:$0xff]  ;;  %7382 = vst [vmem:[#allocation31_spill] sm:$0xff] %v5699_v7 }
 0x189   :  { %v1696_v14 = vmul.f32 1.442695, %v1674_v4  ;;  %3555 = vpow2.f32 %v1690_v30  ;;  %v1698_v42 = vmul.f32 1.442695, %v1675_v37  ;;  %v1700_v60 = vmul.f32 1.442695, %v1676_v35 }
 0x18a   :  { %v1682_v55 = vsub.f32 %v5503_v19, %v1651_v25  ;;  %v1660_v15 = vmax.f32 %v1658_v62, %v1659_v61  ;;  %v1668_v18 = vrot.slane %v1667_v13, 1  ;;  %3557 = vpow2.f32 %v1692_v34  ;;  %7379 = vst [vmem:[#allocation29_spill] sm:$0xff] %v5691_v54  ;;  %v7380_v19 = vld [vmem:[#allocation18_spill] sm:$0xff] }
 0x18b   :  { %v1683_v27 = vsub.f32 %v5508_v9, %v1651_v25  ;;  %3559 = vpow2.f32 %v1694_v28  ;;  %v1702_v29 = vmul.f32 1.442695, %v1677_v21  ;;  %v1704_v56 = vmul.f32 1.442695, %v1678_v38  ;;  %v5723_v21 = vld [vmem:[%s7142_s0 + $0x388] sm:$0xff] }
 0x18c   :  { %v1669_v31 = vmax.f32 %v1667_v13, %v1668_v18  ;;  %v1684_v26 = vsub.f32 %v5613_v6, %v1660_v15  ;;  %v1685_v5 = vsub.f32 %v5618_v53, %v1660_v15  ;;  %3561 = vpow2.f32 %v1696_v14  ;;  %7386 = vst [vmem:[#allocation35_spill] sm:$0xff] %v5723_v21 }
 0x18d   :  { %v5694_v46 = vadd.f32 %v1548_v8, %v7380_v19  ;;  %3563 = vpow2.f32 %v1698_v42  ;;  %v1706_v4 = vmul.f32 1.442695, %v1679_v2  ;;  %v1708_v9 = vmul.f32 1.442695, %v1680_v10  ;;  %v5710_v8 = vld [vmem:[%s7142_s0 + $0x378] sm:$0xff] }
 0x18e   :  { %v1686_v6 = vsub.f32 %v5623_v24, %v1669_v31  ;;  %3565 = vpow2.f32 %v1700_v60  ;;  %v1710_v53 = vmul.f32 1.442695, %v1681_v63  ;;  %v1712_v50 = vmul.f32 1.442695, %v1682_v55  ;;  %7384 = vst [vmem:[#allocation33_spill] sm:$0xff] %v5710_v8  ;;  %v5716_v24 = vld [vmem:[%s7142_s0 + $0x380] sm:$0xff] }
 0x18f   :  { %7381 = vst [vmem:[#allocation30_spill] sm:$0xff] %v5694_v46  ;;  %v1687_v37 = vsub.f32 %v5637_v43, %v1669_v31  ;;  %3567 = vpow2.f32 %v1702_v29  ;;  %v1714_v36 = vmul.f32 1.442695, %v1683_v27  ;;  %7385 = vst [vmem:[#allocation34_spill] sm:$0xff] %v5716_v24  ;;  %v1909_v35 = vsel %vm26_vm0, %v5691_v54, -inf }
 0x190   :  { %3569 = vpow2.f32 %v1704_v56  ;;  %v1716_v59 = vmul.f32 1.442695, %v1684_v26  ;;  %v1718_v12 = vmul.f32 1.442695, %v1685_v5  ;;  %v1910_v43 = vsel %vm26_vm0, %v5699_v7, -inf }
 0x191   :  { %3571 = vpow2.f32 %v1706_v4  ;;  %v1911_v11 = vmax.f32 %v1909_v35, %v1910_v43  ;;  %v1918_v38 = vsel %vm26_vm0, %v5705_v44, -inf  ;;  %v1919_v2 = vsel %vm26_vm0, %v5710_v8, -inf  ;;  %v5762_v4 = vld [vmem:[%s7142_s0 + $0x390] sm:$0xff] }
 0x192   :  { %v5731_v62 = vpop.eup %3553  ;;  %3573 = vpow2.f32 %v1708_v9  ;;  %v1720_v41 = vmul.f32 1.442695, %v1686_v6  ;;  %v1920_v10 = vmax.f32 %v1918_v38, %v1919_v2  ;;  %v1927_v22 = vsel %vm26_vm0, %v5716_v24, -inf  ;;  %7387 = vst [vmem:[#allocation36_spill] sm:$0xff] %v5762_v4 }
 0x193   :  { %v5735_v25 = vpop.eup %3555  ;;  %3575 = vpow2.f32 %v1710_v53  ;;  %v1724_v30 = vsel %vm26_vm0, %v5731_v62, 0.0  ;;  %v1912_v34 = vrot.slane %v1911_v11, 4  ;;  %v1928_v28 = vsel %vm26_vm0, %v5723_v21, -inf }
 0x194   :  { %v5741_v61 = vpop.eup %3557  ;;  %3577 = vpow2.f32 %v1712_v50  ;;  %v1722_v13 = vmul.f32 1.442695, %v1687_v37  ;;  %v1725_v14 = vsel %vm26_vm0, %v5735_v25, 0.0  ;;  %v1921_v63 = vrot.slane %v1920_v10, 4 }
 0x195   :  { %v5745_v55 = vpop.eup %3559  ;;  %3579 = vpow2.f32 %v1714_v36  ;;  %v1726_v42 = vadd.f32 %v1725_v14, %v1724_v30  ;;  %v1733_v15 = vsel %vm26_vm0, %v5741_v61, 0.0  ;;  %v1913_v18 = vmax.f32 %v1911_v11, %v1912_v34 }
 0x196   :  { %v5749_v60 = vpop.eup %3561  ;;  %3581 = vpow2.f32 %v1716_v59  ;;  %v1734_v27 = vsel %vm26_vm0, %v5745_v55, 0.0  ;;  %v1922_v29 = vmax.f32 %v1920_v10, %v1921_v63  ;;  %v5753_v56 = vmax.f32 %v1927_v22, %v1928_v28 }
 0x197   :  { %v5755_v31 = vpop.eup %3563  ;;  %3583 = vpow2.f32 %v1718_v12  ;;  %v1727_v26 = vrot.slane %v1726_v42, 4  ;;  %v1735_v5 = vadd.f32 %v1734_v27, %v1733_v15  ;;  %v1742_v19 = vsel %vm26_vm0, %v5749_v60, 0.0 }
 0x198   :  { %v5764_v9 = vpop.eup %3565  ;;  %3585 = vpow2.f32 %v1720_v41  ;;  %v1743_v6 = vsel %vm26_vm0, %v5755_v31, 0.0  ;;  %v1914_v53 = vrot.slane %v1913_v18, 2  ;;  %v1923_v50 = vrot.slane %v1922_v29, 2 }
 0x199   :  { %v5768_v37 = vpop.eup %3567  ;;  %3587 = vpow2.f32 %v1722_v13  ;;  %v1728_v36 = vadd.f32 %v1727_v26, %v1726_v42  ;;  %v1736_v35 = vrot.slane %v1735_v5, 4  ;;  %v1744_v59 = vadd.f32 %v1743_v6, %v1742_v19 }
 0x19a   :  { %v5770_v12 = vpop.eup %3569  ;;  %v1751_v43 = vsel %vm26_vm0, %v5764_v9, 0.0  ;;  %v1752_v11 = vsel %vm26_vm0, %v5768_v37, 0.0  ;;  %v5776_v38 = vmax.f32 %v1913_v18, %v1914_v53  ;;  %v5780_v2 = vsel %vm26_vm0, %v5762_v4, -inf }
 0x19b   :  { %v5782_v41 = vpop.eup %3571  ;;  %v1729_v10 = vrot.slane %v1728_v36, 2  ;;  %v1737_v22 = vadd.f32 %v1736_v35, %v1735_v5  ;;  %v1745_v30 = vrot.slane %v1744_v59, 4  ;;  %v1753_v34 = vadd.f32 %v1752_v11, %v1751_v43 }
 0x19c   :  { %v5784_v28 = vpop.eup %3573  ;;  %v1760_v13 = vsel %vm26_vm0, %v5770_v12, 0.0  ;;  %v1761_v14 = vsel %vm26_vm0, %v5782_v41, 0.0  ;;  %v5790_v63 = vmax.f32 %v1922_v29, %v1923_v50  ;;  %v1930_v42 = vrot.slane %v5753_v56, 4 }
 0x19d   :  { %v5793_v15 = vpop.eup %3575  ;;  %v1730_v18 = vadd.f32 %v1729_v10, %v1728_v36  ;;  %v1738_v27 = vrot.slane %v1737_v22, 2  ;;  %v1746_v26 = vadd.f32 %v1745_v30, %v1744_v59  ;;  %v1754_v5 = vrot.slane %v1753_v34, 4 }
 0x19e   :  { %v5795_v19 = vpop.eup %3577  ;;  %v1762_v6 = vadd.f32 %v1761_v14, %v1760_v13  ;;  %v1769_v53 = vsel %vm26_vm0, %v5784_v28, 0.0  ;;  %v1770_v35 = vsel %vm26_vm0, %v5793_v15, 0.0 }
 0x19f   :  { %v5802_v50 = vpop.eup %3579  ;;  %v1731_v43 = vrot.slane %v1730_v18, 1  ;;  %v1739_v11 = vadd.f32 %v1738_v27, %v1737_v22  ;;  %v1747_v4 = vrot.slane %v1746_v26, 2  ;;  %v1755_v36 = vadd.f32 %v1754_v5, %v1753_v34 }
 0x1a0   :  { %v5804_v10 = vpop.eup %3581  ;;  %v1763_v59 = vrot.slane %v1762_v6, 4  ;;  %v1771_v30 = vadd.f32 %v1770_v35, %v1769_v53  ;;  %v1778_v13 = vsel %vm26_vm0, %v5795_v19, 0.0  ;;  %v1779_v14 = vsel %vm26_vm0, %v5802_v50, 0.0 }
 0x1a1   :  { %v5810_v21 = vpop.eup %3583  ;;  %v1740_v24 = vrot.slane %v1739_v11, 1  ;;  %v1748_v29 = vadd.f32 %v1747_v4, %v1746_v26  ;;  %v1756_v8 = vrot.slane %v1755_v36, 2  ;;  %v1780_v5 = vadd.f32 %v1779_v14, %v1778_v13 }
 0x1a2   :  { %v5813_v22 = vpop.eup %3585  ;;  %v1764_v34 = vadd.f32 %v1763_v59, %v1762_v6  ;;  %v1772_v27 = vrot.slane %v1771_v30, 4  ;;  %v1787_v53 = vsel %vm26_vm0, %v5804_v10, 0.0  ;;  %v1732_v7 = vadd.f32 %v1731_v43, %v1730_v18 }
 0x1a3   :  { %v5817_v35 = vpop.eup %3587  ;;  %v1749_v46 = vrot.slane %v1748_v29, 1  ;;  %v1757_v54 = vadd.f32 %v1756_v8, %v1755_v36  ;;  %v1788_v32 = vsel %vm26_vm0, %v5810_v21, 0.0  ;;  %v1781_v16 = vrot.slane %v1780_v5, 4  ;;  %v5828_v8 = vld [vmem:[%s7142_s0 + $0x398] sm:$0xff] }
 0x1a4   :  { %v1765_v4 = vrot.slane %v1764_v34, 2  ;;  %v1773_v26 = vadd.f32 %v1772_v27, %v1771_v30  ;;  %v1789_v44 = vadd.f32 %v1788_v32, %v1787_v53  ;;  %v1741_v17 = vadd.f32 %v1740_v24, %v1739_v11 }
 0x1a5   :  { %v1758_v57 = vrot.slane %v1757_v54, 1  ;;  %v1796_v6 = vsel %vm26_vm0, %v5813_v22, 0.0  ;;  %v1797_v59 = vsel %vm26_vm0, %v5817_v35, 0.0  ;;  %v1782_v18 = vadd.f32 %v1781_v16, %v1780_v5 }
 0x1a6   :  { %v1766_v13 = vadd.f32 %v1765_v4, %v1764_v34  ;;  %v1774_v14 = vrot.slane %v1773_v26, 2  ;;  %v1790_v43 = vrot.slane %v1789_v44, 4  ;;  %v1750_v36 = vadd.f32 %v1749_v46, %v1748_v29 }
 0x1a7   :  { %v1759_v30 = vadd.f32 %v1758_v57, %v1757_v54  ;;  %v1798_v32 = vadd.f32 %v1797_v59, %v1796_v6  ;;  %3589 = vrcp.f32 %v1732_v7  ;;  %v1783_v27 = vrot.slane %v1782_v18, 2  ;;  %v5836_v57 = vld [vmem:[%s7142_s0 + $0x3a0] sm:$0xff] }
 0x1a8   :  { %v1767_v24 = vrot.slane %v1766_v13, 1  ;;  %v1775_v11 = vadd.f32 %v1774_v14, %v1773_v26  ;;  %v1791_v53 = vadd.f32 %v1790_v43, %v1789_v44  ;;  %3591 = vrcp.f32 %v1741_v17  ;;  %v7388_v43 = vld [vmem:[#allocation10_spill] sm:$0xff] }
 0x1a9   :  { %v1799_v1 = vrot.slane %v1798_v32, 4  ;;  %v1931_v34 = vmax.f32 %v5753_v56, %v1930_v42  ;;  %v1937_v16 = vsel %vm26_vm0, %v5828_v8, -inf  ;;  %v1784_v49 = vadd.f32 %v1783_v27, %v1782_v18  ;;  %v5842_v56 = vld [vmem:[%s7142_s0 + $0x3a8] sm:$0xff] }
 0x1aa   :  { %v1768_v5 = vadd.f32 %v1767_v24, %v1766_v13  ;;  %v1776_v4 = vrot.slane %v1775_v11, 1  ;;  %v1792_v40 = vrot.slane %v1791_v53, 2  ;;  %3593 = vrcp.f32 %v1750_v36  ;;  %v5854_v13 = vld [vmem:[%s7142_s0 + $0x3b8] sm:$0xff] }
 0x1ab   :  { %v1800_v48 = vadd.f32 %v1799_v1, %v1798_v32  ;;  %v1932_v54 = vrot.slane %v1931_v34, 2  ;;  %v1938_v46 = vmax.f32 %v5780_v2, %v1937_v16  ;;  %v1785_v7 = vrot.slane %v1784_v49, 1  ;;  %v5847_v2 = vld [vmem:[%s7142_s0 + $0x3b0] sm:$0xff] }
 0x1ac   :  { %v1777_v17 = vadd.f32 %v1776_v4, %v1775_v11  ;;  %v1793_v44 = vadd.f32 %v1792_v40, %v1791_v53  ;;  %3595 = vrcp.f32 %v1759_v30  ;;  %v1945_v40 = vsel %vm26_vm0, %v5836_v57, -inf }
 0x1ad   :  { %v1801_v42 = vrot.slane %v1800_v48, 2  ;;  %3597 = vrcp.f32 %v1768_v5  ;;  %v1933_v1 = vmax.f32 %v1931_v34, %v1932_v54  ;;  %v1939_v29 = vrot.slane %v1938_v46, 4  ;;  %v5876_v5 = vld [vmem:[%s7142_s0 + $0x3c0] sm:$0xff] }
 0x1ae   :  { %v1786_v26 = vadd.f32 %v1785_v7, %v1784_v49  ;;  %v1794_v6 = vrot.slane %v1793_v44, 1  ;;  %3599 = vrcp.f32 %v1777_v17  ;;  %v1946_v49 = vsel %vm26_vm0, %v5842_v56, -inf }
 0x1af   :  { %v1802_v59 = vadd.f32 %v1801_v42, %v1800_v48  ;;  %v1934_v14 = vrot.slane %v1933_v1, 1  ;;  %v1940_v18 = vmax.f32 %v1938_v46, %v1939_v29  ;;  %v5860_v36 = vadd.f32 %v5664_v39, %v7388_v43 }
 0x1b0   :  { %v1795_v30 = vadd.f32 %v1794_v6, %v1793_v44  ;;  %3601 = vrcp.f32 %v1786_v26  ;;  %v5862_v32 = vmax.f32 %v1945_v40, %v1946_v49  ;;  %v7389_v11 = vrot.slane %v5776_v38, 1 }
 0x1b1   :  { %v3590_v24 = vpop.eup %3589  ;;  %v1803_v48 = vrot.slane %v1802_v59, 1  ;;  %v1941_v53 = vrot.slane %v1940_v18, 2  ;;  %v1954_v34 = vsel %vm26_vm0, %v5847_v2, -inf  ;;  %v1955_v4 = vsel %vm26_vm0, %v5854_v13, -inf }
 0x1b2   :  { %v5867_v27 = vmax.f32 %v5776_v38, %v7389_v11  ;;  %3603 = vrcp.f32 %v1795_v30  ;;  %v1814_v16 = vmul.f32 %v3590_v24, %v5731_v62  ;;  %v1815_v39 = vmul.f32 %v3590_v24, %v5735_v25  ;;  %v3592_v54 = vpop.eup %3591 }
 0x1b3   :  { %v1804_v38 = vadd.f32 %v1803_v48, %v1802_v59  ;;  %v7390_v46 = vrot.slane %v5790_v63, 1  ;;  %v5885_v7 = vmax.f32 %v1933_v1, %v1934_v14  ;;  %v1948_v62 = vrot.slane %v5862_v32, 4 }
 0x1b4   :  { %v1816_v25 = vmul.f32 %v3592_v54, %v5741_v61  ;;  %v1817_v44 = vmul.f32 %v3592_v54, %v5745_v55  ;;  %v1832_v42 = vsel %vm26_vm0, %v1814_v16, 0.0  ;;  %v1849_v29 = vsel %vm26_vm0, %v1815_v39, 0.0  ;;  %v3594_v26 = vpop.eup %3593 }
 0x1b5   :  { %v5883_v17 = vmax.f32 %v5790_v63, %v7390_v46  ;;  %3605 = vrcp.f32 %v1804_v38  ;;  %v5892_v6 = vmax.f32 %v1940_v18, %v1941_v53  ;;  %v5894_v40 = vmax.f32 %v1954_v34, %v1955_v4 }
 0x1b6   :  { %v5898_v63 = vsel %vm26_vm0, %v5876_v5, -inf  ;;  %v3596_v1 = vpop.eup %3595  ;;  %v1818_v59 = vmul.f32 %v3594_v26, %v5749_v60  ;;  %v1819_v61 = vmul.f32 %v3594_v26, %v5755_v31  ;;  %v1833_v55 = vsel %vm26_vm0, %v1816_v25, 0.0 }
 0x1b7   :  { %v1850_v14 = vsel %vm26_vm0, %v1817_v44, 0.0  ;;  %v3598_v49 = vpop.eup %3597  ;;  %v1820_v43 = vmul.f32 %v3596_v1, %v5764_v9  ;;  %v1821_v18 = vmul.f32 %v3596_v1, %v5768_v37  ;;  %v1834_v30 = vadd.f32 %v1833_v55, %v1832_v42 }
 0x1b8   :  { %v1851_v24 = vadd.f32 %v1850_v14, %v1849_v29  ;;  %v3600_v48 = vpop.eup %3599  ;;  %v1822_v11 = vmul.f32 %v3598_v49, %v5770_v12  ;;  %v1823_v53 = vmul.f32 %v3598_v49, %v5782_v41  ;;  %v1835_v60 = vsel %vm26_vm0, %v1818_v59, 0.0 }
 0x1b9   :  { %v1852_v31 = vsel %vm26_vm0, %v1819_v61, 0.0  ;;  %v1824_v34 = vmul.f32 %v3600_v48, %v5784_v28  ;;  %v1825_v4 = vmul.f32 %v3600_v48, %v5793_v15  ;;  %v1836_v54 = vadd.f32 %v1835_v60, %v1834_v30 }
 0x1ba   :  { %v1837_v9 = vsel %vm26_vm0, %v1820_v43, 0.0  ;;  %v3602_v38 = vpop.eup %3601  ;;  %v1839_v37 = vsel %vm26_vm0, %v1822_v11, 0.0  ;;  %v1853_v46 = vadd.f32 %v1852_v31, %v1851_v24  ;;  %v1854_v42 = vsel %vm26_vm0, %v1821_v18, 0.0 }
 0x1bb   :  { %v5916_v12 = vadd.f32 %v1814_v16, %v5559_v47  ;;  %v1826_v41 = vmul.f32 %v3602_v38, %v5795_v19  ;;  %v1827_v29 = vmul.f32 %v3602_v38, %v5802_v50  ;;  %v1838_v26 = vadd.f32 %v1837_v9, %v1836_v54 }
 0x1bc   :  { %v1856_v28 = vsel %vm26_vm0, %v1823_v53, 0.0  ;;  %v3604_v15 = vpop.eup %3603  ;;  %v1841_v1 = vsel %vm26_vm0, %v1824_v34, 0.0  ;;  %v1855_v55 = vadd.f32 %v1854_v42, %v1853_v46  ;;  %v5923_v14 = vadd.f32 %v1815_v39, %v5566_v23  ;;  %v7401_v46 = vld [vmem:[#allocation38_spill] sm:$0xff] }
 0x1bd   :  { %7391 = vst [vmem:[#allocation37_spill] sm:$0xff] %v5916_v12  ;;  %v1943_v49 = vrot.slane %v5892_v6, 1  ;;  %v1828_v30 = vmul.f32 %v3604_v15, %v5804_v10  ;;  %v1829_v47 = vmul.f32 %v3604_v15, %v5810_v21  ;;  %v1840_v16 = vadd.f32 %v1839_v37, %v1838_v26  ;;  %v7409_v26 = vld [vmem:[#allocation14_spill] sm:$0xff] }
 0x1be   :  { %7392 = vst [vmem:[#allocation18_spill] sm:$0xff] %v5923_v14  ;;  %v1858_v19 = vsel %vm26_vm0, %v1825_v4, 0.0  ;;  %v1843_v50 = vsel %vm26_vm0, %v1826_v41, 0.0  ;;  %v1857_v24 = vadd.f32 %v1856_v28, %v1855_v55  ;;  %v5931_v48 = vadd.f32 %v1816_v25, %v5574_v58 }
 0x1bf   :  { %v5934_v60 = vadd.f32 %v1817_v44, %v5577_v51  ;;  %v3606_v23 = vpop.eup %3605  ;;  %v1842_v39 = vadd.f32 %v1841_v1, %v1840_v16  ;;  %v1860_v31 = vsel %vm26_vm0, %v1827_v29, 0.0  ;;  %v5938_v10 = vadd.f32 %v1818_v59, %v5581_v0  ;;  %v7411_v1 = vld [vmem:[#allocation15_spill] sm:$0xff]  ;;  %v5997_v16 = vld [vmem:[%s7142_s0 + $0x3e0] sm:$0xff] }
 0x1c0   :  { %7393 = vst [vmem:[#allocation10_spill] sm:$0xff] %v5931_v48  ;;  %v5941_v21 = vadd.f32 %v1819_v61, %v5584_v52  ;;  %v1830_v54 = vmul.f32 %v3606_v23, %v5813_v22  ;;  %v1831_v9 = vmul.f32 %v3606_v23, %v5817_v35  ;;  %v1845_v58 = vsel %vm26_vm0, %v1828_v30, 0.0 }
 0x1c1   :  { %7394 = vst [vmem:[#allocation39_spill] sm:$0xff] %v5934_v60  ;;  %7395 = vst [vmem:[#allocation40_spill] sm:$0xff] %v5938_v10  ;;  %v1859_v25 = vadd.f32 %v1858_v19, %v1857_v24  ;;  %v1844_v38 = vadd.f32 %v1843_v50, %v1842_v39  ;;  %v1862_v51 = vsel %vm26_vm0, %v1829_v47, 0.0  ;;  %v5948_v44 = vadd.f32 %v1820_v43, %v5591_v3  ;;  %v7403_v3 = vld [vmem:[#allocation12_spill] sm:$0xff] }
 0x1c2   :  { %7396 = vst [vmem:[#allocation41_spill] sm:$0xff] %v5941_v21  ;;  %v5951_v37 = vadd.f32 %v1821_v18, %v5594_v20  ;;  %v1847_v0 = vsel %vm26_vm0, %v1830_v54, 0.0  ;;  %v5955_v59 = vadd.f32 %v1822_v11, %v5598_v33  ;;  %v5958_v22 = vadd.f32 %v1823_v53, %v5601_v45  ;;  %v5970_v20 = vld [vmem:[%s7142_s0 + $0x3c8] sm:$0xff]  ;;  %v5975_v33 = vld [vmem:[%s7142_s0 + $0x3d0] sm:$0xff]  ;;  %v5980_v45 = vld [vmem:[%s7142_s0 + $0x3d8] sm:$0xff] }
 0x1c3   :  { %7397 = vst [vmem:[#allocation42_spill] sm:$0xff] %v5948_v44  ;;  %v1861_v52 = vadd.f32 %v1860_v31, %v1859_v25  ;;  %v1846_v35 = vadd.f32 %v1845_v58, %v1844_v38  ;;  %v1864_v61 = vsel %vm26_vm0, %v1831_v9, 0.0  ;;  %v5962_v42 = vadd.f32 %v1824_v34, %v7401_v46  ;;  %v7405_v11 = vld [vmem:[#allocation11_spill] sm:$0xff]  ;;  %v7407_v34 = vld [vmem:[#allocation13_spill] sm:$0xff] }
 0x1c4   :  { %7398 = vst [vmem:[#allocation43_spill] sm:$0xff] %v5951_v37  ;;  %7399 = vst [vmem:[#allocation44_spill] sm:$0xff] %v5955_v59  ;;  %v5965_v43 = vadd.f32 %v1825_v4, %v7403_v3  ;;  %v5983_v53 = vadd.f32 %v1826_v41, %v7405_v11  ;;  %v5986_v4 = vadd.f32 %v1827_v29, %v7407_v34  ;;  %v6002_v41 = vld [vmem:[%s7142_s0 + $0x3e8] sm:$0xff]  ;;  %v1972_v50 = vsel %vm26_vm0, %v5975_v33, -inf  ;;  %v7415_v3 = vld [vmem:[#allocation17_spill] sm:$0xff] }
 0x1c5   :  { %7400 = vst [vmem:[#allocation45_spill] sm:$0xff] %v5958_v22  ;;  %7402 = vst [vmem:[#allocation38_spill] sm:$0xff] %v5962_v42  ;;  %v1863_v18 = vadd.f32 %v1862_v51, %v1861_v52  ;;  %v5989_v28 = vadd.f32 %v1828_v30, %v7409_v26  ;;  %v1848_v15 = vadd.f32 %v1847_v0, %v1846_v35  ;;  %v1957_v30 = vrot.slane %v5894_v40, 4 }
 0x1c6   :  { %7404 = vst [vmem:[#allocation12_spill] sm:$0xff] %v5965_v43  ;;  %7406 = vst [vmem:[#allocation11_spill] sm:$0xff] %v5983_v53  ;;  %v5992_v55 = vadd.f32 %v1829_v47, %v7411_v1  ;;  %v1949_v29 = vmax.f32 %v5862_v32, %v1948_v62  ;;  %v1964_v47 = vsel %vm26_vm0, %v5970_v20, -inf  ;;  %v1973_v24 = vsel %vm26_vm0, %v5980_v45, -inf }
 0x1c7   :  { %7408 = vst [vmem:[#allocation13_spill] sm:$0xff] %v5986_v4  ;;  %7410 = vst [vmem:[#allocation14_spill] sm:$0xff] %v5989_v28  ;;  %v1865_v19 = vadd.f32 %v1864_v61, %v1863_v18  ;;  %v3182_v23 = vadd.f32 -1.0, %v1848_v15  ;;  %v1958_v31 = vmax.f32 %v5894_v40, %v1957_v30  ;;  %v1965_v58 = vmax.f32 %v5898_v63, %v1964_v47  ;;  %v7413_v61 = vld [vmem:[#allocation16_spill] sm:$0xff] }
 0x1c8   :  { %7412 = vst [vmem:[#allocation15_spill] sm:$0xff] %v5992_v55  ;;  %v1950_v39 = vrot.slane %v1949_v29, 2  ;;  %v1974_v32 = vmax.f32 %v1972_v50, %v1973_v24  ;;  %v1981_v62 = vsel %vm26_vm0, %v5997_v16, -inf  ;;  %v1982_v38 = vsel %vm26_vm0, %v6002_v41, -inf }
 0x1c9   :  { %v3183_v25 = vadd.f32 -1.0, %v1865_v19  ;;  %v1868_v51 = vmul.f32 %v3182_v23, %v3182_v23  ;;  %v1959_v52 = vrot.slane %v1958_v31, 2  ;;  %v1966_v35 = vrot.slane %v1965_v58, 4  ;;  %v7417_v19 = vld [vmem:[#allocation29_spill] sm:$0xff] }
 0x1ca   :  { %v1951_v0 = vmax.f32 %v1949_v29, %v1950_v39  ;;  %v6021_v46 = vadd.f32 %v1830_v54, %v7413_v61  ;;  %v6024_v18 = vadd.f32 %v1831_v9, %v7415_v3  ;;  %v1975_v40 = vrot.slane %v1974_v32, 4  ;;  %v7418_v54 = vld [vmem:[#allocation30_spill] sm:$0xff]  ;;  %v7423_v3 = vld [vmem:[#allocation35_spill] sm:$0xff] }
 0x1cb   :  { %v1983_v63 = vmax.f32 %v1981_v62, %v1982_v38  ;;  %v1944_v11 = vmax.f32 %v5892_v6, %v1943_v49  ;;  %v1960_v26 = vmax.f32 %v1958_v31, %v1959_v52  ;;  %v1967_v15 = vmax.f32 %v1965_v58, %v1966_v35  ;;  %v7419_v38 = vld [vmem:[#allocation31_spill] sm:$0xff]  ;;  %v7420_v49 = vld [vmem:[#allocation32_spill] sm:$0xff]  ;;  %v7422_v35 = vld [vmem:[#allocation34_spill] sm:$0xff] }
 0x1cc   :  { %7414 = vst [vmem:[#allocation16_spill] sm:$0xff] %v6021_v46  ;;  %7416 = vst [vmem:[#allocation17_spill] sm:$0xff] %v6024_v18  ;;  %v1952_v34 = vrot.slane %v1951_v0, 1  ;;  %v1869_v1 = vmul.f32 %v3183_v25, %v3183_v25  ;;  %v1976_v30 = vmax.f32 %v1974_v32, %v1975_v40  ;;  %v1990_v47 = vsub.f32 %v7417_v19, %v5867_v27  ;;  %v7421_v32 = vld [vmem:[#allocation33_spill] sm:$0xff] }
 0x1cd   :  { %v1984_v29 = vrot.slane %v1983_v63, 4  ;;  %v6032_v50 = vadd.f32 %v1868_v51, %v7418_v54  ;;  %v1961_v24 = vrot.slane %v1960_v26, 1  ;;  %v1968_v23 = vrot.slane %v1967_v15, 2 }
 0x1ce   :  { %v1953_v9 = vmax.f32 %v1951_v0, %v1952_v34  ;;  %v1977_v39 = vrot.slane %v1976_v30, 2  ;;  %v1991_v6 = vsub.f32 %v7419_v38, %v5867_v27  ;;  %v1992_v31 = vsub.f32 %v7420_v49, %v5883_v17 }
 0x1cf   :  { %v1985_v62 = vmax.f32 %v1983_v63, %v1984_v29  ;;  %v1962_v58 = vmax.f32 %v1960_v26, %v1961_v24  ;;  %v1969_v25 = vmax.f32 %v1967_v15, %v1968_v23  ;;  %v1993_v52 = vsub.f32 %v7421_v32, %v5883_v17  ;;  %v7424_v63 = vld [vmem:[#allocation36_spill] sm:$0xff] }
 0x1d0   :  { %v1994_v51 = vsub.f32 %v7422_v35, %v5885_v7  ;;  %v1978_v61 = vmax.f32 %v1976_v30, %v1977_v39  ;;  %v1995_v40 = vsub.f32 %v7423_v3, %v5885_v7  ;;  %v1996_v34 = vsub.f32 %v7424_v63, %v1944_v11 }
 0x1d1   :  { %v1986_v0 = vrot.slane %v1985_v62, 2  ;;  %v1970_v29 = vrot.slane %v1969_v25, 1  ;;  %v1997_v27 = vsub.f32 %v5828_v8, %v1944_v11  ;;  %v1998_v19 = vsub.f32 %v5836_v57, %v1953_v9 }
 0x1d2   :  { %v1999_v26 = vsub.f32 %v5842_v56, %v1953_v9  ;;  %v1979_v15 = vrot.slane %v1978_v61, 1  ;;  %v2008_v17 = vmul.f32 1.442695, %v1990_v47  ;;  %v2010_v24 = vmul.f32 1.442695, %v1991_v6 }
 0x1d3   :  { %v1987_v54 = vmax.f32 %v1985_v62, %v1986_v0  ;;  %v1971_v23 = vmax.f32 %v1969_v25, %v1970_v29  ;;  %v2000_v30 = vsub.f32 %v5847_v2, %v1962_v58  ;;  %v2012_v39 = vmul.f32 1.442695, %v1992_v31  ;;  %v6082_v25 = vld [vmem:[%s7142_s0 + $0x410] sm:$0xff] }
 0x1d4   :  { %v2014_v38 = vmul.f32 1.442695, %v1993_v52  ;;  %v1980_v49 = vmax.f32 %v1978_v61, %v1979_v15  ;;  %3607 = vpow2.f32 %v2008_v17  ;;  %v2016_v32 = vmul.f32 1.442695, %v1994_v51  ;;  %v6087_v52 = vld [vmem:[%s7142_s0 + $0x418] sm:$0xff]  ;;  %v6106_v17 = vld [vmem:[%s7142_s0 + $0x420] sm:$0xff] }
 0x1d5   :  { %v1988_v7 = vrot.slane %v1987_v54, 1  ;;  %v2001_v35 = vsub.f32 %v5854_v13, %v1962_v58  ;;  %v2002_v8 = vsub.f32 %v5876_v5, %v1971_v23  ;;  %3609 = vpow2.f32 %v2010_v24  ;;  %v6059_v13 = vld [vmem:[%s7142_s0 + $0x3f0] sm:$0xff] }
 0x1d6   :  { %v2018_v57 = vmul.f32 1.442695, %v1995_v40  ;;  %v2003_v11 = vsub.f32 %v5970_v20, %v1971_v23  ;;  %3611 = vpow2.f32 %v2012_v39  ;;  %v2020_v47 = vmul.f32 1.442695, %v1996_v34  ;;  %v6065_v20 = vld [vmem:[%s7142_s0 + $0x3f8] sm:$0xff] }
 0x1d7   :  { %v1989_v56 = vmax.f32 %v1987_v54, %v1988_v7  ;;  %v6053_v9 = vadd.f32 %v1869_v1, %v5860_v36  ;;  %v2004_v2 = vsub.f32 %v5975_v33, %v1980_v49  ;;  %3613 = vpow2.f32 %v2014_v38  ;;  %v6070_v36 = vld [vmem:[%s7142_s0 + $0x400] sm:$0xff] }
 0x1d8   :  { %v2022_v62 = vmul.f32 1.442695, %v1997_v27  ;;  %v2005_v5 = vsub.f32 %v5980_v45, %v1980_v49  ;;  %3615 = vpow2.f32 %v2016_v32  ;;  %v2024_v6 = vmul.f32 1.442695, %v1998_v19  ;;  %v6077_v45 = vld [vmem:[%s7142_s0 + $0x408] sm:$0xff] }
 0x1d9   :  { %v2026_v31 = vmul.f32 1.442695, %v1999_v26  ;;  %v2006_v33 = vsub.f32 %v5997_v16, %v1989_v56  ;;  %v2007_v1 = vsub.f32 %v6002_v41, %v1989_v56  ;;  %3617 = vpow2.f32 %v2018_v57 }
 0x1da   :  { %v2028_v58 = vmul.f32 1.442695, %v2000_v30  ;;  %3619 = vpow2.f32 %v2020_v47  ;;  %v2030_v16 = vmul.f32 1.442695, %v2001_v35  ;;  %v2032_v41 = vmul.f32 1.442695, %v2002_v8 }
 0x1db   :  { %v2034_v51 = vmul.f32 1.442695, %v2003_v11  ;;  %3621 = vpow2.f32 %v2022_v62  ;;  %v2036_v61 = vmul.f32 1.442695, %v2004_v2  ;;  %v2211_v0 = vsel %vm26_vm0, %v6059_v13, -inf }
 0x1dc   :  { %v2212_v3 = vsel %vm26_vm0, %v6065_v20, -inf  ;;  %3623 = vpow2.f32 %v2024_v6  ;;  %v2220_v63 = vsel %vm26_vm0, %v6070_v36, -inf  ;;  %v2221_v34 = vsel %vm26_vm0, %v6077_v45, -inf }
 0x1dd   :  { %v2213_v40 = vmax.f32 %v2211_v0, %v2212_v3  ;;  %3625 = vpow2.f32 %v2026_v31  ;;  %v2222_v29 = vmax.f32 %v2220_v63, %v2221_v34  ;;  %v2229_v27 = vsel %vm26_vm0, %v6082_v25, -inf }
 0x1de   :  { %v2230_v19 = vsel %vm26_vm0, %v6087_v52, -inf  ;;  %v6101_v26 = vpop.eup %3607  ;;  %3627 = vpow2.f32 %v2028_v58  ;;  %v2038_v15 = vmul.f32 1.442695, %v2005_v5  ;;  %v2040_v54 = vmul.f32 1.442695, %v2006_v33  ;;  %v6135_v58 = vld [vmem:[%s7142_s0 + $0x428] sm:$0xff] }
 0x1df   :  { %v2214_v24 = vrot.slane %v2213_v40, 4  ;;  %v6108_v23 = vpop.eup %3609  ;;  %3629 = vpow2.f32 %v2030_v16  ;;  %v2042_v30 = vmul.f32 1.442695, %v2007_v1  ;;  %v2044_v39 = vsel %vm26_vm0, %v6101_v26, 0.0 }
 0x1e0   :  { %v2223_v38 = vrot.slane %v2222_v29, 4  ;;  %v6112_v49 = vpop.eup %3611  ;;  %3631 = vpow2.f32 %v2032_v41  ;;  %v2045_v7 = vsel %vm26_vm0, %v6108_v23, 0.0  ;;  %v2231_v35 = vmax.f32 %v2229_v27, %v2230_v19 }
 0x1e1   :  { %v2215_v32 = vmax.f32 %v2213_v40, %v2214_v24  ;;  %v6116_v8 = vpop.eup %3613  ;;  %3633 = vpow2.f32 %v2034_v51  ;;  %v2046_v57 = vadd.f32 %v2045_v7, %v2044_v39  ;;  %v2053_v56 = vsel %vm26_vm0, %v6112_v49, 0.0 }
 0x1e2   :  { %v6122_v11 = vsel %vm26_vm0, %v6106_v17, -inf  ;;  %v6124_v47 = vpop.eup %3615  ;;  %3635 = vpow2.f32 %v2036_v61  ;;  %v2054_v2 = vsel %vm26_vm0, %v6116_v8, 0.0  ;;  %v2224_v5 = vmax.f32 %v2222_v29, %v2223_v38 }
 0x1e3   :  { %v2216_v62 = vrot.slane %v2215_v32, 2  ;;  %v6128_v6 = vpop.eup %3617  ;;  %3637 = vpow2.f32 %v2038_v15  ;;  %v2047_v31 = vrot.slane %v2046_v57, 4  ;;  %v2055_v33 = vadd.f32 %v2054_v2, %v2053_v56 }
 0x1e4   :  { %v2062_v1 = vsel %vm26_vm0, %v6124_v47, 0.0  ;;  %v6137_v16 = vpop.eup %3619  ;;  %3639 = vpow2.f32 %v2040_v54  ;;  %v2063_v41 = vsel %vm26_vm0, %v6128_v6, 0.0  ;;  %v2232_v61 = vrot.slane %v2231_v35, 4 }
 0x1e5   :  { %v6141_v51 = vmax.f32 %v2215_v32, %v2216_v62  ;;  %v6143_v0 = vpop.eup %3621  ;;  %3641 = vpow2.f32 %v2042_v30  ;;  %v2048_v3 = vadd.f32 %v2047_v31, %v2046_v57  ;;  %v2056_v40 = vrot.slane %v2055_v33, 4 }
 0x1e6   :  { %v2064_v63 = vadd.f32 %v2063_v41, %v2062_v1  ;;  %v6145_v34 = vpop.eup %3623  ;;  %v2071_v29 = vsel %vm26_vm0, %v6137_v16, 0.0  ;;  %v2072_v27 = vsel %vm26_vm0, %v6143_v0, 0.0  ;;  %v2225_v19 = vrot.slane %v2224_v5, 2 }
 0x1e7   :  { %v6153_v15 = vsel %vm26_vm0, %v6135_v58, -inf  ;;  %v6155_v54 = vpop.eup %3625  ;;  %v2049_v24 = vrot.slane %v2048_v3, 2  ;;  %v2057_v30 = vadd.f32 %v2056_v40, %v2055_v33  ;;  %v2073_v38 = vadd.f32 %v2072_v27, %v2071_v29 }
 0x1e8   :  { %v2065_v39 = vrot.slane %v2064_v63, 4  ;;  %v6157_v7 = vpop.eup %3627  ;;  %v2080_v32 = vsel %vm26_vm0, %v6145_v34, 0.0  ;;  %v2081_v57 = vsel %vm26_vm0, %v6155_v54, 0.0  ;;  %v2233_v2 = vmax.f32 %v2231_v35, %v2232_v61 }
 0x1e9   :  { %v6164_v62 = vpop.eup %3629  ;;  %v2050_v31 = vadd.f32 %v2049_v24, %v2048_v3  ;;  %v2058_v1 = vrot.slane %v2057_v30, 2  ;;  %v2074_v18 = vrot.slane %v2073_v38, 4  ;;  %v2082_v40 = vadd.f32 %v2081_v57, %v2080_v32 }
 0x1ea   :  { %v2066_v41 = vadd.f32 %v2065_v39, %v2064_v63  ;;  %v6166_v33 = vpop.eup %3631  ;;  %v2089_v29 = vsel %vm26_vm0, %v6157_v7, 0.0  ;;  %v2090_v27 = vsel %vm26_vm0, %v6164_v62, 0.0  ;;  %v6172_v46 = vmax.f32 %v2224_v5, %v2225_v19 }
 0x1eb   :  { %v6174_v55 = vpop.eup %3633  ;;  %v2051_v35 = vrot.slane %v2050_v31, 1  ;;  %v2059_v61 = vadd.f32 %v2058_v1, %v2057_v30  ;;  %v2075_v3 = vadd.f32 %v2074_v18, %v2073_v38  ;;  %v2083_v63 = vrot.slane %v2082_v40, 4 }
 0x1ec   :  { %v2067_v56 = vrot.slane %v2066_v41, 2  ;;  %v6176_v24 = vpop.eup %3635  ;;  %v2091_v39 = vadd.f32 %v2090_v27, %v2089_v29  ;;  %v2098_v32 = vsel %vm26_vm0, %v6166_v33, 0.0  ;;  %v2099_v57 = vsel %vm26_vm0, %v6174_v55, 0.0 }
 0x1ed   :  { %v6182_v28 = vpop.eup %3637  ;;  %v2052_v5 = vadd.f32 %v2051_v35, %v2050_v31  ;;  %v2060_v19 = vrot.slane %v2059_v61, 1  ;;  %v2076_v53 = vrot.slane %v2075_v3, 2  ;;  %v2084_v30 = vadd.f32 %v2083_v63, %v2082_v40 }
 0x1ee   :  { %v2068_v4 = vadd.f32 %v2067_v56, %v2066_v41  ;;  %v6184_v43 = vpop.eup %3639  ;;  %v2092_v18 = vrot.slane %v2091_v39, 4  ;;  %v2100_v38 = vadd.f32 %v2099_v57, %v2098_v32  ;;  %v2107_v1 = vsel %vm26_vm0, %v6176_v24, 0.0 }
 0x1ef   :  { %v6188_v29 = vpop.eup %3641  ;;  %v2061_v27 = vadd.f32 %v2060_v19, %v2059_v61  ;;  %v2077_v22 = vadd.f32 %v2076_v53, %v2075_v3  ;;  %v2108_v59 = vsel %vm26_vm0, %v6182_v28, 0.0  ;;  %v2085_v31 = vrot.slane %v2084_v30, 2 }
 0x1f0   :  { %v2069_v42 = vrot.slane %v2068_v4, 1  ;;  %v2093_v35 = vadd.f32 %v2092_v18, %v2091_v39  ;;  %v2101_v56 = vrot.slane %v2100_v38, 4  ;;  %v2109_v41 = vadd.f32 %v2108_v59, %v2107_v1 }
 0x1f1   :  { %v2078_v44 = vrot.slane %v2077_v22, 1  ;;  %v2116_v40 = vsel %vm26_vm0, %v6184_v43, 0.0  ;;  %v2117_v63 = vsel %vm26_vm0, %v6188_v29, 0.0  ;;  %v2086_v32 = vadd.f32 %v2085_v31, %v2084_v30 }
 0x1f2   :  { %v2070_v37 = vadd.f32 %v2069_v42, %v2068_v4  ;;  %v2094_v57 = vrot.slane %v2093_v35, 2  ;;  %v2102_v61 = vadd.f32 %v2101_v56, %v2100_v38  ;;  %v2110_v19 = vrot.slane %v2109_v41, 4 }
 0x1f3   :  { %v2079_v53 = vadd.f32 %v2078_v44, %v2077_v22  ;;  %v2118_v3 = vadd.f32 %v2117_v63, %v2116_v40  ;;  %3643 = vrcp.f32 %v2052_v5  ;;  %v2234_v21 = vrot.slane %v2233_v2, 2  ;;  %v6201_v44 = vld [vmem:[%s7142_s0 + $0x430] sm:$0xff] }
 0x1f4   :  { %v2087_v10 = vrot.slane %v2086_v32, 1  ;;  %v2095_v39 = vadd.f32 %v2094_v57, %v2093_v35  ;;  %v2103_v18 = vrot.slane %v2102_v61, 2  ;;  %v2111_v59 = vadd.f32 %v2110_v19, %v2109_v41 }
 0x1f5   :  { %v2119_v42 = vrot.slane %v2118_v3, 4  ;;  %3645 = vrcp.f32 %v2061_v27  ;;  %v2235_v4 = vmax.f32 %v2233_v2, %v2234_v21  ;;  %v2240_v1 = vmax.f32 %v6122_v11, %v6153_v15  ;;  %v6217_v15 = vld [vmem:[%s7142_s0 + $0x448] sm:$0xff] }
 0x1f6   :  { %v2088_v60 = vadd.f32 %v2087_v10, %v2086_v32  ;;  %v2096_v48 = vrot.slane %v2095_v39, 1  ;;  %v2104_v30 = vadd.f32 %v2103_v18, %v2102_v61  ;;  %v2112_v31 = vrot.slane %v2111_v59, 2  ;;  %v6207_v10 = vld [vmem:[%s7142_s0 + $0x438] sm:$0xff] }
 0x1f7   :  { %v2120_v38 = vadd.f32 %v2119_v42, %v2118_v3  ;;  %3647 = vrcp.f32 %v2070_v37  ;;  %v2227_v22 = vrot.slane %v6172_v46, 1  ;;  %v2241_v5 = vrot.slane %v2240_v1, 4  ;;  %v6212_v37 = vld [vmem:[%s7142_s0 + $0x440] sm:$0xff] }
 0x1f8   :  { %v2097_v35 = vadd.f32 %v2096_v48, %v2095_v39  ;;  %v2105_v27 = vrot.slane %v2104_v30, 1  ;;  %v2113_v21 = vadd.f32 %v2112_v31, %v2111_v59  ;;  %3649 = vrcp.f32 %v2079_v53 }
 0x1f9   :  { %v2121_v11 = vrot.slane %v2120_v38, 2  ;;  %3651 = vrcp.f32 %v2088_v60  ;;  %v2236_v48 = vrot.slane %v2235_v4, 1  ;;  %v2242_v2 = vmax.f32 %v2240_v1, %v2241_v5 }
 0x1fa   :  { %v2106_v56 = vadd.f32 %v2105_v27, %v2104_v30  ;;  %v2114_v41 = vrot.slane %v2113_v21, 1  ;;  %3653 = vrcp.f32 %v2097_v35  ;;  %v2247_v40 = vsel %vm26_vm0, %v6201_v44, -inf }
 0x1fb   :  { %v2122_v63 = vadd.f32 %v2121_v11, %v2120_v38  ;;  %v2243_v32 = vrot.slane %v2242_v2, 2  ;;  %v2248_v57 = vsel %vm26_vm0, %v6207_v10, -inf  ;;  %v2256_v60 = vsel %vm26_vm0, %v6212_v37, -inf  ;;  %v6244_v38 = vld [vmem:[%s7142_s0 + $0x450] sm:$0xff] }
 0x1fc   :  { %v2115_v61 = vadd.f32 %v2114_v41, %v2113_v21  ;;  %3655 = vrcp.f32 %v2106_v56  ;;  %v2249_v19 = vmax.f32 %v2247_v40, %v2248_v57  ;;  %v2257_v53 = vsel %vm26_vm0, %v6217_v15, -inf }
 0x1fd   :  { %v3644_v3 = vpop.eup %3643  ;;  %v2123_v39 = vrot.slane %v2122_v63, 1  ;;  %v7425_v18 = vrot.slane %v6141_v51, 1  ;;  %v6233_v42 = vmax.f32 %v6172_v46, %v2227_v22  ;;  %v2258_v1 = vmax.f32 %v2256_v60, %v2257_v53 }
 0x1fe   :  { %3657 = vrcp.f32 %v2115_v61  ;;  %v6236_v30 = vmul.f32 %v3644_v3, %v6101_v26  ;;  %v6239_v31 = vmul.f32 %v3644_v3, %v6108_v23  ;;  %v2250_v5 = vrot.slane %v2249_v19, 4 }
 0x1ff   :  { %v6230_v59 = vmax.f32 %v6141_v51, %v7425_v18  ;;  %v3646_v35 = vpop.eup %3645  ;;  %v2124_v51 = vadd.f32 %v2123_v39, %v2122_v63  ;;  %v6246_v27 = vmax.f32 %v2235_v4, %v2236_v48  ;;  %v6248_v46 = vmax.f32 %v2242_v2, %v2243_v32 }
 0x200   :  { %v2259_v22 = vrot.slane %v2258_v1, 4  ;;  %v6251_v21 = vmul.f32 %v3646_v35, %v6112_v49  ;;  %v6254_v26 = vmul.f32 %v3646_v35, %v6116_v8  ;;  %v2152_v23 = vsel %vm26_vm0, %v6236_v30, 0.0 }
 0x201   :  { %v2169_v11 = vsel %vm26_vm0, %v6239_v31, 0.0  ;;  %v3648_v56 = vpop.eup %3647  ;;  %3659 = vrcp.f32 %v2124_v51  ;;  %v2251_v41 = vmax.f32 %v2249_v19, %v2250_v5  ;;  %v2265_v48 = vsel %vm26_vm0, %v6244_v38, -inf }
 0x202   :  { %v2260_v4 = vmax.f32 %v2258_v1, %v2259_v22  ;;  %v3650_v2 = vpop.eup %3649  ;;  %v6263_v49 = vmul.f32 %v3648_v56, %v6124_v47  ;;  %v6266_v8 = vmul.f32 %v3648_v56, %v6128_v6  ;;  %v2153_v40 = vsel %vm26_vm0, %v6251_v21, 0.0  ;;  %v6281_v47 = vld [vmem:[%s7142_s0 + $0x458] sm:$0xff] }
 0x203   :  { %v2170_v63 = vsel %vm26_vm0, %v6254_v26, 0.0  ;;  %v3652_v32 = vpop.eup %3651  ;;  %v6273_v57 = vmul.f32 %v3650_v2, %v6137_v16  ;;  %v6276_v60 = vmul.f32 %v3650_v2, %v6143_v0  ;;  %v2154_v61 = vadd.f32 %v2153_v40, %v2152_v23 }
 0x204   :  { %v2171_v19 = vadd.f32 %v2170_v63, %v2169_v11  ;;  %v3654_v6 = vpop.eup %3653  ;;  %v6284_v53 = vmul.f32 %v3652_v32, %v6145_v34  ;;  %v6287_v3 = vmul.f32 %v3652_v32, %v6155_v54  ;;  %v2155_v16 = vsel %vm26_vm0, %v6263_v49, 0.0 }
 0x205   :  { %v2172_v0 = vsel %vm26_vm0, %v6266_v8, 0.0  ;;  %v6294_v39 = vmul.f32 %v3654_v6, %v6157_v7  ;;  %v6297_v18 = vmul.f32 %v3654_v6, %v6164_v62  ;;  %v2156_v1 = vadd.f32 %v2155_v16, %v2154_v61 }
 0x206   :  { %v2157_v34 = vsel %vm26_vm0, %v6273_v57, 0.0  ;;  %v3656_v5 = vpop.eup %3655  ;;  %v2159_v54 = vsel %vm26_vm0, %v6284_v53, 0.0  ;;  %v2173_v35 = vadd.f32 %v2172_v0, %v2171_v19  ;;  %v2174_v51 = vsel %vm26_vm0, %v6276_v60, 0.0  ;;  %v6330_v0 = vld [vmem:[%s7142_s0 + $0x460] sm:$0xff] }
 0x207   :  { %v2266_v22 = vsel %vm26_vm0, %v6281_v47, -inf  ;;  %v6308_v7 = vmul.f32 %v3656_v5, %v6166_v33  ;;  %v6311_v62 = vmul.f32 %v3656_v5, %v6174_v55  ;;  %v2158_v23 = vadd.f32 %v2157_v34, %v2156_v1 }
 0x208   :  { %v2176_v11 = vsel %vm26_vm0, %v6287_v3, 0.0  ;;  %v3658_v56 = vpop.eup %3657  ;;  %v2161_v2 = vsel %vm26_vm0, %v6294_v39, 0.0  ;;  %v2175_v40 = vadd.f32 %v2174_v51, %v2173_v35  ;;  %v2252_v63 = vrot.slane %v2251_v41, 2 }
 0x209   :  { %7426 = vst [vmem:[#allocation29_spill] sm:$0xff] %v6308_v7  ;;  %7427 = vst [vmem:[#allocation30_spill] sm:$0xff] %v6311_v62  ;;  %v2261_v32 = vrot.slane %v2260_v4, 2  ;;  %v6318_v61 = vmul.f32 %v3658_v56, %v6176_v24  ;;  %v6321_v33 = vmul.f32 %v3658_v56, %v6182_v28  ;;  %v2160_v19 = vadd.f32 %v2159_v54, %v2158_v23 }
 0x20a   :  { %v2178_v55 = vsel %vm26_vm0, %v6297_v18, 0.0  ;;  %v2163_v6 = vsel %vm26_vm0, %v6308_v7, 0.0  ;;  %v2177_v16 = vadd.f32 %v2176_v11, %v2175_v40  ;;  %v2253_v1 = vmax.f32 %v2251_v41, %v2252_v63  ;;  %v6346_v41 = vld [vmem:[%s7142_s0 + $0x468] sm:$0xff] }
 0x20b   :  { %7428 = vst [vmem:[#allocation31_spill] sm:$0xff] %v6318_v61  ;;  %7429 = vst [vmem:[#allocation32_spill] sm:$0xff] %v6321_v33  ;;  %v2262_v34 = vmax.f32 %v2260_v4, %v2261_v32  ;;  %v3660_v24 = vpop.eup %3659  ;;  %v2162_v5 = vadd.f32 %v2161_v2, %v2160_v19  ;;  %v2180_v28 = vsel %vm26_vm0, %v6311_v62, 0.0  ;;  %v2245_v54 = vrot.slane %v6248_v46, 1 }
 0x20c   :  { %v2267_v35 = vmax.f32 %v2265_v48, %v2266_v22  ;;  %v6336_v51 = vmul.f32 %v3660_v24, %v6184_v43  ;;  %v6339_v23 = vmul.f32 %v3660_v24, %v6188_v29  ;;  %v2165_v11 = vsel %vm26_vm0, %v6318_v61, 0.0  ;;  %v6353_v43 = vld [vmem:[%s7142_s0 + $0x470] sm:$0xff]  ;;  %v6358_v29 = vld [vmem:[%s7142_s0 + $0x478] sm:$0xff] }
 0x20d   :  { %v2179_v56 = vadd.f32 %v2178_v55, %v2177_v16  ;;  %v2164_v4 = vadd.f32 %v2163_v6, %v2162_v5  ;;  %v2182_v2 = vsel %vm26_vm0, %v6321_v33, 0.0  ;;  %v2274_v22 = vsel %vm26_vm0, %v6330_v0, -inf }
 0x20e   :  { %7430 = vst [vmem:[#allocation33_spill] sm:$0xff] %v6336_v51  ;;  %7431 = vst [vmem:[#allocation34_spill] sm:$0xff] %v6339_v23  ;;  %v2268_v48 = vrot.slane %v2267_v35, 4  ;;  %v2167_v40 = vsel %vm26_vm0, %v6336_v51, 0.0  ;;  %v2254_v32 = vrot.slane %v2253_v1, 1  ;;  %v2263_v19 = vrot.slane %v2262_v34, 1 }
 0x20f   :  { %v2181_v63 = vadd.f32 %v2180_v28, %v2179_v56  ;;  %v2166_v55 = vadd.f32 %v2165_v11, %v2164_v4  ;;  %v2184_v6 = vsel %vm26_vm0, %v6339_v23, 0.0  ;;  %v2275_v24 = vsel %vm26_vm0, %v6346_v41, -inf }
 0x210   :  { %v2269_v16 = vmax.f32 %v2267_v35, %v2268_v48  ;;  %v2276_v14 = vmax.f32 %v2274_v22, %v2275_v24  ;;  %v2283_v12 = vsel %vm26_vm0, %v6353_v43, -inf  ;;  %v2284_v33 = vsel %vm26_vm0, %v6358_v29, -inf }
 0x211   :  { %v2183_v5 = vadd.f32 %v2182_v2, %v2181_v63  ;;  %v2168_v51 = vadd.f32 %v2167_v40, %v2166_v55  ;;  %v2246_v28 = vmax.f32 %v6248_v46, %v2245_v54  ;;  %v2285_v11 = vmax.f32 %v2283_v12, %v2284_v33 }
 0x212   :  { %v2270_v56 = vrot.slane %v2269_v16, 2  ;;  %v2255_v61 = vmax.f32 %v2253_v1, %v2254_v32  ;;  %v6373_v23 = vmax.f32 %v2262_v34, %v2263_v19  ;;  %v2277_v35 = vrot.slane %v2276_v14, 4 }
 0x213   :  { %v2185_v4 = vadd.f32 %v2184_v6, %v2183_v5  ;;  %v3202_v48 = vadd.f32 -1.0, %v2168_v51  ;;  %v2286_v2 = vrot.slane %v2285_v11, 4  ;;  %v2292_v22 = vsub.f32 %v6059_v13, %v6230_v59 }
 0x214   :  { %v2271_v62 = vmax.f32 %v2269_v16, %v2270_v56  ;;  %v2278_v24 = vmax.f32 %v2276_v14, %v2277_v35  ;;  %v2293_v40 = vsub.f32 %v6065_v20, %v6230_v59  ;;  %v2294_v46 = vsub.f32 %v6070_v36, %v6233_v42 }
 0x215   :  { %v3203_v63 = vadd.f32 -1.0, %v2185_v4  ;;  %v2188_v12 = vmul.f32 %v3202_v48, %v3202_v48  ;;  %v2287_v1 = vmax.f32 %v2285_v11, %v2286_v2  ;;  %v2295_v34 = vsub.f32 %v6077_v45, %v6233_v42 }
 0x216   :  { %v2272_v33 = vrot.slane %v2271_v62, 1  ;;  %v2279_v51 = vrot.slane %v2278_v24, 2  ;;  %v2296_v32 = vsub.f32 %v6082_v25, %v6246_v27  ;;  %v2297_v14 = vsub.f32 %v6087_v52, %v6246_v27 }
 0x217   :  { %v2189_v54 = vmul.f32 %v3203_v63, %v3203_v63  ;;  %v2288_v13 = vrot.slane %v2287_v1, 2  ;;  %v2298_v20 = vsub.f32 %v6106_v17, %v2246_v28  ;;  %v2299_v59 = vsub.f32 %v6135_v58, %v2246_v28 }
 0x218   :  { %v2300_v36 = vsub.f32 %v6201_v44, %v2255_v61  ;;  %v6391_v19 = vadd.f32 %v2188_v12, %v6032_v50  ;;  %v2273_v55 = vmax.f32 %v2271_v62, %v2272_v33  ;;  %v2280_v45 = vmax.f32 %v2278_v24, %v2279_v51  ;;  %v6432_v24 = vld [vmem:[%s7142_s0 + $0x4a0] sm:$0xff] }
 0x219   :  { %v2301_v42 = vsub.f32 %v6207_v10, %v2255_v61  ;;  %v6395_v6 = vadd.f32 %v2189_v54, %v6053_v9  ;;  %v2289_v25 = vmax.f32 %v2287_v1, %v2288_v13  ;;  %v2302_v52 = vsub.f32 %v6212_v37, %v6373_v23  ;;  %v6404_v9 = vld [vmem:[%s7142_s0 + $0x480] sm:$0xff]  ;;  %7438 = vst [vmem:[#allocation50_spill] sm:$0xff] %v6432_v24  ;;  %v6446_v54 = vld [vmem:[%s7142_s0 + $0x4b0] sm:$0xff] }
 0x21a   :  { %7432 = vst [vmem:[#allocation35_spill] sm:$0xff] %v6391_v19  ;;  %v2310_v27 = vmul.f32 1.442695, %v2292_v22  ;;  %v2281_v17 = vrot.slane %v2280_v45, 1  ;;  %v2303_v58 = vsub.f32 %v6217_v15, %v6373_v23  ;;  %v2312_v44 = vmul.f32 1.442695, %v2293_v40 }
 0x21b   :  { %7433 = vst [vmem:[#allocation36_spill] sm:$0xff] %v6395_v6  ;;  %v2314_v16 = vmul.f32 1.442695, %v2294_v46  ;;  %v2290_v50 = vrot.slane %v2289_v25, 1  ;;  %v2316_v62 = vmul.f32 1.442695, %v2295_v34  ;;  %v2304_v61 = vsub.f32 %v6244_v38, %v2273_v55 }
 0x21c   :  { %3661 = vpow2.f32 %v2310_v27  ;;  %v2318_v5 = vmul.f32 1.442695, %v2296_v32  ;;  %7434 = vst [vmem:[#allocation46_spill] sm:$0xff] %v6404_v9  ;;  %v2282_v10 = vmax.f32 %v2280_v45, %v2281_v17  ;;  %v2320_v37 = vmul.f32 1.442695, %v2297_v14  ;;  %v6415_v38 = vld [vmem:[%s7142_s0 + $0x488] sm:$0xff] }
 0x21d   :  { %3663 = vpow2.f32 %v2312_v44  ;;  %v2291_v28 = vmax.f32 %v2289_v25, %v2290_v50  ;;  %v2305_v56 = vsub.f32 %v6281_v47, %v2273_v55  ;;  %v2322_v15 = vmul.f32 1.442695, %v2298_v20  ;;  %7435 = vst [vmem:[#allocation47_spill] sm:$0xff] %v6415_v38  ;;  %v6420_v47 = vld [vmem:[%s7142_s0 + $0x490] sm:$0xff]  ;;  %v6437_v40 = vld [vmem:[%s7142_s0 + $0x4a8] sm:$0xff]  ;;  %7440 = vst [vmem:[#allocation52_spill] sm:$0xff] %v6446_v54 }
 0x21e   :  { %3665 = vpow2.f32 %v2314_v16  ;;  %v2306_v23 = vsub.f32 %v6330_v0, %v2282_v10  ;;  %v2324_v11 = vmul.f32 1.442695, %v2299_v59  ;;  %v2531_v4 = vsel %vm26_vm0, %v6404_v9, -inf  ;;  %7436 = vst [vmem:[#allocation48_spill] sm:$0xff] %v6420_v47  ;;  %7439 = vst [vmem:[#allocation51_spill] sm:$0xff] %v6437_v40  ;;  %v6459_v45 = vld [vmem:[%s7142_s0 + $0x4b8] sm:$0xff] }
 0x21f   :  { %3667 = vpow2.f32 %v2316_v62  ;;  %v2307_v35 = vsub.f32 %v6346_v41, %v2282_v10  ;;  %v2326_v48 = vmul.f32 1.442695, %v2300_v36  ;;  %v2328_v2 = vmul.f32 1.442695, %v2301_v42  ;;  %v6427_v41 = vld [vmem:[%s7142_s0 + $0x498] sm:$0xff]  ;;  %7441 = vst [vmem:[#allocation53_spill] sm:$0xff] %v6459_v45 }
 0x220   :  { %3669 = vpow2.f32 %v2318_v5  ;;  %v2308_v0 = vsub.f32 %v6353_v43, %v2291_v28  ;;  %v2309_v22 = vsub.f32 %v6358_v29, %v2291_v28  ;;  %v2330_v63 = vmul.f32 1.442695, %v2302_v52  ;;  %7437 = vst [vmem:[#allocation49_spill] sm:$0xff] %v6427_v41 }
 0x221   :  { %3671 = vpow2.f32 %v2320_v37  ;;  %v2332_v43 = vmul.f32 1.442695, %v2303_v58  ;;  %v2334_v29 = vmul.f32 1.442695, %v2304_v61  ;;  %v2336_v46 = vmul.f32 1.442695, %v2305_v56 }
 0x222   :  { %3673 = vpow2.f32 %v2322_v15  ;;  %v2338_v12 = vmul.f32 1.442695, %v2306_v23  ;;  %v2532_v33 = vsel %vm26_vm0, %v6415_v38, -inf  ;;  %v2540_v1 = vsel %vm26_vm0, %v6420_v47, -inf }
 0x223   :  { %3675 = vpow2.f32 %v2324_v11  ;;  %v2340_v34 = vmul.f32 1.442695, %v2307_v35  ;;  %v2533_v51 = vmax.f32 %v2531_v4, %v2532_v33  ;;  %v2541_v32 = vsel %vm26_vm0, %v6427_v41, -inf }
 0x224   :  { %3677 = vpow2.f32 %v2326_v48  ;;  %v2542_v14 = vmax.f32 %v2540_v1, %v2541_v32  ;;  %v2549_v13 = vsel %vm26_vm0, %v6432_v24, -inf  ;;  %v2550_v20 = vsel %vm26_vm0, %v6437_v40, -inf }
 0x225   :  { %3679 = vpow2.f32 %v2328_v2  ;;  %v2342_v36 = vmul.f32 1.442695, %v2308_v0  ;;  %v2344_v55 = vmul.f32 1.442695, %v2309_v22  ;;  %v2534_v42 = vrot.slane %v2533_v51, 4 }
 0x226   :  { %v6454_v59 = vpop.eup %3661  ;;  %3681 = vpow2.f32 %v2330_v63  ;;  %v2543_v27 = vrot.slane %v2542_v14, 4  ;;  %v2558_v17 = vsel %vm26_vm0, %v6446_v54, -inf  ;;  %v2551_v50 = vmax.f32 %v2549_v13, %v2550_v20 }
 0x227   :  { %v6461_v25 = vpop.eup %3663  ;;  %3683 = vpow2.f32 %v2332_v43  ;;  %v2346_v52 = vsel %vm26_vm0, %v6454_v59, 0.0  ;;  %v2535_v16 = vmax.f32 %v2533_v51, %v2534_v42  ;;  %v2559_v61 = vsel %vm26_vm0, %v6459_v45, -inf }
 0x228   :  { %v6467_v58 = vpop.eup %3665  ;;  %3685 = vpow2.f32 %v2334_v29  ;;  %v2347_v44 = vsel %vm26_vm0, %v6461_v25, 0.0  ;;  %v2544_v15 = vmax.f32 %v2542_v14, %v2543_v27  ;;  %v2552_v22 = vrot.slane %v2551_v50, 4 }
 0x229   :  { %v6471_v62 = vpop.eup %3667  ;;  %3687 = vpow2.f32 %v2336_v46  ;;  %v2348_v5 = vadd.f32 %v2347_v44, %v2346_v52  ;;  %v2355_v10 = vsel %vm26_vm0, %v6467_v58, 0.0  ;;  %v2536_v56 = vrot.slane %v2535_v16, 2 }
 0x22a   :  { %v6477_v37 = vpop.eup %3669  ;;  %3689 = vpow2.f32 %v2338_v12  ;;  %v2356_v28 = vsel %vm26_vm0, %v6471_v62, 0.0  ;;  %v6499_v51 = vmax.f32 %v2558_v17, %v2559_v61  ;;  %v2553_v44 = vmax.f32 %v2551_v50, %v2552_v22 }
 0x22b   :  { %v6481_v23 = vpop.eup %3671  ;;  %3691 = vpow2.f32 %v2340_v34  ;;  %v2349_v11 = vrot.slane %v2348_v5, 4  ;;  %v2357_v4 = vadd.f32 %v2356_v28, %v2355_v10  ;;  %v2364_v35 = vsel %vm26_vm0, %v6477_v37, 0.0 }
 0x22c   :  { %v6485_v48 = vpop.eup %3673  ;;  %3693 = vpow2.f32 %v2342_v36  ;;  %v2365_v2 = vsel %vm26_vm0, %v6481_v23, 0.0  ;;  %v6489_v0 = vmax.f32 %v2535_v16, %v2536_v56  ;;  %v2545_v34 = vrot.slane %v2544_v15, 2 }
 0x22d   :  { %v6491_v63 = vpop.eup %3675  ;;  %3695 = vpow2.f32 %v2344_v55  ;;  %v2350_v43 = vadd.f32 %v2349_v11, %v2348_v5  ;;  %v2358_v29 = vrot.slane %v2357_v4, 4  ;;  %v2366_v46 = vadd.f32 %v2365_v2, %v2364_v35 }
 0x22e   :  { %v6493_v12 = vpop.eup %3677  ;;  %v2373_v33 = vsel %vm26_vm0, %v6485_v48, 0.0  ;;  %v2374_v1 = vsel %vm26_vm0, %v6491_v63, 0.0  ;;  %v6518_v35 = vmax.f32 %v2544_v15, %v2545_v34  ;;  %v2554_v47 = vrot.slane %v2553_v44, 2 }
 0x22f   :  { %v6501_v32 = vpop.eup %3679  ;;  %v2351_v14 = vrot.slane %v2350_v43, 2  ;;  %v2359_v13 = vadd.f32 %v2358_v29, %v2357_v4  ;;  %v2367_v20 = vrot.slane %v2366_v46, 4  ;;  %v2375_v36 = vadd.f32 %v2374_v1, %v2373_v33 }
 0x230   :  { %v6503_v55 = vpop.eup %3681  ;;  %v2382_v42 = vsel %vm26_vm0, %v6493_v12, 0.0  ;;  %v2383_v52 = vsel %vm26_vm0, %v6501_v32, 0.0 }
 0x231   :  { %v6510_v16 = vpop.eup %3683  ;;  %v2352_v17 = vadd.f32 %v2351_v14, %v2350_v43  ;;  %v2360_v5 = vrot.slane %v2359_v13, 2  ;;  %v2368_v10 = vadd.f32 %v2367_v20, %v2366_v46  ;;  %v2376_v61 = vrot.slane %v2375_v36, 4 }
 0x232   :  { %v6512_v28 = vpop.eup %3685  ;;  %v2384_v56 = vadd.f32 %v2383_v52, %v2382_v42  ;;  %v2391_v11 = vsel %vm26_vm0, %v6503_v55, 0.0  ;;  %v2392_v4 = vsel %vm26_vm0, %v6510_v16, 0.0 }
 0x233   :  { %v6520_v2 = vpop.eup %3687  ;;  %v2353_v50 = vrot.slane %v2352_v17, 1  ;;  %v2361_v22 = vadd.f32 %v2360_v5, %v2359_v13  ;;  %v2369_v29 = vrot.slane %v2368_v10, 2  ;;  %v2377_v43 = vadd.f32 %v2376_v61, %v2375_v36 }
 0x234   :  { %v6522_v33 = vpop.eup %3689  ;;  %v2385_v46 = vrot.slane %v2384_v56, 4  ;;  %v2393_v1 = vadd.f32 %v2392_v4, %v2391_v11  ;;  %v2400_v14 = vsel %vm26_vm0, %v6512_v28, 0.0  ;;  %v2401_v20 = vsel %vm26_vm0, %v6520_v2, 0.0 }
 0x235   :  { %v6528_v42 = vpop.eup %3691  ;;  %v2354_v15 = vadd.f32 %v2353_v50, %v2352_v17  ;;  %v2362_v34 = vrot.slane %v2361_v22, 1  ;;  %v2370_v52 = vadd.f32 %v2369_v29, %v2368_v10  ;;  %v2378_v27 = vrot.slane %v2377_v43, 2 }
 0x236   :  { %v6530_v6 = vpop.eup %3693  ;;  %v2386_v13 = vadd.f32 %v2385_v46, %v2384_v56  ;;  %v2394_v36 = vrot.slane %v2393_v1, 4  ;;  %v2402_v5 = vadd.f32 %v2401_v20, %v2400_v14  ;;  %v2409_v61 = vsel %vm26_vm0, %v6522_v33, 0.0 }
 0x237   :  { %v6534_v11 = vpop.eup %3695  ;;  %v2363_v4 = vadd.f32 %v2362_v34, %v2361_v22  ;;  %v2371_v45 = vrot.slane %v2370_v52, 1  ;;  %v2379_v54 = vadd.f32 %v2378_v27, %v2377_v43  ;;  %v2410_v40 = vsel %vm26_vm0, %v6528_v42, 0.0 }
 0x238   :  { %v2387_v17 = vrot.slane %v2386_v13, 2  ;;  %v2395_v50 = vadd.f32 %v2394_v36, %v2393_v1  ;;  %v2403_v10 = vrot.slane %v2402_v5, 4  ;;  %v2411_v29 = vadd.f32 %v2410_v40, %v2409_v61 }
 0x239   :  { %v2372_v24 = vadd.f32 %v2371_v45, %v2370_v52  ;;  %v2380_v41 = vrot.slane %v2379_v54, 1  ;;  %v2418_v56 = vsel %vm26_vm0, %v6530_v6, 0.0  ;;  %v2419_v46 = vsel %vm26_vm0, %v6534_v11, 0.0 }
 0x23a   :  { %v2388_v14 = vadd.f32 %v2387_v17, %v2386_v13  ;;  %v2396_v20 = vrot.slane %v2395_v50, 2  ;;  %v2404_v22 = vadd.f32 %v2403_v10, %v2402_v5  ;;  %v2412_v34 = vrot.slane %v2411_v29, 4 }
 0x23b   :  { %v2381_v27 = vadd.f32 %v2380_v41, %v2379_v54  ;;  %v2420_v43 = vadd.f32 %v2419_v46, %v2418_v56  ;;  %3697 = vrcp.f32 %v2354_v15  ;;  %v2555_v52 = vmax.f32 %v2553_v44, %v2554_v47  ;;  %v6546_v41 = vld [vmem:[%s7142_s0 + $0x4c0] sm:$0xff] }
 0x23c   :  { %v2389_v19 = vrot.slane %v2388_v14, 1  ;;  %v2397_v1 = vadd.f32 %v2396_v20, %v2395_v50  ;;  %v2405_v36 = vrot.slane %v2404_v22, 2  ;;  %v2413_v40 = vadd.f32 %v2412_v34, %v2411_v29  ;;  %v6574_v34 = vld [vmem:[%s7142_s0 + $0x4e0] sm:$0xff] }
 0x23d   :  { %v2421_v45 = vrot.slane %v2420_v43, 4  ;;  %3699 = vrcp.f32 %v2363_v4  ;;  %v2561_v61 = vrot.slane %v6499_v51, 4  ;;  %v2547_v54 = vrot.slane %v6518_v35, 1 }
 0x23e   :  { %v2390_v38 = vadd.f32 %v2389_v19, %v2388_v14  ;;  %v2398_v9 = vrot.slane %v2397_v1, 1  ;;  %v2406_v7 = vadd.f32 %v2405_v36, %v2404_v22  ;;  %v2414_v13 = vrot.slane %v2413_v40, 2  ;;  %v6553_v19 = vld [vmem:[%s7142_s0 + $0x4c8] sm:$0xff] }
 0x23f   :  { %v2422_v17 = vadd.f32 %v2421_v45, %v2420_v43  ;;  %3701 = vrcp.f32 %v2372_v24  ;;  %v2562_v15 = vmax.f32 %v6499_v51, %v2561_v61  ;;  %v6558_v24 = vld [vmem:[%s7142_s0 + $0x4d0] sm:$0xff]  ;;  %v6563_v51 = vld [vmem:[%s7142_s0 + $0x4d8] sm:$0xff]  ;;  %v2567_v56 = vsel %vm26_vm0, %v6546_v41, -inf }
 0x240   :  { %v2399_v5 = vadd.f32 %v2398_v9, %v2397_v1  ;;  %v2407_v4 = vrot.slane %v2406_v7, 1  ;;  %v2415_v47 = vadd.f32 %v2414_v13, %v2413_v40  ;;  %3703 = vrcp.f32 %v2381_v27 }
 0x241   :  { %v2423_v44 = vrot.slane %v2422_v17, 2  ;;  %3705 = vrcp.f32 %v2390_v38  ;;  %v2556_v9 = vrot.slane %v2555_v52, 1  ;;  %v2563_v50 = vrot.slane %v2562_v15, 2 }
 0x242   :  { %v2408_v10 = vadd.f32 %v2407_v4, %v2406_v7  ;;  %v2416_v29 = vrot.slane %v2415_v47, 1  ;;  %3707 = vrcp.f32 %v2399_v5  ;;  %v2568_v20 = vsel %vm26_vm0, %v6553_v19, -inf }
 0x243   :  { %v2424_v46 = vadd.f32 %v2423_v44, %v2422_v17  ;;  %v2564_v14 = vmax.f32 %v2562_v15, %v2563_v50  ;;  %v2576_v38 = vsel %vm26_vm0, %v6558_v24, -inf  ;;  %v2569_v7 = vmax.f32 %v2567_v56, %v2568_v20  ;;  %v6590_v15 = vld [vmem:[%s7142_s0 + $0x4e8] sm:$0xff] }
 0x244   :  { %v2417_v22 = vadd.f32 %v2416_v29, %v2415_v47  ;;  %3709 = vrcp.f32 %v2408_v10  ;;  %v2577_v27 = vsel %vm26_vm0, %v6563_v51, -inf  ;;  %v7442_v36 = vrot.slane %v6489_v0, 1 }
 0x245   :  { %v3698_v43 = vpop.eup %3697  ;;  %v2425_v1 = vrot.slane %v2424_v46, 1  ;;  %v2565_v45 = vrot.slane %v2564_v14, 1  ;;  %v6583_v61 = vmax.f32 %v2576_v38, %v2577_v27  ;;  %v6593_v5 = vmax.f32 %v6518_v35, %v2547_v54 }
 0x246   :  { %v6581_v40 = vmax.f32 %v6489_v0, %v7442_v36  ;;  %3711 = vrcp.f32 %v2417_v22  ;;  %v2436_v13 = vmul.f32 %v3698_v43, %v6454_v59  ;;  %v2437_v17 = vmul.f32 %v3698_v43, %v6461_v25 }
 0x247   :  { %v3700_v4 = vpop.eup %3699  ;;  %v2426_v47 = vadd.f32 %v2425_v1, %v2424_v46  ;;  %v6595_v0 = vmax.f32 %v2555_v52, %v2556_v9  ;;  %v2570_v44 = vrot.slane %v2569_v7, 4  ;;  %v6599_v50 = vsel %vm26_vm0, %v6574_v34, -inf }
 0x248   :  { %v2438_v59 = vmul.f32 %v3700_v4, %v6467_v58  ;;  %v2439_v25 = vmul.f32 %v3700_v4, %v6471_v62  ;;  %v2454_v10 = vsel %vm26_vm0, %v2436_v13, 0.0  ;;  %v2471_v29 = vsel %vm26_vm0, %v2437_v17, 0.0 }
 0x249   :  { %v3702_v56 = vpop.eup %3701  ;;  %3713 = vrcp.f32 %v2426_v47  ;;  %v6605_v35 = vmax.f32 %v2564_v14, %v2565_v45  ;;  %v2579_v52 = vrot.slane %v6583_v61, 4  ;;  %v6610_v54 = vsel %vm26_vm0, %v6590_v15, -inf }
 0x24a   :  { %v3704_v9 = vpop.eup %3703  ;;  %v2440_v46 = vmul.f32 %v3702_v56, %v6477_v37  ;;  %v2441_v58 = vmul.f32 %v3702_v56, %v6481_v23  ;;  %v2455_v62 = vsel %vm26_vm0, %v2438_v59, 0.0  ;;  %v2472_v20 = vsel %vm26_vm0, %v2439_v25, 0.0 }
 0x24b   :  { %v3706_v38 = vpop.eup %3705  ;;  %v2442_v22 = vmul.f32 %v3704_v9, %v6485_v48  ;;  %v2456_v14 = vadd.f32 %v2455_v62, %v2454_v10  ;;  %v2473_v27 = vadd.f32 %v2472_v20, %v2471_v29  ;;  %v6618_v43 = vadd.f32 %v2436_v13, %v6236_v30 }
 0x24c   :  { %v3708_v1 = vpop.eup %3707  ;;  %v2443_v36 = vmul.f32 %v3704_v9, %v6491_v63  ;;  %v2444_v45 = vmul.f32 %v3706_v38, %v6493_v12  ;;  %v2457_v37 = vsel %vm26_vm0, %v2440_v46, 0.0  ;;  %v2474_v23 = vsel %vm26_vm0, %v2441_v58, 0.0 }
 0x24d   :  { %v2445_v4 = vmul.f32 %v3706_v38, %v6501_v32  ;;  %v2458_v47 = vadd.f32 %v2457_v37, %v2456_v14  ;;  %v2459_v56 = vsel %vm26_vm0, %v2442_v22, 0.0  ;;  %v6627_v48 = vadd.f32 %v2437_v17, %v6239_v31 }
 0x24e   :  { %v3710_v10 = vpop.eup %3709  ;;  %v2446_v30 = vmul.f32 %v3708_v1, %v6503_v55  ;;  %v2461_v13 = vsel %vm26_vm0, %v2444_v45, 0.0  ;;  %v2475_v63 = vadd.f32 %v2474_v23, %v2473_v27  ;;  %v2476_v12 = vsel %vm26_vm0, %v2443_v36, 0.0 }
 0x24f   :  { %v2447_v29 = vmul.f32 %v3708_v1, %v6510_v16  ;;  %v2460_v9 = vadd.f32 %v2459_v56, %v2458_v47  ;;  %v2478_v62 = vsel %vm26_vm0, %v2445_v4, 0.0  ;;  %v2571_v32 = vmax.f32 %v2569_v7, %v2570_v44 }
 0x250   :  { %v3712_v20 = vpop.eup %3711  ;;  %v2448_v38 = vmul.f32 %v3710_v10, %v6512_v28  ;;  %v2449_v31 = vmul.f32 %v3710_v10, %v6520_v2  ;;  %v2463_v17 = vsel %vm26_vm0, %v2446_v30, 0.0  ;;  %v2477_v14 = vadd.f32 %v2476_v12, %v2475_v63 }
 0x251   :  { %v2462_v55 = vadd.f32 %v2461_v13, %v2460_v9  ;;  %v2480_v37 = vsel %vm26_vm0, %v2447_v29, 0.0  ;;  %v6639_v27 = vadd.f32 %v2438_v59, %v6251_v21  ;;  %v6642_v16 = vadd.f32 %v2439_v25, %v6254_v26  ;;  %v6705_v9 = vld [vmem:[%s7142_s0 + $0x508] sm:$0xff] }
 0x252   :  { %v2450_v1 = vmul.f32 %v3712_v20, %v6522_v33  ;;  %v2451_v7 = vmul.f32 %v3712_v20, %v6528_v42  ;;  %v2465_v28 = vsel %vm26_vm0, %v2448_v38, 0.0  ;;  %v2479_v44 = vadd.f32 %v2478_v62, %v2477_v14 }
 0x253   :  { %v3714_v2 = vpop.eup %3713  ;;  %v2464_v23 = vadd.f32 %v2463_v17, %v2462_v55  ;;  %v2482_v47 = vsel %vm26_vm0, %v2449_v31, 0.0  ;;  %v6649_v56 = vadd.f32 %v2440_v46, %v6263_v49  ;;  %v6652_v21 = vadd.f32 %v2441_v58, %v6266_v8 }
 0x254   :  { %v2452_v26 = vmul.f32 %v3714_v2, %v6530_v6  ;;  %v2467_v59 = vsel %vm26_vm0, %v2450_v1, 0.0  ;;  %v2481_v33 = vadd.f32 %v2480_v37, %v2479_v44  ;;  %v2484_v42 = vsel %vm26_vm0, %v2451_v7, 0.0 }
 0x255   :  { %7443 = vst [vmem:[#allocation54_spill] sm:$0xff] %v6649_v56  ;;  %7444 = vst [vmem:[#allocation55_spill] sm:$0xff] %v6652_v21  ;;  %v2453_v25 = vmul.f32 %v3714_v2, %v6534_v11  ;;  %v2466_v10 = vadd.f32 %v2465_v28, %v2464_v23  ;;  %v6659_v13 = vadd.f32 %v2442_v22, %v6273_v57  ;;  %v7451_v22 = vld [vmem:[#allocation29_spill] sm:$0xff]  ;;  %v2572_v62 = vrot.slane %v2571_v32, 2  ;;  %v7457_v23 = vld [vmem:[#allocation32_spill] sm:$0xff] }
 0x256   :  { %v6662_v63 = vadd.f32 %v2443_v36, %v6276_v60  ;;  %v2469_v49 = vsel %vm26_vm0, %v2452_v26, 0.0  ;;  %v2483_v8 = vadd.f32 %v2482_v47, %v2481_v33  ;;  %v6666_v46 = vadd.f32 %v2444_v45, %v6284_v53  ;;  %v6681_v60 = vld [vmem:[%s7142_s0 + $0x4f0] sm:$0xff]  ;;  %v6686_v53 = vld [vmem:[%s7142_s0 + $0x4f8] sm:$0xff] }
 0x257   :  { %7445 = vst [vmem:[#allocation56_spill] sm:$0xff] %v6659_v13  ;;  %v6669_v6 = vadd.f32 %v2445_v4, %v6287_v3  ;;  %v2468_v58 = vadd.f32 %v2467_v59, %v2466_v10  ;;  %v2486_v12 = vsel %vm26_vm0, %v2453_v25, 0.0  ;;  %v6673_v11 = vadd.f32 %v2446_v30, %v6294_v39  ;;  %v6691_v3 = vld [vmem:[%s7142_s0 + $0x500] sm:$0xff]  ;;  %v7455_v4 = vld [vmem:[#allocation31_spill] sm:$0xff] }
 0x258   :  { %7446 = vst [vmem:[#allocation57_spill] sm:$0xff] %v6662_v63  ;;  %7447 = vst [vmem:[#allocation58_spill] sm:$0xff] %v6666_v46  ;;  %v6676_v57 = vadd.f32 %v2447_v29, %v6297_v18  ;;  %v2485_v39 = vadd.f32 %v2484_v42, %v2483_v8  ;;  %v6694_v36 = vadd.f32 %v2448_v38, %v7451_v22  ;;  %v7453_v18 = vld [vmem:[#allocation30_spill] sm:$0xff]  ;;  %v2595_v14 = vsel %vm26_vm0, %v6686_v53, -inf  ;;  %v7459_v42 = vld [vmem:[#allocation33_spill] sm:$0xff] }
 0x259   :  { %7448 = vst [vmem:[#allocation59_spill] sm:$0xff] %v6669_v6  ;;  %7449 = vst [vmem:[#allocation60_spill] sm:$0xff] %v6673_v11  ;;  %v6697_v45 = vadd.f32 %v2449_v31, %v7453_v18  ;;  %v6700_v30 = vadd.f32 %v2450_v1, %v7455_v4  ;;  %v2470_v29 = vadd.f32 %v2469_v49, %v2468_v58  ;;  %v2594_v31 = vsel %vm26_vm0, %v6681_v60, -inf  ;;  %v7461_v49 = vld [vmem:[#allocation34_spill] sm:$0xff] }
 0x25a   :  { %7450 = vst [vmem:[#allocation61_spill] sm:$0xff] %v6676_v57  ;;  %7452 = vst [vmem:[#allocation29_spill] sm:$0xff] %v6694_v36  ;;  %v2580_v20 = vmax.f32 %v6583_v61, %v2579_v52  ;;  %v2587_v38 = vmax.f32 %v6599_v50, %v6610_v54  ;;  %v2487_v17 = vadd.f32 %v2486_v12, %v2485_v39  ;;  %v2603_v55 = vsel %vm26_vm0, %v6691_v3, -inf  ;;  %v7463_v22 = vld [vmem:[#allocation46_spill] sm:$0xff] }
 0x25b   :  { %7454 = vst [vmem:[#allocation30_spill] sm:$0xff] %v6697_v45  ;;  %7456 = vst [vmem:[#allocation31_spill] sm:$0xff] %v6700_v30  ;;  %v3222_v37 = vadd.f32 -1.0, %v2470_v29  ;;  %v2573_v1 = vmax.f32 %v2571_v32, %v2572_v62  ;;  %v6719_v61 = vadd.f32 %v2451_v7, %v7457_v23  ;;  %v2596_v52 = vmax.f32 %v2594_v31, %v2595_v14  ;;  %v7467_v14 = vld [vmem:[#allocation48_spill] sm:$0xff] }
 0x25c   :  { %v2581_v28 = vrot.slane %v2580_v20, 2  ;;  %v2588_v44 = vrot.slane %v2587_v38, 4  ;;  %v3223_v2 = vadd.f32 -1.0, %v2487_v17  ;;  %v2604_v50 = vsel %vm26_vm0, %v6705_v9, -inf  ;;  %v7465_v17 = vld [vmem:[#allocation35_spill] sm:$0xff] }
 0x25d   :  { %7458 = vst [vmem:[#allocation32_spill] sm:$0xff] %v6719_v61  ;;  %v2490_v54 = vmul.f32 %v3222_v37, %v3222_v37  ;;  %v2574_v47 = vrot.slane %v2573_v1, 1  ;;  %v6724_v10 = vadd.f32 %v2452_v26, %v7459_v42  ;;  %v6727_v8 = vadd.f32 %v2453_v25, %v7461_v49 }
 0x25e   :  { %v2582_v59 = vmax.f32 %v2580_v20, %v2581_v28  ;;  %v2589_v33 = vmax.f32 %v2587_v38, %v2588_v44  ;;  %v2597_v32 = vrot.slane %v2596_v52, 4  ;;  %v2605_v58 = vmax.f32 %v2603_v55, %v2604_v50  ;;  %v7464_v20 = vld [vmem:[#allocation47_spill] sm:$0xff]  ;;  %v7468_v44 = vld [vmem:[#allocation49_spill] sm:$0xff] }
 0x25f   :  { %7460 = vst [vmem:[#allocation33_spill] sm:$0xff] %v6724_v10  ;;  %7462 = vst [vmem:[#allocation34_spill] sm:$0xff] %v6727_v8  ;;  %v2491_v12 = vmul.f32 %v3223_v2, %v3223_v2  ;;  %v2612_v18 = vsub.f32 %v7463_v22, %v6581_v40  ;;  %v2575_v4 = vmax.f32 %v2573_v1, %v2574_v47  ;;  %v7469_v1 = vld [vmem:[#allocation50_spill] sm:$0xff]  ;;  %v7470_v50 = vld [vmem:[#allocation51_spill] sm:$0xff] }
 0x260   :  { %v2583_v39 = vrot.slane %v2582_v59, 1  ;;  %v2590_v7 = vrot.slane %v2589_v33, 2  ;;  %v2598_v29 = vmax.f32 %v2596_v52, %v2597_v32  ;;  %v2606_v62 = vrot.slane %v2605_v58, 4 }
 0x261   :  { %v2613_v38 = vsub.f32 %v7464_v20, %v6581_v40  ;;  %v6734_v26 = vadd.f32 %v2490_v54, %v7465_v17  ;;  %v2614_v55 = vsub.f32 %v7467_v14, %v6593_v5  ;;  %v2615_v2 = vsub.f32 %v7468_v44, %v6593_v5  ;;  %v7471_v54 = vld [vmem:[#allocation52_spill] sm:$0xff] }
 0x262   :  { %v2584_v31 = vmax.f32 %v2582_v59, %v2583_v39  ;;  %v2591_v25 = vmax.f32 %v2589_v33, %v2590_v7  ;;  %v2599_v37 = vrot.slane %v2598_v29, 2  ;;  %v2607_v28 = vmax.f32 %v2605_v58, %v2606_v62  ;;  %v7472_v59 = vld [vmem:[#allocation53_spill] sm:$0xff] }
 0x263   :  { %7466 = vst [vmem:[#allocation46_spill] sm:$0xff] %v6734_v26  ;;  %v2616_v23 = vsub.f32 %v7469_v1, %v6595_v0  ;;  %v2617_v40 = vsub.f32 %v7470_v50, %v6595_v0  ;;  %v2618_v47 = vsub.f32 %v7471_v54, %v6605_v35  ;;  %v2619_v33 = vsub.f32 %v7472_v59, %v6605_v35  ;;  %v7475_v50 = vld [vmem:[#allocation20_spill] sm:$0xff]  ;;  %v7478_v59 = vld [vmem:[#allocation21_spill] sm:$0xff] }
 0x264   :  { %v2592_v52 = vrot.slane %v2591_v25, 1  ;;  %v2600_v42 = vmax.f32 %v2598_v29, %v2599_v37  ;;  %v2608_v49 = vrot.slane %v2607_v28, 2  ;;  %v2620_v32 = vsub.f32 %v6546_v41, %v2575_v4  ;;  %v7511_v26 = vld [vmem:[#allocation4_spill] sm:$0xff] }
 0x265   :  { %v2621_v58 = vsub.f32 %v6553_v19, %v2575_v4  ;;  %v2630_v39 = vmul.f32 1.442695, %v2612_v18  ;;  %v2632_v7 = vmul.f32 1.442695, %v2613_v38  ;;  %v2634_v22 = vmul.f32 1.442695, %v2614_v55 }
 0x266   :  { %v2593_v5 = vmax.f32 %v2591_v25, %v2592_v52  ;;  %v2601_v62 = vrot.slane %v2600_v42, 1  ;;  %v2609_v20 = vmax.f32 %v2607_v28, %v2608_v49  ;;  %v2622_v0 = vsub.f32 %v6558_v24, %v2584_v31 }
 0x267   :  { %v2636_v17 = vmul.f32 1.442695, %v2615_v2  ;;  %v2623_v14 = vsub.f32 %v6563_v51, %v2584_v31  ;;  %3715 = vpow2.f32 %v2630_v39  ;;  %v2638_v35 = vmul.f32 1.442695, %v2616_v23  ;;  %v7473_v51 = vld [vmem:[#allocation36_spill] sm:$0xff] }
 0x268   :  { %v2624_v44 = vsub.f32 %v6574_v34, %v2593_v5  ;;  %v2602_v29 = vmax.f32 %v2600_v42, %v2601_v62  ;;  %v2610_v37 = vrot.slane %v2609_v20, 1  ;;  %3717 = vpow2.f32 %v2632_v7  ;;  %v7482_v42 = vld [vmem:[#allocation10_spill] sm:$0xff]  ;;  %v7487_v39 = vld [vmem:[#allocation24_spill] sm:$0xff] }
 0x269   :  { %v2640_v41 = vmul.f32 1.442695, %v2617_v40  ;;  %v2625_v19 = vsub.f32 %v6590_v15, %v2593_v5  ;;  %3719 = vpow2.f32 %v2634_v22  ;;  %v2642_v18 = vmul.f32 1.442695, %v2618_v47  ;;  %v7476_v40 = vld [vmem:[#allocation37_spill] sm:$0xff]  ;;  %v7488_v7 = vld [vmem:[#allocation40_spill] sm:$0xff] }
 0x26a   :  { %v2644_v4 = vmul.f32 1.442695, %v2619_v33  ;;  %v2611_v38 = vmax.f32 %v2609_v20, %v2610_v37  ;;  %v2626_v25 = vsub.f32 %v6681_v60, %v2602_v29  ;;  %v2627_v24 = vsub.f32 %v6686_v53, %v2602_v29  ;;  %v7490_v20 = vld [vmem:[#allocation25_spill] sm:$0xff]  ;;  %v7496_v29 = vld [vmem:[#allocation27_spill] sm:$0xff] }
 0x26b   :  { %3721 = vpow2.f32 %v2636_v17  ;;  %v6757_v31 = vadd.f32 %v2491_v12, %v7473_v51  ;;  %v2646_v34 = vmul.f32 1.442695, %v2620_v32  ;;  %v2648_v55 = vmul.f32 1.442695, %v2621_v58  ;;  %v7484_v32 = vld [vmem:[#allocation23_spill] sm:$0xff]  ;;  %v7503_v51 = vld [vmem:[#allocation45_spill] sm:$0xff] }
 0x26c   :  { %3723 = vpow2.f32 %v2638_v35  ;;  %v2628_v28 = vsub.f32 %v6691_v3, %v2611_v38  ;;  %v2629_v2 = vsub.f32 %v6705_v9, %v2611_v38  ;;  %v2650_v15 = vmul.f32 1.442695, %v2622_v0  ;;  %v7479_v3 = vld [vmem:[#allocation18_spill] sm:$0xff]  ;;  %v7485_v58 = vld [vmem:[#allocation39_spill] sm:$0xff]  ;;  %v7491_v0 = vld [vmem:[#allocation41_spill] sm:$0xff] }
 0x26d   :  { %7474 = vst [vmem:[#allocation47_spill] sm:$0xff] %v6757_v31  ;;  %3725 = vpow2.f32 %v2640_v41  ;;  %v2652_v1 = vmul.f32 1.442695, %v2623_v14  ;;  %v2654_v23 = vmul.f32 1.442695, %v2624_v44  ;;  %v6763_v12 = vadd.f32 %v7476_v40, %v7475_v50  ;;  %v7481_v9 = vld [vmem:[#allocation22_spill] sm:$0xff] }
 0x26e   :  { %3727 = vpow2.f32 %v2642_v18  ;;  %v2656_v52 = vmul.f32 1.442695, %v2625_v19  ;;  %v2658_v60 = vmul.f32 1.442695, %v2626_v25  ;;  %v2660_v53 = vmul.f32 1.442695, %v2627_v24 }
 0x26f   :  { %3729 = vpow2.f32 %v2644_v4  ;;  %7477 = vst [vmem:[#allocation35_spill] sm:$0xff] %v6763_v12  ;;  %v2662_v54 = vmul.f32 1.442695, %v2628_v28  ;;  %v2664_v47 = vmul.f32 1.442695, %v2629_v2  ;;  %v6767_v33 = vadd.f32 %v7479_v3, %v7478_v59  ;;  %v7493_v14 = vld [vmem:[#allocation26_spill] sm:$0xff] }
 0x270   :  { %3731 = vpow2.f32 %v2646_v34  ;;  %v6771_v49 = vadd.f32 %v7482_v42, %v7481_v9  ;;  %v6775_v5 = vadd.f32 %v7485_v58, %v7484_v32  ;;  %v6779_v22 = vadd.f32 %v7488_v7, %v7487_v39  ;;  %v7494_v44 = vld [vmem:[#allocation42_spill] sm:$0xff]  ;;  %v7497_v37 = vld [vmem:[#allocation43_spill] sm:$0xff]  ;;  %v7499_v4 = vld [vmem:[#allocation28_spill] sm:$0xff] }
 0x271   :  { %7480 = vst [vmem:[#allocation48_spill] sm:$0xff] %v6767_v33  ;;  %3733 = vpow2.f32 %v2648_v55  ;;  %v6781_v62 = vpop.eup %3715  ;;  %v6785_v17 = vadd.f32 %v7491_v0, %v7490_v20  ;;  %v6789_v35 = vadd.f32 %v7494_v44, %v7493_v14  ;;  %v6793_v41 = vadd.f32 %v7497_v37, %v7496_v29  ;;  %v7500_v38 = vld [vmem:[#allocation44_spill] sm:$0xff]  ;;  %v7502_v24 = vld [vmem:[#allocation19_spill] sm:$0xff]  ;;  %v7505_v2 = vld [vmem:[#allocation2_spill] sm:$0xff] }
 0x272   :  { %7483 = vst [vmem:[#allocation49_spill] sm:$0xff] %v6771_v49  ;;  %7486 = vst [vmem:[#allocation50_spill] sm:$0xff] %v6775_v5  ;;  %3735 = vpow2.f32 %v2650_v15  ;;  %v6795_v19 = vpop.eup %3717  ;;  %v2666_v18 = vsel %vm26_vm0, %v6781_v62, 0.0  ;;  %v6801_v25 = vadd.f32 %v7500_v38, %v7499_v4  ;;  %v6805_v34 = vadd.f32 %v7503_v51, %v7502_v24  ;;  %v7506_v15 = vld [vmem:[#allocation38_spill] sm:$0xff]  ;;  %v7508_v31 = vld [vmem:[#allocation3_spill] sm:$0xff] }
 0x273   :  { %7489 = vst [vmem:[#allocation51_spill] sm:$0xff] %v6779_v22  ;;  %7492 = vst [vmem:[#allocation52_spill] sm:$0xff] %v6785_v17  ;;  %3737 = vpow2.f32 %v2652_v1  ;;  %v6807_v55 = vpop.eup %3719  ;;  %v2667_v28 = vsel %vm26_vm0, %v6795_v19, 0.0  ;;  %v6813_v1 = vadd.f32 %v7506_v15, %v7505_v2  ;;  %v7509_v37 = vld [vmem:[#allocation12_spill] sm:$0xff] }
 0x274   :  { %7495 = vst [vmem:[#allocation53_spill] sm:$0xff] %v6789_v35  ;;  %7498 = vst [vmem:[#allocation36_spill] sm:$0xff] %v6793_v41  ;;  %3739 = vpow2.f32 %v2654_v23  ;;  %v6817_v44 = vadd.f32 %v7509_v37, %v7508_v31  ;;  %v2668_v0 = vadd.f32 %v2667_v28, %v2666_v18  ;;  %v2675_v51 = vsel %vm26_vm0, %v6807_v55, 0.0  ;;  %v7512_v23 = vld [vmem:[#allocation11_spill] sm:$0xff]  ;;  %v7515_v37 = vld [vmem:[#allocation13_spill] sm:$0xff] }
 0x275   :  { %7501 = vst [vmem:[#allocation20_spill] sm:$0xff] %v6801_v25  ;;  %7504 = vst [vmem:[#allocation37_spill] sm:$0xff] %v6805_v34  ;;  %v6819_v38 = vpop.eup %3721  ;;  %3741 = vpow2.f32 %v2656_v52  ;;  %v6825_v34 = vadd.f32 %v7512_v23, %v7511_v26  ;;  %v7517_v41 = vld [vmem:[#allocation6_spill] sm:$0xff] }
 0x276   :  { %7507 = vst [vmem:[#allocation21_spill] sm:$0xff] %v6813_v1  ;;  %7510 = vst [vmem:[#allocation18_spill] sm:$0xff] %v6817_v44  ;;  %v6827_v25 = vpop.eup %3723  ;;  %3743 = vpow2.f32 %v2658_v60  ;;  %v2676_v15 = vsel %vm26_vm0, %v6819_v38, 0.0  ;;  %v7514_v1 = vld [vmem:[#allocation5_spill] sm:$0xff]  ;;  %v7518_v52 = vld [vmem:[#allocation14_spill] sm:$0xff]  ;;  %v2669_v35 = vrot.slane %v2668_v0, 4 }
 0x277   :  { %7513 = vst [vmem:[#allocation22_spill] sm:$0xff] %v6825_v34  ;;  %v6833_v44 = vadd.f32 %v7515_v37, %v7514_v1  ;;  %v6837_v18 = vadd.f32 %v7518_v52, %v7517_v41  ;;  %v6839_v28 = vpop.eup %3725  ;;  %3745 = vpow2.f32 %v2660_v53  ;;  %v2677_v23 = vadd.f32 %v2676_v15, %v2675_v51 }
 0x278   :  { %v2684_v34 = vsel %vm26_vm0, %v6827_v25, 0.0  ;;  %v6843_v60 = vpop.eup %3727  ;;  %3747 = vpow2.f32 %v2662_v54  ;;  %v2685_v17 = vsel %vm26_vm0, %v6839_v28, 0.0  ;;  %v2938_v37 = vadd.f32 %v7481_v9, %v7475_v50 }
 0x279   :  { %7516 = vst [vmem:[#allocation10_spill] sm:$0xff] %v6833_v44  ;;  %7519 = vst [vmem:[#allocation23_spill] sm:$0xff] %v6837_v18  ;;  %v2939_v52 = vadd.f32 %v7484_v32, %v7478_v59  ;;  %v6851_v18 = vpop.eup %3729  ;;  %3749 = vpow2.f32 %v2664_v47  ;;  %v2670_v53 = vadd.f32 %v2669_v35, %v2668_v0  ;;  %v2678_v51 = vrot.slane %v2677_v23, 4 }
 0x27a   :  { %v2686_v15 = vadd.f32 %v2685_v17, %v2684_v34  ;;  %v6853_v44 = vpop.eup %3731  ;;  %v2693_v54 = vsel %vm26_vm0, %v6843_v60, 0.0  ;;  %v2694_v22 = vsel %vm26_vm0, %v6851_v18, 0.0  ;;  %v2940_v5 = vadd.f32 %v2938_v37, %v7487_v39 }
 0x27b   :  { %v2941_v50 = vadd.f32 %v2939_v52, %v7490_v20  ;;  %v6861_v9 = vpop.eup %3733  ;;  %v2671_v59 = vrot.slane %v2670_v53, 2  ;;  %v2679_v32 = vadd.f32 %v2678_v51, %v2677_v23  ;;  %v2695_v0 = vadd.f32 %v2694_v22, %v2693_v54 }
 0x27c   :  { %v2687_v47 = vrot.slane %v2686_v15, 4  ;;  %v6863_v35 = vpop.eup %3735  ;;  %v2702_v17 = vsel %vm26_vm0, %v6853_v44, 0.0  ;;  %v2703_v34 = vsel %vm26_vm0, %v6861_v9, 0.0  ;;  %v3262_v49 = vadd.f32 -1.0, %v2940_v5 }
 0x27d   :  { %v3263_v33 = vadd.f32 -1.0, %v2941_v50  ;;  %v6869_v12 = vpop.eup %3737  ;;  %v2672_v39 = vadd.f32 %v2671_v59, %v2670_v53  ;;  %v2680_v20 = vrot.slane %v2679_v32, 2  ;;  %v2696_v52 = vrot.slane %v2695_v0, 4 }
 0x27e   :  { %v2688_v37 = vadd.f32 %v2687_v47, %v2686_v15  ;;  %v6871_v8 = vpop.eup %3739  ;;  %v2704_v23 = vadd.f32 %v2703_v34, %v2702_v17  ;;  %v2711_v22 = vsel %vm26_vm0, %v6863_v35, 0.0  ;;  %v2712_v51 = vsel %vm26_vm0, %v6869_v12, 0.0 }
 0x27f   :  { %v6877_v54 = vmul.f32 %v3262_v49, %v3262_v49  ;;  %v6879_v10 = vpop.eup %3741  ;;  %v2673_v5 = vrot.slane %v2672_v39, 1  ;;  %v2681_v50 = vadd.f32 %v2680_v20, %v2679_v32  ;;  %v2697_v53 = vadd.f32 %v2696_v52, %v2695_v0 }
 0x280   :  { %v2689_v61 = vrot.slane %v2688_v37, 2  ;;  %v6881_v59 = vpop.eup %3743  ;;  %v2705_v15 = vrot.slane %v2704_v23, 4  ;;  %v2713_v47 = vadd.f32 %v2712_v51, %v2711_v22  ;;  %v2720_v17 = vsel %vm26_vm0, %v6871_v8, 0.0 }
 0x281   :  { %v2721_v34 = vsel %vm26_vm0, %v6879_v10, 0.0  ;;  %v6887_v30 = vpop.eup %3745  ;;  %v2674_v49 = vadd.f32 %v2673_v5, %v2672_v39  ;;  %v2682_v45 = vrot.slane %v2681_v50, 1  ;;  %v2698_v57 = vrot.slane %v2697_v53, 2 }
 0x282   :  { %7520 = vst [vmem:[#allocation39_spill] sm:$0xff] %v6887_v30  ;;  %v2690_v36 = vadd.f32 %v2689_v61, %v2688_v37  ;;  %v6889_v11 = vpop.eup %3747  ;;  %v2706_v32 = vadd.f32 %v2705_v15, %v2704_v23  ;;  %v2714_v0 = vrot.slane %v2713_v47, 4  ;;  %v2722_v20 = vadd.f32 %v2721_v34, %v2720_v17 }
 0x283   :  { %v2729_v52 = vsel %vm26_vm0, %v6881_v59, 0.0  ;;  %v6893_v22 = vpop.eup %3749  ;;  %v2683_v51 = vadd.f32 %v2682_v45, %v2681_v50  ;;  %v2699_v46 = vadd.f32 %v2698_v57, %v2697_v53  ;;  %v2730_v63 = vsel %vm26_vm0, %v6887_v30, 0.0 }
 0x284   :  { %v2691_v6 = vrot.slane %v2690_v36, 1  ;;  %v2707_v39 = vrot.slane %v2706_v32, 2  ;;  %v2715_v5 = vadd.f32 %v2714_v0, %v2713_v47  ;;  %v2723_v61 = vrot.slane %v2722_v20, 4 }
 0x285   :  { %v2731_v37 = vadd.f32 %v2730_v63, %v2729_v52  ;;  %v2700_v21 = vrot.slane %v2699_v46, 1  ;;  %v2738_v23 = vsel %vm26_vm0, %v6889_v11, 0.0  ;;  %v2739_v15 = vsel %vm26_vm0, %v6893_v22, 0.0 }
 0x286   :  { %v2692_v13 = vadd.f32 %v2691_v6, %v2690_v36  ;;  %v2708_v17 = vadd.f32 %v2707_v39, %v2706_v32  ;;  %v2716_v34 = vrot.slane %v2715_v5, 2  ;;  %v2724_v45 = vadd.f32 %v2723_v61, %v2722_v20 }
 0x287   :  { %v2732_v50 = vrot.slane %v2731_v37, 4  ;;  %v2701_v57 = vadd.f32 %v2700_v21, %v2699_v46  ;;  %v2740_v53 = vadd.f32 %v2739_v15, %v2738_v23  ;;  %3751 = vrcp.f32 %v2674_v49 }
 0x288   :  { %v2945_v56 = vmul.f32 %v3263_v33, %v3263_v33  ;;  %v2709_v30 = vrot.slane %v2708_v17, 1  ;;  %v2717_v47 = vadd.f32 %v2716_v34, %v2715_v5  ;;  %v2725_v0 = vrot.slane %v2724_v45, 2  ;;  %v7522_v34 = vld [vmem:[#allocation15_spill] sm:$0xff] }
 0x289   :  { %v2733_v63 = vadd.f32 %v2732_v50, %v2731_v37  ;;  %v2741_v6 = vrot.slane %v2740_v53, 4  ;;  %3753 = vrcp.f32 %v2683_v51  ;;  %v2946_v36 = vadd.f32 %v7499_v4, %v7493_v14  ;;  %v7523_v50 = vld [vmem:[#allocation8_spill] sm:$0xff] }
 0x28a   :  { %v2947_v52 = vadd.f32 %v7502_v24, %v7496_v29  ;;  %v2710_v32 = vadd.f32 %v2709_v30, %v2708_v17  ;;  %v2718_v39 = vrot.slane %v2717_v47, 1  ;;  %v2726_v20 = vadd.f32 %v2725_v0, %v2724_v45  ;;  %v7524_v0 = vld [vmem:[#allocation16_spill] sm:$0xff] }
 0x28b   :  { %v2734_v61 = vrot.slane %v2733_v63, 2  ;;  %v2742_v21 = vadd.f32 %v2741_v6, %v2740_v53  ;;  %3755 = vrcp.f32 %v2692_v13  ;;  %v2948_v46 = vadd.f32 %v2946_v36, %v7505_v2  ;;  %v7521_v2 = vld [vmem:[#allocation7_spill] sm:$0xff] }
 0x28c   :  { %v2949_v33 = vadd.f32 %v2947_v52, %v7508_v31  ;;  %v2719_v49 = vadd.f32 %v2718_v39, %v2717_v47  ;;  %v2727_v5 = vrot.slane %v2726_v20, 1  ;;  %3757 = vrcp.f32 %v2701_v57  ;;  %v7526_v52 = vld [vmem:[#allocation17_spill] sm:$0xff] }
 0x28d   :  { %v2735_v37 = vadd.f32 %v2734_v61, %v2733_v63  ;;  %v2743_v51 = vrot.slane %v2742_v21, 2  ;;  %3759 = vrcp.f32 %v2710_v32  ;;  %v3264_v14 = vadd.f32 -1.0, %v2948_v46 }
 0x28e   :  { %v3265_v4 = vadd.f32 -1.0, %v2949_v33  ;;  %v2728_v23 = vadd.f32 %v2727_v5, %v2726_v20  ;;  %3761 = vrcp.f32 %v2719_v49  ;;  %v2956_v30 = vadd.f32 %v7517_v41, %v7511_v26  ;;  %v7525_v26 = vld [vmem:[#allocation9_spill] sm:$0xff] }
 0x28f   :  { %v2736_v29 = vrot.slane %v2735_v37, 1  ;;  %v2744_v24 = vadd.f32 %v2743_v51, %v2742_v21  ;;  %v2952_v13 = vmul.f32 %v3264_v14, %v3264_v14  ;;  %v2957_v31 = vadd.f32 %v7521_v2, %v7514_v1 }
 0x290   :  { %v2953_v15 = vmul.f32 %v3265_v4, %v3265_v4  ;;  %3763 = vrcp.f32 %v2728_v23  ;;  %v6913_v45 = vadd.f32 %v7522_v34, %v7521_v2  ;;  %v2958_v57 = vadd.f32 %v2956_v30, %v7523_v50 }
 0x291   :  { %v2737_v17 = vadd.f32 %v2736_v29, %v2735_v37  ;;  %v3752_v53 = vpop.eup %3751  ;;  %v2745_v47 = vrot.slane %v2744_v24, 1  ;;  %v6918_v63 = vadd.f32 %v7524_v0, %v7523_v50  ;;  %v2959_v41 = vadd.f32 %v2957_v31, %v7525_v26 }
 0x292   :  { %v2966_v6 = vadd.f32 %v7482_v42, %v7476_v40  ;;  %v2756_v1 = vmul.f32 %v3752_v53, %v6781_v62  ;;  %v2757_v36 = vmul.f32 %v3752_v53, %v6795_v19  ;;  %v6927_v32 = vadd.f32 %v7526_v52, %v7525_v26 }
 0x293   :  { %3765 = vrcp.f32 %v2737_v17  ;;  %v3754_v39 = vpop.eup %3753  ;;  %v2746_v20 = vadd.f32 %v2745_v47, %v2744_v24  ;;  %v6930_v61 = vadd.f32 %v2952_v13, %v6877_v54  ;;  %v6932_v21 = vadd.f32 %v2953_v15, %v2945_v56 }
 0x294   :  { %v3266_v46 = vadd.f32 -1.0, %v2958_v57  ;;  %v2758_v33 = vmul.f32 %v3754_v39, %v6807_v55  ;;  %v2759_v40 = vmul.f32 %v3754_v39, %v6819_v38  ;;  %v2774_v42 = vsel %vm26_vm0, %v2756_v1, 0.0  ;;  %v7527_v39 = vld [vmem:[#allocation39_spill] sm:$0xff] }
 0x295   :  { %v2791_v62 = vsel %vm26_vm0, %v2757_v36, 0.0  ;;  %v3756_v19 = vpop.eup %3755  ;;  %3767 = vrcp.f32 %v2746_v20  ;;  %v6938_v49 = vadd.f32 -1.0, %v2959_v41  ;;  %v6942_v5 = vadd.f32 %v7485_v58, %v7479_v3 }
 0x296   :  { %v6945_v56 = vadd.f32 %v2966_v6, %v7488_v7  ;;  %v3758_v54 = vpop.eup %3757  ;;  %v2760_v55 = vmul.f32 %v3756_v19, %v6827_v25  ;;  %v2761_v38 = vmul.f32 %v3756_v19, %v6839_v28  ;;  %v2775_v37 = vsel %vm26_vm0, %v2758_v33, 0.0  ;;  %v7528_v19 = vld [vmem:[#allocation54_spill] sm:$0xff] }
 0x297   :  { %v2792_v51 = vsel %vm26_vm0, %v2759_v40, 0.0  ;;  %v3760_v14 = vpop.eup %3759  ;;  %v2762_v4 = vmul.f32 %v3758_v54, %v6843_v60  ;;  %v2776_v23 = vadd.f32 %v2775_v37, %v2774_v42  ;;  %v6953_v3 = vadd.f32 %v2756_v1, %v6618_v43  ;;  %v7529_v37 = vld [vmem:[#allocation55_spill] sm:$0xff] }
 0x298   :  { %v2793_v29 = vadd.f32 %v2792_v51, %v2791_v62  ;;  %v3762_v58 = vpop.eup %3761  ;;  %v2763_v7 = vmul.f32 %v3758_v54, %v6851_v18  ;;  %v2764_v30 = vmul.f32 %v3760_v14, %v6853_v44  ;;  %v2777_v25 = vsel %vm26_vm0, %v2760_v55, 0.0 }
 0x299   :  { %v2794_v28 = vsel %vm26_vm0, %v2761_v38, 0.0  ;;  %v2765_v24 = vmul.f32 %v3760_v14, %v6861_v9  ;;  %v2778_v13 = vadd.f32 %v2777_v25, %v2776_v23  ;;  %v2779_v15 = vsel %vm26_vm0, %v2762_v4, 0.0  ;;  %v7530_v23 = vld [vmem:[#allocation56_spill] sm:$0xff] }
 0x29a   :  { %v6962_v60 = vadd.f32 %v2757_v36, %v6627_v48  ;;  %v3764_v2 = vpop.eup %3763  ;;  %v2766_v43 = vmul.f32 %v3762_v58, %v6863_v35  ;;  %v2781_v31 = vsel %vm26_vm0, %v2764_v30, 0.0  ;;  %v2795_v18 = vadd.f32 %v2794_v28, %v2793_v29  ;;  %v7532_v28 = vld [vmem:[#allocation58_spill] sm:$0xff] }
 0x29b   :  { %v2796_v44 = vsel %vm26_vm0, %v2763_v7, 0.0  ;;  %v2767_v17 = vmul.f32 %v3762_v58, %v6869_v12  ;;  %v2780_v50 = vadd.f32 %v2779_v15, %v2778_v13  ;;  %v2798_v57 = vsel %vm26_vm0, %v2765_v24, 0.0  ;;  %v7531_v58 = vld [vmem:[#allocation57_spill] sm:$0xff] }
 0x29c   :  { %v6969_v9 = vmul.f32 %v3266_v46, %v3266_v46  ;;  %v2768_v47 = vmul.f32 %v3764_v2, %v6871_v8  ;;  %v2769_v48 = vmul.f32 %v3764_v2, %v6879_v10  ;;  %v2783_v26 = vsel %vm26_vm0, %v2766_v43, 0.0 }
 0x29d   :  { %v3766_v53 = vpop.eup %3765  ;;  %v2797_v35 = vadd.f32 %v2796_v44, %v2795_v18  ;;  %v2782_v41 = vadd.f32 %v2781_v31, %v2780_v50  ;;  %v2800_v6 = vsel %vm26_vm0, %v2767_v17, 0.0  ;;  %v6976_v1 = vadd.f32 %v2758_v33, %v6639_v27  ;;  %v7536_v50 = vld [vmem:[#allocation29_spill] sm:$0xff] }
 0x29e   :  { %v6979_v12 = vadd.f32 %v2759_v40, %v6642_v16  ;;  %v2770_v36 = vmul.f32 %v3766_v53, %v6881_v59  ;;  %v2771_v20 = vmul.f32 %v3766_v53, %v7527_v39  ;;  %v2785_v8 = vsel %vm26_vm0, %v2768_v47, 0.0  ;;  %v7537_v53 = vld [vmem:[#allocation30_spill] sm:$0xff]  ;;  %v7540_v39 = vld [vmem:[#allocation33_spill] sm:$0xff] }
 0x29f   :  { %v2799_v46 = vadd.f32 %v2798_v57, %v2797_v35  ;;  %v3768_v10 = vpop.eup %3767  ;;  %v2784_v42 = vadd.f32 %v2783_v26, %v2782_v41  ;;  %v2802_v62 = vsel %vm26_vm0, %v2769_v48, 0.0  ;;  %v6986_v54 = vadd.f32 %v2760_v55, %v7528_v19  ;;  %v7539_v41 = vld [vmem:[#allocation32_spill] sm:$0xff] }
 0x2a0   :  { %v6989_v27 = vadd.f32 %v2761_v38, %v7529_v37  ;;  %v2772_v16 = vmul.f32 %v3768_v10, %v6889_v11  ;;  %v2787_v33 = vsel %vm26_vm0, %v2770_v36, 0.0  ;;  %v2804_v40 = vsel %vm26_vm0, %v2771_v20, 0.0  ;;  %v7533_v11 = vld [vmem:[#allocation59_spill] sm:$0xff] }
 0x2a1   :  { %v2801_v59 = vadd.f32 %v2800_v6, %v2799_v46  ;;  %v2773_v51 = vmul.f32 %v3768_v10, %v6893_v22  ;;  %v2786_v14 = vadd.f32 %v2785_v8, %v2784_v42  ;;  %v6996_v29 = vadd.f32 %v2762_v4, %v7530_v23  ;;  %v7534_v22 = vld [vmem:[#allocation60_spill] sm:$0xff]  ;;  %v7535_v4 = vld [vmem:[#allocation61_spill] sm:$0xff]  ;;  %v7542_v8 = vld [vmem:[#allocation34_spill] sm:$0xff] }
 0x2a2   :  { %v6999_v25 = vadd.f32 %v2763_v7, %v7531_v58  ;;  %v2789_v55 = vsel %vm26_vm0, %v2772_v16, 0.0  ;;  %v7003_v13 = vadd.f32 %v2764_v30, %v7532_v28  ;;  %v7006_v15 = vadd.f32 %v2765_v24, %v7533_v11  ;;  %v7538_v30 = vld [vmem:[#allocation31_spill] sm:$0xff]  ;;  %v7550_v58 = vld [vmem:[#allocation36_spill] sm:$0xff] }
 0x2a3   :  { %v2803_v38 = vadd.f32 %v2802_v62, %v2801_v59  ;;  %v2788_v2 = vadd.f32 %v2787_v33, %v2786_v14  ;;  %v2806_v31 = vsel %vm26_vm0, %v2773_v51, 0.0  ;;  %v7010_v18 = vadd.f32 %v2766_v43, %v7534_v22  ;;  %v7548_v59 = vld [vmem:[#allocation52_spill] sm:$0xff]  ;;  %v7549_v14 = vld [vmem:[#allocation53_spill] sm:$0xff] }
 0x2a4   :  { %v7013_v44 = vadd.f32 %v2767_v17, %v7535_v4  ;;  %v7016_v57 = vadd.f32 %v2768_v47, %v7536_v50  ;;  %v7019_v26 = vadd.f32 %v2769_v48, %v7537_v53  ;;  %v7022_v35 = vadd.f32 %v2770_v36, %v7538_v30  ;;  %v7543_v47 = vld [vmem:[#allocation35_spill] sm:$0xff]  ;;  %v7544_v48 = vld [vmem:[#allocation48_spill] sm:$0xff]  ;;  %v7545_v36 = vld [vmem:[#allocation49_spill] sm:$0xff] }
 0x2a5   :  { %v2805_v7 = vadd.f32 %v2804_v40, %v2803_v38  ;;  %v2790_v24 = vadd.f32 %v2789_v55, %v2788_v2  ;;  %v7025_v6 = vadd.f32 %v2771_v20, %v7539_v41  ;;  %v7028_v43 = vadd.f32 %v2772_v16, %v7540_v39  ;;  %v7546_v20 = vld [vmem:[#allocation50_spill] sm:$0xff]  ;;  %v7547_v16 = vld [vmem:[#allocation51_spill] sm:$0xff]  ;;  %v7551_v38 = vld [vmem:[#allocation20_spill] sm:$0xff] }
 0x2a6   :  { %v7031_v17 = vadd.f32 %v2773_v51, %v7542_v8  ;;  %v2850_v10 = vadd.f32 %v7543_v47, %v6953_v3  ;;  %v2851_v42 = vadd.f32 %v7544_v48, %v6962_v60  ;;  %v2852_v62 = vadd.f32 %v7545_v36, %v6976_v1  ;;  %v7552_v2 = vld [vmem:[#allocation37_spill] sm:$0xff]  ;;  %v7556_v30 = vld [vmem:[#allocation22_spill] sm:$0xff]  ;;  %v7558_v8 = vld [vmem:[#allocation23_spill] sm:$0xff] }
 0x2a7   :  { %7541 = vst [vmem:[#allocation24_spill] sm:$0xff] %v7028_v43  ;;  %v2807_v46 = vadd.f32 %v2806_v31, %v2805_v7  ;;  %v3242_v19 = vadd.f32 -1.0, %v2790_v24  ;;  %v2853_v37 = vadd.f32 %v7546_v20, %v6979_v12  ;;  %v2854_v33 = vadd.f32 %v7547_v16, %v6986_v54  ;;  %v7553_v22 = vld [vmem:[#allocation21_spill] sm:$0xff]  ;;  %v7554_v7 = vld [vmem:[#allocation18_spill] sm:$0xff] }
 0x2a8   :  { %v2855_v40 = vadd.f32 %v7548_v59, %v6989_v27  ;;  %v2856_v23 = vadd.f32 %v7549_v14, %v6996_v29  ;;  %v2857_v55 = vadd.f32 %v7550_v58, %v6999_v25  ;;  %v2858_v28 = vadd.f32 %v7551_v38, %v7003_v13  ;;  %v7557_v41 = vld [vmem:[#allocation10_spill] sm:$0xff] }
 0x2a9   :  { %v3243_v51 = vadd.f32 -1.0, %v2807_v46  ;;  %v2810_v11 = vmul.f32 %v3242_v19, %v3242_v19  ;;  %v2859_v31 = vadd.f32 %v7552_v2, %v7006_v15  ;;  %v2860_v4 = vadd.f32 %v7553_v22, %v7010_v18  ;;  %v7559_v47 = vld [vmem:[#allocation46_spill] sm:$0xff] }
 0x2aa   :  { %v2861_v50 = vadd.f32 %v7554_v7, %v7013_v44  ;;  %v2862_v24 = vadd.f32 %v7556_v30, %v7016_v57  ;;  %v2863_v39 = vadd.f32 %v7557_v41, %v7019_v26  ;;  %v2864_v46 = vadd.f32 %v7558_v8, %v7022_v35 }
 0x2ab   :  { %v7057_v53 = vmul.f32 %v3243_v51, %v3243_v51  ;;  %v7066_v48 = vadd.f32 %v2810_v11, %v7559_v47  ;;  %v2865_v36 = vadd.f32 %v6913_v45, %v7025_v6  ;;  %v2866_v19 = vadd.f32 %v6918_v63, %v7028_v43 }
 0x2ac   :  { %v2867_v20 = vadd.f32 %v6927_v32, %v7031_v17  ;;  %v3244_v16 = vadd.f32 -1.0, %v2850_v10  ;;  %v3245_v59 = vadd.f32 -1.0, %v2851_v42  ;;  %v3246_v51 = vadd.f32 -1.0, %v2852_v62 }
 0x2ad   :  { %7555 = vst [vmem:[#allocation40_spill] sm:$0xff] %v7057_v53  ;;  %7560 = vst [vmem:[#allocation25_spill] sm:$0xff] %v7066_v48  ;;  %v3247_v14 = vadd.f32 -1.0, %v2853_v37  ;;  %v3248_v58 = vadd.f32 -1.0, %v2854_v33  ;;  %v3249_v38 = vadd.f32 -1.0, %v2855_v40  ;;  %v3250_v2 = vadd.f32 -1.0, %v2856_v23 }
 0x2ae   :  { %v3251_v22 = vadd.f32 -1.0, %v2857_v55  ;;  %v3252_v7 = vadd.f32 -1.0, %v2858_v28  ;;  %v3253_v11 = vadd.f32 -1.0, %v2859_v31  ;;  %v3254_v30 = vadd.f32 -1.0, %v2860_v4 }
 0x2af   :  { %v3255_v41 = vadd.f32 -1.0, %v2861_v50  ;;  %v3256_v8 = vadd.f32 -1.0, %v2862_v24  ;;  %v3257_v45 = vadd.f32 -1.0, %v2863_v39  ;;  %v3258_v47 = vadd.f32 -1.0, %v2864_v46 }
 0x2b0   :  { %v3259_v48 = vadd.f32 -1.0, %v2865_v36  ;;  %v3260_v63 = vadd.f32 -1.0, %v2866_v19  ;;  %v3261_v53 = vadd.f32 -1.0, %v2867_v20  ;;  %v2886_v43 = vmul.f32 %v3244_v16, %v3244_v16 }
 0x2b1   :  { %v2888_v32 = vmul.f32 %v3246_v51, %v3246_v51  ;;  %v2887_v10 = vmul.f32 %v3245_v59, %v3245_v59  ;;  %v2889_v42 = vmul.f32 %v3247_v14, %v3247_v14  ;;  %v2890_v62 = vmul.f32 %v3248_v58, %v3248_v58 }
 0x2b2   :  { %v2891_v37 = vmul.f32 %v3249_v38, %v3249_v38  ;;  %v2892_v33 = vmul.f32 %v3250_v2, %v3250_v2  ;;  %v2893_v40 = vmul.f32 %v3251_v22, %v3251_v22  ;;  %v2894_v23 = vmul.f32 %v3252_v7, %v3252_v7 }
 0x2b3   :  { %v2896_v55 = vmul.f32 %v3254_v30, %v3254_v30  ;;  %v2895_v28 = vmul.f32 %v3253_v11, %v3253_v11  ;;  %v2897_v31 = vmul.f32 %v3255_v41, %v3255_v41  ;;  %v2898_v4 = vmul.f32 %v3256_v8, %v3256_v8 }
 0x2b4   :  { %v2899_v50 = vmul.f32 %v3257_v45, %v3257_v45  ;;  %v2900_v24 = vmul.f32 %v3258_v47, %v3258_v47  ;;  %v2902_v39 = vmul.f32 %v3260_v63, %v3260_v63  ;;  %v2904_v46 = vsel %vm26_vm0, %v2886_v43, 0.0 }
 0x2b5   :  { %v2905_v36 = vsel %vm26_vm0, %v2888_v32, 0.0  ;;  %v2901_v19 = vmul.f32 %v3259_v48, %v3259_v48  ;;  %v2903_v20 = vmul.f32 %v3261_v53, %v3261_v53  ;;  %v2907_v59 = vsel %vm26_vm0, %v2890_v62, 0.0 }
 0x2b6   :  { %v2906_v16 = vadd.f32 %v2905_v36, %v2904_v46  ;;  %v2909_v51 = vsel %vm26_vm0, %v2892_v33, 0.0  ;;  %v2911_v14 = vsel %vm26_vm0, %v2894_v23, 0.0  ;;  %v2913_v58 = vsel %vm26_vm0, %v2896_v55, 0.0  ;;  %v7563_v23 = vld [vmem:[#allocation44_spill] sm:$0xff]  ;;  %v7567_v46 = vld [vmem:[#allocation14_spill] sm:$0xff] }
 0x2b7   :  { %v2915_v38 = vsel %vm26_vm0, %v2898_v4, 0.0  ;;  %v2921_v22 = vsel %vm26_vm0, %v2887_v10, 0.0  ;;  %v2922_v43 = vsel %vm26_vm0, %v2889_v42, 0.0  ;;  %v2924_v7 = vsel %vm26_vm0, %v2891_v37, 0.0  ;;  %v7561_v42 = vld [vmem:[#allocation41_spill] sm:$0xff] }
 0x2b8   :  { %v2908_v2 = vadd.f32 %v2907_v59, %v2906_v16  ;;  %v2917_v53 = vsel %vm26_vm0, %v2900_v24, 0.0  ;;  %v2919_v48 = vsel %vm26_vm0, %v2902_v39, 0.0  ;;  %v2923_v11 = vadd.f32 %v2922_v43, %v2921_v22  ;;  %v7568_v16 = vld [vmem:[#allocation38_spill] sm:$0xff]  ;;  %v7569_v59 = vld [vmem:[#allocation12_spill] sm:$0xff] }
 0x2b9   :  { %v2926_v30 = vsel %vm26_vm0, %v2893_v40, 0.0  ;;  %v2928_v8 = vsel %vm26_vm0, %v2895_v28, 0.0  ;;  %v2930_v45 = vsel %vm26_vm0, %v2897_v31, 0.0  ;;  %v2932_v47 = vsel %vm26_vm0, %v2899_v50, 0.0  ;;  %v7562_v40 = vld [vmem:[#allocation42_spill] sm:$0xff]  ;;  %v7564_v28 = vld [vmem:[#allocation43_spill] sm:$0xff] }
 0x2ba   :  { %v2910_v41 = vadd.f32 %v2909_v51, %v2908_v2  ;;  %v2925_v63 = vadd.f32 %v2924_v7, %v2923_v11  ;;  %v2963_v32 = vmul.f32 %v6938_v49, %v6938_v49  ;;  %v2964_v10 = vadd.f32 %v6969_v9, %v6930_v61  ;;  %v7565_v31 = vld [vmem:[#allocation45_spill] sm:$0xff]  ;;  %v7566_v49 = vld [vmem:[#allocation11_spill] sm:$0xff] }
 0x2bb   :  { %v2969_v62 = vadd.f32 %v6942_v5, %v7561_v42  ;;  %v3268_v33 = vadd.f32 -1.0, %v6945_v56  ;;  %v2976_v55 = vadd.f32 %v7563_v23, %v7562_v40  ;;  %v2977_v4 = vadd.f32 %v7565_v31, %v7564_v28  ;;  %v7570_v2 = vld [vmem:[#allocation13_spill] sm:$0xff] }
 0x2bc   :  { %v2912_v37 = vadd.f32 %v2911_v14, %v2910_v41  ;;  %v2927_v50 = vadd.f32 %v2926_v30, %v2925_v63  ;;  %v2965_v24 = vadd.f32 %v2963_v32, %v6932_v21  ;;  %v2986_v36 = vadd.f32 %v7567_v46, %v7566_v49 }
 0x2bd   :  { %v3269_v39 = vadd.f32 -1.0, %v2969_v62  ;;  %v2972_v9 = vmul.f32 %v3268_v33, %v3268_v33  ;;  %v2978_v5 = vadd.f32 %v2976_v55, %v7568_v16  ;;  %v2979_v51 = vadd.f32 %v2977_v4, %v7569_v59 }
 0x2be   :  { %v2914_v61 = vadd.f32 %v2913_v58, %v2912_v37  ;;  %v2929_v56 = vadd.f32 %v2928_v8, %v2927_v50  ;;  %v2987_v22 = vadd.f32 %v7522_v34, %v7570_v2  ;;  %v2988_v43 = vadd.f32 %v2986_v36, %v7524_v0  ;;  %v7572_v36 = vld [vmem:[#allocation47_spill] sm:$0xff] }
 0x2bf   :  { %v2973_v14 = vmul.f32 %v3269_v39, %v3269_v39  ;;  %v2974_v11 = vadd.f32 %v2972_v9, %v2964_v10  ;;  %v3270_v21 = vadd.f32 -1.0, %v2978_v5  ;;  %v3271_v30 = vadd.f32 -1.0, %v2979_v51 }
 0x2c0   :  { %v2916_v7 = vadd.f32 %v2915_v38, %v2914_v61  ;;  %v2931_v41 = vadd.f32 %v2930_v45, %v2929_v56  ;;  %v2989_v58 = vadd.f32 %v2987_v22, %v7526_v52  ;;  %v3272_v32 = vadd.f32 -1.0, %v2988_v43  ;;  %v7573_v61 = vld [vmem:[#allocation40_spill] sm:$0xff] }
 0x2c1   :  { %v2975_v63 = vadd.f32 %v2973_v14, %v2965_v24  ;;  %v2934_v42 = vsel %vm26_vm0, %v2901_v19, 0.0  ;;  %v2982_v62 = vmul.f32 %v3270_v21, %v3270_v21  ;;  %v2983_v37 = vmul.f32 %v3271_v30, %v3271_v30 }
 0x2c2   :  { %v2996_v8 = vadd.f32 %v6976_v1, %v6953_v3  ;;  %v2918_v33 = vadd.f32 %v2917_v53, %v2916_v7  ;;  %v3273_v34 = vadd.f32 -1.0, %v2989_v58  ;;  %v2992_v40 = vmul.f32 %v3272_v32, %v3272_v32 }
 0x2c3   :  { %v2997_v0 = vadd.f32 %v6979_v12, %v6962_v60  ;;  %v2936_v38 = vsel %vm26_vm0, %v2903_v20, 0.0  ;;  %v2984_v45 = vadd.f32 %v2982_v62, %v2974_v11  ;;  %v2985_v10 = vadd.f32 %v2983_v37, %v2975_v63 }
 0x2c4   :  { %v2998_v52 = vadd.f32 %v2996_v8, %v6986_v54  ;;  %v2933_v23 = vadd.f32 %v2932_v47, %v2931_v41  ;;  %v2993_v55 = vmul.f32 %v3273_v34, %v3273_v34  ;;  %v3006_v28 = vadd.f32 %v7003_v13, %v6996_v29  ;;  %v7571_v29 = vld [vmem:[#allocation24_spill] sm:$0xff] }
 0x2c5   :  { %v2999_v19 = vadd.f32 %v2997_v0, %v6989_v27  ;;  %v2994_v3 = vadd.f32 %v2992_v40, %v2984_v45  ;;  %v3007_v53 = vadd.f32 %v7006_v15, %v6999_v25  ;;  %v3016_v60 = vadd.f32 %v7022_v35, %v7016_v57 }
 0x2c6   :  { %v3274_v1 = vadd.f32 -1.0, %v2998_v52  ;;  %v2920_v12 = vadd.f32 %v2919_v48, %v2918_v33  ;;  %v2995_v20 = vadd.f32 %v2993_v55, %v2985_v10  ;;  %v3008_v54 = vadd.f32 %v3006_v28, %v7010_v18 }
 0x2c7   :  { %v3275_v31 = vadd.f32 -1.0, %v2999_v19  ;;  %v3009_v4 = vadd.f32 %v3007_v53, %v7013_v44  ;;  %v3017_v27 = vadd.f32 %v7025_v6, %v7019_v26  ;;  %v3018_v13 = vadd.f32 %v3016_v60, %v7571_v29 }
 0x2c8   :  { %v3002_v47 = vmul.f32 %v3274_v1, %v3274_v1  ;;  %v2935_v50 = vadd.f32 %v2934_v42, %v2933_v23  ;;  %v3276_v39 = vadd.f32 -1.0, %v3008_v54  ;;  %v3026_v25 = vlaneseq }
 0x2c9   :  { %v3003_v24 = vmul.f32 %v3275_v31, %v3275_v31  ;;  %v3277_v49 = vadd.f32 -1.0, %v3009_v4  ;;  %v3019_v57 = vadd.f32 %v3017_v27, %v7031_v17  ;;  %v3278_v35 = vadd.f32 -1.0, %v3018_v13  ;;  %v7574_v17 = vld [vmem:[#allocation25_spill] sm:$0xff] }
 0x2ca   :  { %v3004_v15 = vadd.f32 %v3002_v47, %v2994_v3  ;;  %v3012_v46 = vmul.f32 %v3276_v39, %v3276_v39  ;;  %v3027_v18 = vshrl.u32 %v3026_v25, 7  ;;  %v2813_v44 = vadd.f32 %v7573_v61, %v7572_v36 }
 0x2cb   :  { %v3005_v48 = vadd.f32 %v3003_v24, %v2995_v20  ;;  %v3013_v9 = vmul.f32 %v3277_v49, %v3277_v49  ;;  %v3279_v16 = vadd.f32 -1.0, %v3019_v57  ;;  %v3022_v26 = vmul.f32 %v3278_v35, %v3278_v35 }
 0x2cc   :  { %v2937_v6 = vadd.f32 %v2936_v38, %v2935_v50  ;;  %v3014_v5 = vadd.f32 %v3012_v46, %v3004_v15  ;;  %v3028_v59 = vadd.s32 8, %v3027_v18  ;;  %vm3029_vm1 = vcmp.ge.s32.totalorder %v3027_v18, 1 }
 0x2cd   :  { %v3015_v51 = vadd.f32 %v3013_v9, %v3005_v48  ;;  %v3023_v56 = vmul.f32 %v3279_v16, %v3279_v16  ;;  %v3769_v14 = vmov 0.0  }
 0x2ce   :  { %v3280_v2 = vsel %vm3029_vm1, 1.0, %v3769_v14  ;;  %v3024_v22 = vadd.f32 %v3022_v26, %v3014_v5  ;;  %vm3032_vm2 = vcmp.le.s32.totalorder %v3028_v59, 9 }
 0x2cf   :  { %v3039_v43 = vmul.f32 %v3280_v2, %v7574_v17  ;;  %v3050_v7 = vmul.f32 %v3280_v2, %v2920_v12  ;;  %v3025_v11 = vadd.f32 %v3023_v56, %v3015_v51  ;;  %v3281_v21 = vsel %vm3032_vm2, 1.0, %v3769_v14 }
 0x2d0   :  { %v3040_v30 = vmul.f32 %v3281_v21, %v2813_v44  ;;  %v3051_v63 = vmul.f32 %v3281_v21, %v2937_v6  ;;  %v3061_v32 = vmul.f32 %v3280_v2, %v3024_v22 }
 0x2d1   :  { %v3041_v41 = vsel %vm26_vm0, %v3039_v43, 0.0  ;;  %v3052_v58 = vsel %vm26_vm0, %v3050_v7, 0.0  ;;  %v3062_v42 = vmul.f32 %v3281_v21, %v3025_v11 }
 0x2d2   :  { %v3042_v62 = vsel %vm26_vm0, %v3040_v30, 0.0  ;;  %v3053_v37 = vsel %vm26_vm0, %v3051_v63, 0.0  ;;  %v3063_v34 = vsel %vm26_vm0, %v3061_v32, 0.0 }
 0x2d3   :  { %v3043_v8 = vadd.f32 %v3042_v62, %v3041_v41  ;;  %v3054_v33 = vadd.f32 %v3053_v37, %v3052_v58  ;;  %v3064_v40 = vsel %vm26_vm0, %v3062_v42, 0.0 }
 0x2d4   :  { %v3065_v0 = vadd.f32 %v3064_v40, %v3063_v34 }
 0x2d5   :  { %v3044_v38 = vrot.slane %v3043_v8, 4  ;;  %v3055_v45 = vrot.slane %v3054_v33, 4 }
 0x2d6   :  { %v3066_v10 = vrot.slane %v3065_v0, 4 }
 0x2d7   :  { %v3045_v52 = vadd.f32 %v3044_v38, %v3043_v8  ;;  %v3056_v23 = vadd.f32 %v3055_v45, %v3054_v33 }
 0x2d8   :  { %v3067_v55 = vadd.f32 %v3066_v10, %v3065_v0 }
 0x2d9   :  { %v3046_v19 = vrot.slane %v3045_v52, 2  ;;  %v3057_v28 = vrot.slane %v3056_v23, 2 }
 0x2da   :  { %v3068_v3 = vrot.slane %v3067_v55, 2 }
 0x2db   :  { %v3047_v1 = vadd.f32 %v3046_v19, %v3045_v52  ;;  %v3058_v53 = vadd.f32 %v3057_v28, %v3056_v23 }
 0x2dc   :  { %v3069_v60 = vadd.f32 %v3068_v3, %v3067_v55 }
 0x2dd   :  { %v3048_v12 = vrot.slane %v3047_v1, 1  ;;  %v3059_v20 = vrot.slane %v3058_v53, 1 }
 0x2de   :  { %v3070_v31 = vrot.slane %v3069_v60, 1 }
 0x2df   :  { %v3049_v54 = vadd.f32 %v3048_v12, %v3047_v1  ;;  %v3060_v47 = vadd.f32 %v3059_v20, %v3058_v53 }
 0x2e0   :  { %v3071_v4 = vadd.f32 %v3070_v31, %v3069_v60 }
 0x2e1   :  { %v3073_v27 = vsel %vm3072_vm3, %v3049_v54, %v3060_v47 }
 0x2e2   :  { %v3075_v29 = vsel %vm3074_vm4, %v3073_v27, %v3071_v4 }
 0x2e3   :  { %3077 = vst.msk [vmem:[%s7143_s1] sm:$0x7] %vm3076_vm5, %v3075_v29 }

</bundles_post_ra>
